<compile_context>
chip_gen: v6e
topology: v6e:2x2x1
jax: 0.10.0
libtpu: 0.0.40
codegen_flags: <defaults>
</compile_context>

<pallas_src>
import functools

import jax
import jax.numpy as jnp
from jax import lax
from jax.experimental import pallas as pl
from jax.experimental.pallas import tpu as pltpu

TAU = 2.0                       # LIFNode default tau
V_TH = 1.0                      # LIFNode default v_threshold
SPIKE_THRESH = TAU * V_TH       # spike <=> (conv+bn out)/tau >= v_th <=> out >= tau*v_th
BN_EPS = 1e-5                   # BatchNorm2d default eps

# static geometry of the network (MNIST-like 28x28 -> 14x14 -> 7x7)
_WP28, _R28, _HALO28 = 30, 900, 31     # padded 30x30 frame, flattened, +halo rows
_WP14, _R14, _HALO14 = 16, 256, 17     # padded 16x16 frame
_WP7, _R7, _HALO7 = 9, 81, 10          # padded 9x9 frame


# ---------------------------------------------------------------------------
# In-kernel building blocks (shared by the fused kernel and the unit-test kernel)
# ---------------------------------------------------------------------------
def _spike(y, mask_bf16):
    """Single-step LIF from fresh state: spike = (y/tau >= v_th); zero padded border."""
    return (y >= SPIKE_THRESH).astype(jnp.bfloat16) * mask_bf16


def _conv3x3_from_slab(slab_ref, patch_ref, w, bias, *, rows, wp, cin):
    """3x3 stride-1 conv over a flattened zero-padded slab held in VMEM.

    slab_ref : (rows + 2*halo, cin) bf16 ref, halo = wp+1; padded-frame rows live at
               [halo, halo+rows); halo and border rows are zero.
    patch_ref: VMEM scratch (>=rows, >=9*cin) bf16 used to assemble the im2col block.
    w        : (9*cin, cout) bf16 BN-folded GEMM weight (value).
    bias     : (1, cout) f32 folded BN bias (value).
    Returns (rows, cout) f32 (border rows are junk and must be masked by the caller).
    """
    halo = wp + 1
    for t in range(9):
        dy, dx = divmod(t, 3)
        off = (dy - 1) * wp + (dx - 1)
        patch_ref[0:rows, t * cin:(t + 1) * cin] = \
            slab_ref[halo + off:halo + off + rows, :]
    return (jnp.dot(patch_ref[0:rows, 0:9 * cin], w,
                    preferred_element_type=jnp.float32) + bias)


# ---------------------------------------------------------------------------
# The fused ResNet2 forward kernel (one grid step == one image)
# ---------------------------------------------------------------------------
def _resnet2_fused_kernel(patches_ref, m28_ref, m14_ref, m7_ref,
                          stem_w_ref, stem_b_ref, l1w_ref, l1b_ref,
                          l2w_ref, l2b_ref, fcw_ref, fcb_ref,
                          out_ref,
                          slab28, slab14, slab7, patch, tmp, id7):
    f32, bf16 = jnp.float32, jnp.bfloat16

    # fresh per-image state: halo + border rows of every slab must be zero
    slab28[...] = jnp.zeros(slab28.shape, slab28.dtype)
    slab14[...] = jnp.zeros(slab14.shape, slab14.dtype)
    slab7[...] = jnp.zeros(slab7.shape, slab7.dtype)
    id7[...] = jnp.zeros(id7.shape, id7.dtype)

    m28, m14, m7 = m28_ref[...], m14_ref[...], m7_ref[...]

    # constant stride-2 column-selection matrices (sel[i, j] = 1 iff j == 2*i+1)
    def _sel(n_out, n_in):
        i = lax.broadcasted_iota(jnp.int32, (n_out, n_in), 0)
        j = lax.broadcasted_iota(jnp.int32, (n_out, n_in), 1)
        return (j == 2 * i + 1).astype(bf16)

    sel14 = _sel(14, _WP28)                        # (14, 30)
    sel7 = _sel(7, _WP14)                          # (7, 16)

    # ---------------- stem: conv3x3(1->64, s1, p1) + BN + LIF ----------------
    y = jnp.dot(patches_ref[...], stem_w_ref[...],
                preferred_element_type=f32) + stem_b_ref[...]           # (900, 64)
    slab28[_HALO28:_HALO28 + _R28, :] = _spike(y, m28)

    # ---------------- MaxPool2d(3, 2, 1): 28x28 -> 14x14 ----------------
    # full-resolution 3x3 max (spikes are {0,1}, zero padding == -inf padding here)
    fm = slab28[_HALO28 - _WP28 - 1:_HALO28 - _WP28 - 1 + _R28, :]
    for t in range(1, 9):
        dy, dx = divmod(t, 3)
        off = (dy - 1) * _WP28 + (dx - 1)
        fm = jnp.maximum(fm, slab28[_HALO28 + off:_HALO28 + off + _R28, :])
    slab28[_HALO28:_HALO28 + _R28, :] = fm         # reuse slab28 as subsample source
    # stride-2 subsample straight into the 14x14 slab interior
    for yo in range(14):
        blk = slab28[_HALO28 + (2 * yo + 1) * _WP28:
                     _HALO28 + (2 * yo + 2) * _WP28, :]                 # (30, 64)
        row = jnp.dot(sel14, blk, preferred_element_type=f32)           # (14, 64)
        base = _HALO14 + (yo + 1) * _WP14 + 1
        slab14[base:base + 14, :] = row.astype(bf16)

    # ---------------- layer1: 2 x BasicBlock(64 -> 64) @ 14x14 ----------------
    for blk_i in range(2):
        identity = slab14[_HALO14:_HALO14 + _R14, :]                    # spikes (256,64)
        y1 = _conv3x3_from_slab(slab14, patch, l1w_ref[2 * blk_i],
                                l1b_ref[2 * blk_i], rows=_R14, wp=_WP14, cin=64)
        slab14[_HALO14:_HALO14 + _R14, :] = _spike(y1, m14)
        y2 = _conv3x3_from_slab(slab14, patch, l1w_ref[2 * blk_i + 1],
                                l1b_ref[2 * blk_i + 1], rows=_R14, wp=_WP14, cin=64)
        y2 = y2 + identity.astype(f32)
        slab14[_HALO14:_HALO14 + _R14, :] = _spike(y2, m14)

    # ---------------- layer2 block0: BasicBlock(64 -> 128, stride 2) ----------------
    # conv1 at full 14x14 resolution (stride-1), LIF, then stride-2 subsample of spikes
    # (pointwise LIF commutes with the subsample, so this equals the stride-2 conv).
    y1 = _conv3x3_from_slab(slab14, patch, l2w_ref[0, 0:576, :], l2b_ref[0],
                            rows=_R14, wp=_WP14, cin=64)
    tmp[...] = _spike(y1, m14)                                          # (256, 128)
    for yo in range(7):
        blk = tmp[(2 * yo + 1) * _WP14:(2 * yo + 2) * _WP14, :]         # (16, 128)
        row = jnp.dot(sel7, blk, preferred_element_type=f32)            # (7, 128)
        base = _HALO7 + (yo + 1) * _WP7 + 1
        slab7[base:base + 7, :] = row.astype(bf16)
    # downsample identity: 1x1 stride-2 conv + BN of the block input (still in slab14)
    w_ds = l2w_ref[1, 0:64, :]
    b_ds = l2b_ref[1]
    for yo in range(7):
        xblk = slab14[_HALO14 + (2 * yo + 1) * _WP14:
                      _HALO14 + (2 * yo + 2) * _WP14, :]                # (16, 64)
        xrow = jnp.dot(sel7, xblk, preferred_element_type=f32).astype(bf16)   # (7, 64)
        idr = jnp.dot(xrow, w_ds, preferred_element_type=f32) + b_ds          # (7, 128)
        id7[(yo + 1) * _WP7 + 1:(yo + 1) * _WP7 + 8, :] = idr
    # conv2 @ 7x7 + identity, LIF
    y2 = _conv3x3_from_slab(slab7, patch, l2w_ref[2], l2b_ref[2],
                            rows=_R7, wp=_WP7, cin=128)
    y2 = y2 + id7[...]
    slab7[_HALO7:_HALO7 + _R7, :] = _spike(y2, m7)

    # ---------------- layer2 block1: BasicBlock(128 -> 128) @ 7x7 ----------------
    identity = slab7[_HALO7:_HALO7 + _R7, :]
    y1 = _conv3x3_from_slab(slab7, patch, l2w_ref[3], l2b_ref[3],
                            rows=_R7, wp=_WP7, cin=128)
    slab7[_HALO7:_HALO7 + _R7, :] = _spike(y1, m7)
    y2 = _conv3x3_from_slab(slab7, patch, l2w_ref[4], l2b_ref[4],
                            rows=_R7, wp=_WP7, cin=128)
    s_out = _spike(y2 + identity.astype(f32), m7)                       # (81, 128)

    # ---------------- AvgPool2d(7) + Flatten + Linear ----------------
    ones = jnp.ones((1, _R7), bf16)                # border rows are zero -> sum/49
    pooled = jnp.dot(ones, s_out, preferred_element_type=f32) * (1.0 / 49.0)   # (1,128)
    out_ref[...] = jnp.dot(pooled, fcw_ref[...],
                           preferred_element_type=f32) + fcb_ref[...]          # (1, 10)


# ---------------------------------------------------------------------------
# Weight / input packing (BN folding, im2col of the 1-channel stem, masks)
# ---------------------------------------------------------------------------
def _fold_bn(bn, cout):
    gamma, beta, mean, var = bn
    scale = (gamma / jnp.sqrt(var + BN_EPS)).astype(jnp.float32)          # (cout,)
    bias = (beta - mean * scale).reshape(1, cout).astype(jnp.float32)     # (1, cout)
    return scale, bias


def _pack_conv(w_oihw, bn):
    """(cout,cin,kh,kw) conv weight -> BN-scale-folded (kh*kw*cin, cout) bf16 weight."""
    cout, cin, kh, kw = w_oihw.shape
    scale, bias = _fold_bn(bn, cout)
    w = jnp.transpose(w_oihw, (2, 3, 1, 0)).reshape(kh * kw * cin, cout)
    return (w * scale).astype(jnp.bfloat16), bias


def _border_mask(h, w):
    """(h+2)*(w+2) rows; 1 where the flattened padded-frame row is an interior pixel."""
    return jnp.pad(jnp.ones((h, w), jnp.bfloat16),
                   ((1, 1), (1, 1))).reshape((h + 2) * (w + 2), 1)


def resnet2_forward(x_nchw, params):
    """Fused ResNet2 forward.  x_nchw: (N, 1, 28, 28).  Returns (N, 10) logits."""
    n = x_nchw.shape[0]

    # stem im2col (the only XLA-side glue left: Cin=1, K=9, ~16KB/img bf16)
    x = x_nchw.astype(jnp.float32)[:, 0, :, :]                           # (N, 28, 28)
    xp2 = jnp.pad(x, ((0, 0), (2, 2), (2, 2)))                           # (N, 32, 32)
    taps = [xp2[:, dy:dy + _WP28, dx:dx + _WP28] for dy in range(3) for dx in range(3)]
    patches = jnp.stack(taps, axis=-1).reshape(n, _R28, 9).astype(jnp.bfloat16)

    # fold BN (eval-mode running stats) into bf16 GEMM weights and pack
    stem_w, stem_b = _pack_conv(params["stem_conv_w"], params["stem_bn"])
    l1 = []
    for bp in params["layer1"]:
        l1.append(_pack_conv(bp["conv1_w"], bp["bn1"]))
        l1.append(_pack_conv(bp["conv2_w"], bp["bn2"]))
    l1_w = jnp.stack([w for w, _ in l1])                                 # (4, 576, 64)
    l1_b = jnp.stack([b for _, b in l1])                                 # (4, 1, 64)

    ds = params["layer2_downsample"]
    b0, b1 = params["layer2"]
    l2 = [_pack_conv(b0["conv1_w"], b0["bn1"]),                          # (576, 128)
          _pack_conv(ds["conv_w"], ds["bn"]),                            # (64, 128)
          _pack_conv(b0["conv2_w"], b0["bn2"]),                          # (1152, 128)
          _pack_conv(b1["conv1_w"], b1["bn1"]),
          _pack_conv(b1["conv2_w"], b1["bn2"])]
    l2_w = jnp.stack([jnp.pad(w, ((0, 1152 - w.shape[0]), (0, 0))) for w, _ in l2])
    l2_b = jnp.stack([b for _, b in l2])                                 # (5, 1, 128)

    fc_w = jnp.transpose(params["fc_w"]).astype(jnp.float32)             # (128, 10)
    fc_b = params["fc_b"].reshape(1, -1).astype(jnp.float32)             # (1, 10)

    m28, m14, m7 = _border_mask(28, 28), _border_mask(14, 14), _border_mask(7, 7)

    out = pl.pallas_call(
        _resnet2_fused_kernel,
        out_shape=jax.ShapeDtypeStruct((n, 1, 10), jnp.float32),
        grid=(n,),
        in_specs=[
            pl.BlockSpec((None, _R28, 9), lambda i: (i, 0, 0)),          # stem patches
            pl.BlockSpec((_R28, 1), lambda i: (0, 0)),                   # masks
            pl.BlockSpec((_R14, 1), lambda i: (0, 0)),
            pl.BlockSpec((_R7, 1), lambda i: (0, 0)),
            pl.BlockSpec((9, 64), lambda i: (0, 0)),                     # stem w / b
            pl.BlockSpec((1, 64), lambda i: (0, 0)),
            pl.BlockSpec((4, 576, 64), lambda i: (0, 0, 0)),             # layer1 w / b
            pl.BlockSpec((4, 1, 64), lambda i: (0, 0, 0)),
            pl.BlockSpec((5, 1152, 128), lambda i: (0, 0, 0)),           # layer2 w / b
            pl.BlockSpec((5, 1, 128), lambda i: (0, 0, 0)),
            pl.BlockSpec((128, 10), lambda i: (0, 0)),                   # fc w / b
            pl.BlockSpec((1, 10), lambda i: (0, 0)),
        ],
        out_specs=pl.BlockSpec((None, 1, 10), lambda i: (i, 0, 0)),
        scratch_shapes=[
            pltpu.VMEM((_R28 + 2 * _HALO28, 64), jnp.bfloat16),   # 28x28 slab (+halo)
            pltpu.VMEM((_R14 + 2 * _HALO14, 64), jnp.bfloat16),   # 14x14 slab (+halo)
            pltpu.VMEM((_R7 + 2 * _HALO7, 128), jnp.bfloat16),    # 7x7  slab (+halo)
            pltpu.VMEM((_R14, 1152), jnp.bfloat16),               # shared im2col patches
            pltpu.VMEM((_R14, 128), jnp.bfloat16),                # full-res s2-conv spikes
            pltpu.VMEM((_R7, 128), jnp.float32),                  # downsample identity
        ],
        compiler_params=pltpu.CompilerParams(
            dimension_semantics=("parallel",),
            vmem_limit_bytes=32 * 1024 * 1024),
    )(patches, m28, m14, m7, stem_w, stem_b, l1_w, l1_b, l2_w, l2_b, fc_w, fc_b)
    return out.reshape(n, 10)


# ---------------------------------------------------------------------------
# Standalone unit-test kernel for the shared conv path (continuous, no threshold)
# ---------------------------------------------------------------------------
def _conv3x3_test_kernel(slab_ref, w_ref, b_ref, o_ref, patch_ref, *, rows, wp, cin):
    o_ref[...] = _conv3x3_from_slab(slab_ref, patch_ref, w_ref[...], b_ref[...],
                                    rows=rows, wp=wp, cin=cin)


def conv3x3_bn_pallas(x_nhwc, w_oihw, bn):
    """Conv2d(3x3,s1,p1,no bias)+BN (eval) via the same in-VMEM im2col path used by
    the fused kernel; only used to verify numerics against lax.conv."""
    n, h, w, cin = x_nhwc.shape
    cout = w_oihw.shape[0]
    wp, hp = w + 2, h + 2
    rows, halo = hp * wp, wp + 1
    w_gemm, bias = _pack_conv(w_oihw, bn)
    xp = jnp.pad(x_nhwc.astype(jnp.bfloat16), ((0, 0), (1, 1), (1, 1), (0, 0)))
    slab = jnp.pad(xp.reshape(n, rows, cin), ((0, 0), (halo, halo), (0, 0)))
    out = pl.pallas_call(
        functools.partial(_conv3x3_test_kernel, rows=rows, wp=wp, cin=cin),
        out_shape=jax.ShapeDtypeStruct((n, rows, cout), jnp.float32),
        grid=(n,),
        in_specs=[
            pl.BlockSpec((None, rows + 2 * halo, cin), lambda i: (i, 0, 0)),
            pl.BlockSpec((9 * cin, cout), lambda i: (0, 0)),
            pl.BlockSpec((1, cout), lambda i: (0, 0)),
        ],
        out_specs=pl.BlockSpec((None, rows, cout), lambda i: (i, 0, 0)),
        scratch_shapes=[pltpu.VMEM((rows, 9 * cin), jnp.bfloat16)],
        compiler_params=pltpu.CompilerParams(dimension_semantics=("parallel",)),
    )(slab, w_gemm, bias)
    return out.reshape(n, hp, wp, cout)[:, 1:h + 1, 1:w + 1, :]


def _ref_conv_bn(x_nhwc, w_oihw, bn, stride=1):
    kh = w_oihw.shape[2]
    pad = 1 if kh == 3 else 0
    y = lax.conv_general_dilated(
        jnp.transpose(x_nhwc, (0, 3, 1, 2)), w_oihw,
        window_strides=(stride, stride), padding=((pad, pad), (pad, pad)),
        dimension_numbers=("NCHW", "OIHW", "NCHW"),
        precision=lax.Precision.HIGHEST)
    gamma, beta, mean, var = bn
    s = gamma / jnp.sqrt(var + BN_EPS)
    y = y * s[None, :, None, None] + (beta - mean * s)[None, :, None, None]
    return jnp.transpose(y, (0, 2, 3, 1))


# ---------------------------------------------------------------------------
# Deterministic parameter init (synthetic; shapes from ResNet2.__init__)
# ---------------------------------------------------------------------------
def _init_conv(key, cout, cin, ksize=3):
    std = (2.0 / (cin * ksize * ksize)) ** 0.5
    return std * jax.random.normal(key, (cout, cin, ksize, ksize), jnp.float32)


def _init_bn(key, c):
    k1, k2, k3, k4 = jax.random.split(key, 4)
    gamma = jax.random.uniform(k1, (c,), jnp.float32, 0.5, 1.5)
    beta = 0.1 * jax.random.normal(k2, (c,), jnp.float32)
    running_mean = 0.1 * jax.random.normal(k3, (c,), jnp.float32)
    running_var = jax.random.uniform(k4, (c,), jnp.float32, 0.5, 1.5)
    return (gamma, beta, running_mean, running_var)


def init_params(key):
    ks = jax.random.split(key, 22)
    it = iter(range(22))
    nk = lambda: ks[next(it)]
    params = {"stem_conv_w": _init_conv(nk(), 64, 1),
              "stem_bn": _init_bn(nk(), 64),
              "layer1": [], "layer2": []}
    for _ in range(2):                                  # layer1: 64 -> 64
        params["layer1"].append({
            "conv1_w": _init_conv(nk(), 64, 64), "bn1": _init_bn(nk(), 64),
            "conv2_w": _init_conv(nk(), 64, 64), "bn2": _init_bn(nk(), 64)})
    params["layer2_downsample"] = {"conv_w": _init_conv(nk(), 128, 64, ksize=1),
                                   "bn": _init_bn(nk(), 128)}
    params["layer2"].append({                           # block 1: 64 -> 128, stride 2
        "conv1_w": _init_conv(nk(), 128, 64), "bn1": _init_bn(nk(), 128),
        "conv2_w": _init_conv(nk(), 128, 128), "bn2": _init_bn(nk(), 128)})
    params["layer2"].append({                           # block 2: 128 -> 128
        "conv1_w": _init_conv(nk(), 128, 128), "bn1": _init_bn(nk(), 128),
        "conv2_w": _init_conv(nk(), 128, 128), "bn2": _init_bn(nk(), 128)})
    params["fc_w"] = 0.3 * jax.random.normal(nk(), (10, 128), jnp.float32)
    params["fc_b"] = 0.1 * jax.random.normal(nk(), (10,), jnp.float32)
    return params


if __name__ == "__main__":
    key = jax.random.PRNGKey(0)
    pkey, xkey, tkey = jax.random.split(key, 3)
    params = init_params(pkey)

    # unit check of the shared in-kernel conv+BN path (continuous output, no threshold)
    xa = jax.random.uniform(tkey, (2, 14, 14, 64), jnp.float32)
    bp0 = params["layer1"][0]
    got = conv3x3_bn_pallas(xa, bp0["conv1_w"], bp0["bn1"])
    want = _ref_conv_bn(xa, bp0["conv1_w"], bp0["bn1"])
    assert jnp.allclose(got, want, atol=5e-2, rtol=5e-2), "conv3x3+bn path mismatch"

    # full fused ResNet2 forward (28x28 input so layer2 ends at 7x7 for AvgPool2d(7))
    x_nchw = jax.random.normal(xkey, (2, 1, 28, 28), jnp.float32)
    logits = jax.jit(resnet2_forward)(x_nchw, params)
    logits = jax.block_until_ready(logits)
    assert logits.shape == (2, 10), logits.shape
    assert bool(jnp.all(jnp.isfinite(logits)))
    print("KERNEL_OK")
</pallas_src>

<mosaic_0001>
module attributes {stable_mosaic.version = 11 : i64} {
  func.func @_conv3x3_test_kernel(%arg0: i32, %arg1: memref<1x290x64xbf16, #tpu.memory_space<vmem>>, %arg2: memref<576x64xbf16, #tpu.memory_space<vmem>>, %arg3: memref<1x64xf32, #tpu.memory_space<vmem>>, %arg4: memref<1x256x64xf32, #tpu.memory_space<vmem>>, %arg5: memref<256x576xbf16, #tpu.memory_space<vmem>>) attributes {dimension_semantics = [#tpu.dimension_semantics<parallel>], iteration_bounds = array<i64: 2>, scalar_prefetch = 0 : i64, scratch_operands = 1 : i64, tpu.core_type = #tpu.core_type<tc>, window_params = [{transform_indices = @transform_0, window_bounds = array<i64: 1, 290, 64>}, {pipeline_mode = #tpu.pipeline_mode<synchronous>, transform_indices = @transform_1, window_bounds = array<i64: 576, 64>}, {pipeline_mode = #tpu.pipeline_mode<synchronous>, transform_indices = @transform_2, window_bounds = array<i64: 1, 64>}, {transform_indices = @transform_3, window_bounds = array<i64: 1, 256, 64>}]} {
    %c0 = arith.constant 0 : index
    %c0_0 = arith.constant 0 : index
    %0 = vector.load %arg2[%c0, %c0_0] : memref<576x64xbf16, #tpu.memory_space<vmem>>, vector<576x64xbf16>
    %c0_1 = arith.constant 0 : index
    %c0_2 = arith.constant 0 : index
    %1 = vector.load %arg3[%c0_1, %c0_2] : memref<1x64xf32, #tpu.memory_space<vmem>>, vector<1x64xf32>
    %c0_3 = arith.constant 0 : index
    %c0_4 = arith.constant 0 : index
    %c0_5 = arith.constant 0 : index
    %2 = vector.load %arg1[%c0_3, %c0_4, %c0_5] : memref<1x290x64xbf16, #tpu.memory_space<vmem>>, vector<1x256x64xbf16>
    %3 = vector.shape_cast %2 : vector<1x256x64xbf16> to vector<256x64xbf16>
    %c0_6 = arith.constant 0 : index
    %c0_7 = arith.constant 0 : index
    %4 = vector.load %arg5[%c0_6, %c0_7] : memref<256x576xbf16, #tpu.memory_space<vmem>>, vector<256x64xbf16>
    tpu.vector_store %arg5[%c0_6, %c0_7], %3 {strides = array<i32>} : memref<256x576xbf16, #tpu.memory_space<vmem>>, vector<256x64xbf16>,
    %c0_8 = arith.constant 0 : index
    %c1 = arith.constant 1 : index
    %c0_9 = arith.constant 0 : index
    %5 = vector.load %arg1[%c0_8, %c1, %c0_9] : memref<1x290x64xbf16, #tpu.memory_space<vmem>>, vector<1x256x64xbf16>
    %6 = vector.shape_cast %5 : vector<1x256x64xbf16> to vector<256x64xbf16>
    %c0_10 = arith.constant 0 : index
    %c64 = arith.constant 64 : index
    %7 = vector.load %arg5[%c0_10, %c64] : memref<256x576xbf16, #tpu.memory_space<vmem>>, vector<256x64xbf16>
    tpu.vector_store %arg5[%c0_10, %c64], %6 {strides = array<i32>} : memref<256x576xbf16, #tpu.memory_space<vmem>>, vector<256x64xbf16>,
    %c0_11 = arith.constant 0 : index
    %c2 = arith.constant 2 : index
    %c0_12 = arith.constant 0 : index
    %8 = vector.load %arg1[%c0_11, %c2, %c0_12] : memref<1x290x64xbf16, #tpu.memory_space<vmem>>, vector<1x256x64xbf16>
    %9 = vector.shape_cast %8 : vector<1x256x64xbf16> to vector<256x64xbf16>
    %c0_13 = arith.constant 0 : index
    %c128 = arith.constant 128 : index
    %10 = vector.load %arg5[%c0_13, %c128] : memref<256x576xbf16, #tpu.memory_space<vmem>>, vector<256x64xbf16>
    tpu.vector_store %arg5[%c0_13, %c128], %9 {strides = array<i32>} : memref<256x576xbf16, #tpu.memory_space<vmem>>, vector<256x64xbf16>,
    %c0_14 = arith.constant 0 : index
    %c16 = arith.constant 16 : index
    %c0_15 = arith.constant 0 : index
    %11 = vector.load %arg1[%c0_14, %c16, %c0_15] : memref<1x290x64xbf16, #tpu.memory_space<vmem>>, vector<1x256x64xbf16>
    %12 = vector.shape_cast %11 : vector<1x256x64xbf16> to vector<256x64xbf16>
    %c0_16 = arith.constant 0 : index
    %c192 = arith.constant 192 : index
    %13 = vector.load %arg5[%c0_16, %c192] : memref<256x576xbf16, #tpu.memory_space<vmem>>, vector<256x64xbf16>
    tpu.vector_store %arg5[%c0_16, %c192], %12 {strides = array<i32>} : memref<256x576xbf16, #tpu.memory_space<vmem>>, vector<256x64xbf16>,
    %c0_17 = arith.constant 0 : index
    %c17 = arith.constant 17 : index
    %c0_18 = arith.constant 0 : index
    %14 = vector.load %arg1[%c0_17, %c17, %c0_18] : memref<1x290x64xbf16, #tpu.memory_space<vmem>>, vector<1x256x64xbf16>
    %15 = vector.shape_cast %14 : vector<1x256x64xbf16> to vector<256x64xbf16>
    %c0_19 = arith.constant 0 : index
    %c256 = arith.constant 256 : index
    %16 = vector.load %arg5[%c0_19, %c256] : memref<256x576xbf16, #tpu.memory_space<vmem>>, vector<256x64xbf16>
    tpu.vector_store %arg5[%c0_19, %c256], %15 {strides = array<i32>} : memref<256x576xbf16, #tpu.memory_space<vmem>>, vector<256x64xbf16>,
    %c0_20 = arith.constant 0 : index
    %c18 = arith.constant 18 : index
    %c0_21 = arith.constant 0 : index
    %17 = vector.load %arg1[%c0_20, %c18, %c0_21] : memref<1x290x64xbf16, #tpu.memory_space<vmem>>, vector<1x256x64xbf16>
    %18 = vector.shape_cast %17 : vector<1x256x64xbf16> to vector<256x64xbf16>
    %c0_22 = arith.constant 0 : index
    %c320 = arith.constant 320 : index
    %19 = vector.load %arg5[%c0_22, %c320] : memref<256x576xbf16, #tpu.memory_space<vmem>>, vector<256x64xbf16>
    tpu.vector_store %arg5[%c0_22, %c320], %18 {strides = array<i32>} : memref<256x576xbf16, #tpu.memory_space<vmem>>, vector<256x64xbf16>,
    %c0_23 = arith.constant 0 : index
    %c32 = arith.constant 32 : index
    %c0_24 = arith.constant 0 : index
    %20 = vector.load %arg1[%c0_23, %c32, %c0_24] : memref<1x290x64xbf16, #tpu.memory_space<vmem>>, vector<1x256x64xbf16>
    %21 = vector.shape_cast %20 : vector<1x256x64xbf16> to vector<256x64xbf16>
    %c0_25 = arith.constant 0 : index
    %c384 = arith.constant 384 : index
    %22 = vector.load %arg5[%c0_25, %c384] : memref<256x576xbf16, #tpu.memory_space<vmem>>, vector<256x64xbf16>
    tpu.vector_store %arg5[%c0_25, %c384], %21 {strides = array<i32>} : memref<256x576xbf16, #tpu.memory_space<vmem>>, vector<256x64xbf16>,
    %c0_26 = arith.constant 0 : index
    %c33 = arith.constant 33 : index
    %c0_27 = arith.constant 0 : index
    %23 = vector.load %arg1[%c0_26, %c33, %c0_27] : memref<1x290x64xbf16, #tpu.memory_space<vmem>>, vector<1x256x64xbf16>
    %24 = vector.shape_cast %23 : vector<1x256x64xbf16> to vector<256x64xbf16>
    %c0_28 = arith.constant 0 : index
    %c448 = arith.constant 448 : index
    %25 = vector.load %arg5[%c0_28, %c448] : memref<256x576xbf16, #tpu.memory_space<vmem>>, vector<256x64xbf16>
    tpu.vector_store %arg5[%c0_28, %c448], %24 {strides = array<i32>} : memref<256x576xbf16, #tpu.memory_space<vmem>>, vector<256x64xbf16>,
    %c0_29 = arith.constant 0 : index
    %c34 = arith.constant 34 : index
    %c0_30 = arith.constant 0 : index
    %26 = vector.load %arg1[%c0_29, %c34, %c0_30] : memref<1x290x64xbf16, #tpu.memory_space<vmem>>, vector<1x256x64xbf16>
    %27 = vector.shape_cast %26 : vector<1x256x64xbf16> to vector<256x64xbf16>
    %c0_31 = arith.constant 0 : index
    %c512 = arith.constant 512 : index
    %28 = vector.load %arg5[%c0_31, %c512] : memref<256x576xbf16, #tpu.memory_space<vmem>>, vector<256x64xbf16>
    tpu.vector_store %arg5[%c0_31, %c512], %27 {strides = array<i32>} : memref<256x576xbf16, #tpu.memory_space<vmem>>, vector<256x64xbf16>,
    %c0_32 = arith.constant 0 : index
    %c0_33 = arith.constant 0 : index
    %29 = vector.load %arg5[%c0_32, %c0_33] : memref<256x576xbf16, #tpu.memory_space<vmem>>, vector<256x576xbf16>
    %cst = arith.constant dense<0.000000e+00> : vector<256x64xf32>
    %30 = tpu.matmul %29, %0, %cst {dimension_numbers = #tpu.dot_dimension_numbers<[1], [0], [0], [1], [0, 0, 1, 1], [], []>} : vector<256x576xbf16>, vector<576x64xbf16>, vector<256x64xf32> -> vector<256x64xf32>
    %31 = vector.broadcast %1 : vector<1x64xf32> to vector<256x64xf32>
    %32 = arith.addf %30, %31 : vector<256x64xf32>
    %c0_34 = arith.constant 0 : index
    %c0_35 = arith.constant 0 : index
    %c0_36 = arith.constant 0 : index
    %33 = vector.load %arg4[%c0_34, %c0_35, %c0_36] : memref<1x256x64xf32, #tpu.memory_space<vmem>>, vector<1x256x64xf32>
    %34 = vector.shape_cast %33 : vector<1x256x64xf32> to vector<256x64xf32>
    %35 = vector.shape_cast %32 : vector<256x64xf32> to vector<1x256x64xf32>
    tpu.vector_store %arg4[%c0_34, %c0_35, %c0_36], %35 {strides = array<i32>} : memref<1x256x64xf32, #tpu.memory_space<vmem>>, vector<1x256x64xf32>,
    return
  }
  func.func @transform_0(%arg0: i32) -> (i32, i32, i32) {
    %c0_i32 = arith.constant 0 : i32
    %c0_i32_0 = arith.constant 0 : i32
    %c0_i32_1 = arith.constant 0 : i32
    return %arg0, %c0_i32, %c0_i32_0 : i32, i32, i32
  }
  func.func @transform_1(%arg0: i32) -> (i32, i32) {
    %c0_i32 = arith.constant 0 : i32
    %c0_i32_0 = arith.constant 0 : i32
    %c0_i32_1 = arith.constant 0 : i32
    return %c0_i32, %c0_i32_0 : i32, i32
  }
  func.func @transform_2(%arg0: i32) -> (i32, i32) {
    %c0_i32 = arith.constant 0 : i32
    %c0_i32_0 = arith.constant 0 : i32
    %c0_i32_1 = arith.constant 0 : i32
    return %c0_i32, %c0_i32_0 : i32, i32
  }
  func.func @transform_3(%arg0: i32) -> (i32, i32, i32) {
    %c0_i32 = arith.constant 0 : i32
    %c0_i32_0 = arith.constant 0 : i32
    %c0_i32_1 = arith.constant 0 : i32
    return %arg0, %c0_i32, %c0_i32_0 : i32, i32, i32
  }
}

</mosaic_0001>

<bundles_post_ra>
// kernel: tpu_custom_call.1
= control target key start
LH: loop header
LB: loop body
LE: loop exit
PB: predicated region body
PF: predicated region fallthrough
CT: control target
= control target key end

     0   :  { %s4651_s12 = smov 0   ;;  %s7499_s0 = inlined_call_operand.vmem [shape: bf16[2,290,64], index: 0, kind: input, shape index: {}]   ;;  %s7500_s1 = inlined_call_operand.vmem [shape: bf16[576,64], index: 1, kind: input, shape index: {}]   ;;  %s7501_s2 = inlined_call_operand.vmem [shape: f32[1,64], index: 2, kind: input, shape index: {}]   ;;  %s7502_s3 = inlined_call_operand.vmem [shape: f32[2,256,64], index: 3, kind: output, shape index: {}]  }
   0x1 LB: > { %s4046_s13 = sadd.s32 4294967295, %s4628_s12   ;;  %p4050_p0 = scmp.ge.s32.totalorder %s4628_s12, 1  ;;  %s4628_s12 = sphi %s4651_s12, %s13_s12  }
   0x2   : > { %p137_p1 = scmp.lt.s32.totalorder %s4628_s12, 3 }
   0x4   : > { %p138_p2 = pnand %p4050_p0, %p137_p1 }
   0x6   : > { %141 = sbr.rel (%p138_p2) target bundleno = 665 (0x299), region = 32 }
   0xb   : > { %p161_p3 = scmp.lt.s32.totalorder %s4046_s13, 1  ;;  %v4503_v0 = vld [vmem:[%s7500_s1 + $0x78] sm:$0xff]   ;;  %v4505_v2 = vld [vmem:[%s7500_s1 + $0x70] sm:$0xff]   ;;  %v4507_v4 = vld [vmem:[%s7500_s1 + $0x68] sm:$0xff]   ;;  %vm343_vm0 = vsmask.f32 3328 }
   0xc   : > { %v4504_v1 = vld [vmem:[%s7500_s1 + $0x38] sm:$0xff]   ;;  %4477 = vmatprep.subr.bf16.mxu1 %v4503_v0  ;;  %4193 = vmatprep.subr.bf16.mxu0 %v4503_v0  ;;  %v4506_v3 = vld [vmem:[%s7500_s1 + $0x30] sm:$0xff]   ;;  %s4630_s28 = smov 64   ;;  %vm344_vm1 = vsmask.f32 7440  ;;  %v4508_v33 = vld [vmem:[%s7500_s1 + $0x28] sm:$0xff]  }
   0xd   : > { %s7778_s13 = smov (!%p161_p3, %s4046_s13), 1  ;;  %4485 = vmatpush3.bf16.msra.mxu1 %v4504_v1  ;;  %4194 = vmatpush3.bf16.msra.mxu0 %v4504_v1  ;;  %vm4711_vm2 = vmor %vm343_vm0, %vm344_vm1  ;;  %v4509_v40 = vld [vmem:[%s7500_s1 + $0x60] sm:$0xff]   ;;  %v4511_v56 = vld [vmem:[%s7500_s1 + $0x58] sm:$0xff]   ;;  %vm865_vm3 = vcmask 1042432   ;;  %vm866_vm4 = vcmask 1046532   ;;  %vm277_vm5 = vcmask 519168  }
   0xe   : > { %s4493_s18 = smul.u32 148, %s7778_s13  ;;  %4478 = vmatprep.subr.bf16.mxu1 %v4505_v2  ;;  %4195 = vmatprep.subr.bf16.mxu0 %v4505_v2  ;;  %v4510_v45 = vld [vmem:[%s7500_s1 + $0x20] sm:$0xff]   ;;  %v4512_v2 = vld [vmem:[%s7500_s1 + $0x18] sm:$0xff]   ;;  %vm5027_vm6 = vmor %vm865_vm3, %vm866_vm4  ;;  %vm766_vm7 = vcmask 1043968   ;;  %vm3427_vm8 = vcmask 523264   ;;  %s4192_s20 = sshll.u32 %s7778_s13, 8 }
   0xf   : > { %s7302_s23 = scalar_lea.vmem %s7502_s3, %s4192_s20 }
  0x10   : > { %s4677_s25 = scalar_lea.vmem %s7499_s0, %s4493_s18 }
  0x11   : > { %v1053_v5 = vld [vmem:[%s4677_s25 + $0x68] sm:$0xf]  ;;  %v1054_v7 = vld [vmem:[%s4677_s25 + $0x6c] sm:$0xf]  ;;  %v334_v8 = vld [vmem:[%s4677_s25 + $0x60] sm:$0xf]  ;;  %4486 = vmatpush3.bf16.msra.mxu1 %v4506_v3  ;;  %4196 = vmatpush3.bf16.msra.mxu0 %v4506_v3 }
  0x12   : > { %v1029_v6 = vld [vmem:[%s4677_s25 + $0x8] sm:$0xf]  ;;  %1141 = vrot.lane.b32.xlu1 %v1053_v5, %s4630_s28  ;;  %v335_v9 = vld [vmem:[%s4677_s25 + $0x64] sm:$0xf]  ;;  %v586_v10 = vshll.u32 %v334_v8, 16  ;;  %v590_v11 = vshrl.u32 %v334_v8, 16  ;;  %4479 = vmatprep.subr.bf16.mxu1 %v4507_v4 }
  0x13   : > { %1093 = vrot.lane.b32.xlu0 %v1029_v6, %s4630_s28  ;;  %v336_v12 = vld [vmem:[%s4677_s25 + $0x68] sm:$0xf]  ;;  %v596_v13 = vshll.u32 %v335_v9, 16  ;;  %v600_v14 = vshrl.u32 %v335_v9, 16  ;;  %v311_v16 = vld [vmem:[%s4677_s25 + $0x4] sm:$0xf]  ;;  %4197 = vmatprep.subr.bf16.mxu0 %v4507_v4 }
  0x14   : > { %v606_v15 = vshll.u32 %v336_v12, 16  ;;  %v1030_v17 = vld [vmem:[%s4677_s25 + $0xc] sm:$0xf]  ;;  %v4692_v18 = vrot.slane %v586_v10, 5  ;;  %v592_v19 = vrot.slane %v590_v11, 4  ;;  %v356_v21 = vshll.u32 %v311_v16, 16 }
  0x15   : > { %v4695_v20 = vld [vmem:[%s4677_s25 + $0x8] sm:$0xf]  ;;  %v360_v22 = vshrl.u32 %v311_v16, 16  ;;  %v598_v23 = vrot.slane %v596_v13, 5  ;;  %v602_v24 = vrot.slane %v600_v14, 4  ;;  %v610_v25 = vshrl.u32 %v336_v12, 16  ;;  %4487 = vmatpush3.bf16.msra.mxu1 %v4508_v33  ;;  %4198 = vmatpush3.bf16.msra.mxu0 %v4508_v33 }
  0x16   : > { %7555 = vst [vmem:[#allocation3_spill] sm:$0xff] %v4692_v18  ;;  %1143 = vrot.lane.b32.xlu1 %v1054_v7, %s4630_s28  ;;  %v366_v26 = vshll.u32 %v4695_v20, 16  ;;  %v337_v27 = vld [vmem:[%s4677_s25 + $0x6c] sm:$0xf]  ;;  %v593_v28 = vor.u32 %v592_v19, %v4692_v18  ;;  %v608_v29 = vrot.slane %v606_v15, 5  ;;  %v4701_v30 = vrot.slane %v356_v21, 5  ;;  %4480 = vmatprep.subr.bf16.mxu1 %v4509_v40 }
  0x17   : > { %v362_v31 = vrot.slane %v360_v22, 4  ;;  %v4704_v32 = vld [vmem:[%s4677_s25 + $0x70] sm:$0xf]  ;;  %v603_v35 = vor.u32 %v602_v24, %v598_v23  ;;  %v370_v36 = vshrl.u32 %v4695_v20, 16  ;;  %v616_v37 = vshll.u32 %v337_v27, 16  ;;  %4199 = vmatprep.subr.bf16.mxu0 %v4509_v40  ;;  %v4515_v22 = vld [vmem:[%s7500_s1 + $0x48] sm:$0xff]  }
  0x18   : > { %v620_v38 = vshrl.u32 %v337_v27, 16  ;;  %v310_v39 = vld [vmem:[%s4677_s25] sm:$0xf]  ;;  %v594_v41 = vrot.slane %v593_v28, 4  ;;  %v4721_v43 = vrot.slane %v366_v26, 5  ;;  %v626_v44 = vshll.u32 %v4704_v32, 16 }
  0x19   : > { %v363_v42 = vor.u32 %v362_v31, %v4701_v30  ;;  %v604_v46 = vrot.slane %v603_v35, 4  ;;  %v4728_v47 = vrot.slane %v616_v37, 5  ;;  %v347_v49 = vshrl.u32 %v310_v39, 16  ;;  %v313_v50 = vld [vmem:[%s4677_s25 + $0xc] sm:$0xf]  ;;  %4488 = vmatpush3.bf16.msra.mxu1 %v4510_v45  ;;  %4200 = vmatpush3.bf16.msra.mxu0 %v4510_v45  ;;  %v4513_v6 = vld [vmem:[%s7500_s1 + $0x50] sm:$0xff]  }
  0x1a   : > { %1095 = vrot.lane.b32.xlu1 %v1030_v17, %s4630_s28  ;;  %v622_v48 = vrot.slane %v620_v38, 4  ;;  %v599_v51 = vsel %vm4711_vm2, %v594_v41, %v598_v23  ;;  %v4733_v53 = vrot.slane %v626_v44, 5  ;;  %v350_v54 = vshll.u32 %v310_v39, 16  ;;  %v4736_v55 = vld [vmem:[%s4677_s25 + $0x10] sm:$0xf]  ;;  %4481 = vmatprep.subr.bf16.mxu1 %v4511_v56  ;;  %v4517_v37 = vld [vmem:[%s7500_s1 + $0x40] sm:$0xff]  }
  0x1b   : > { %v364_v52 = vrot.slane %v363_v42, 4  ;;  %718 = vrot.lane.b32.xlu0 %v599_v51, %s4630_s28  ;;  %v609_v57 = vsel %vm4711_vm2, %v604_v46, %v608_v29  ;;  %v349_v59 = vrot.slane %v347_v49, 4  ;;  %v612_v60 = vrot.slane %v610_v25, 4  ;;  %v339_v1 = vld [vmem:[%s4677_s25 + $0x74] sm:$0xf]  ;;  %4201 = vmatprep.subr.bf16.mxu0 %v4511_v56 }
  0x1c   : > { %v623_v58 = vor.u32 %v622_v48, %v4728_v47  ;;  %v352_v62 = vrot.slane %v350_v54, 5  ;;  %v376_v63 = vshll.u32 %v313_v50, 16  ;;  %v380_v0 = vshrl.u32 %v313_v50, 16  ;;  %v315_v17 = vld [vmem:[%s4677_s25 + $0x14] sm:$0xf]  ;;  %v4518_v50 = vld [vmem:[%s7500_s1] sm:$0xff]  }
  0x1d   : > { %v369_v61 = vsel %vm4711_vm2, %v364_v52, %v4721_v43  ;;  %v613_v4 = vor.u32 %v612_v60, %v608_v29  ;;  %v386_v5 = vshll.u32 %v4736_v55, 16  ;;  %v372_v11 = vrot.slane %v370_v36, 4  ;;  %4489 = vmatpush3.bf16.msra.mxu1 %v4512_v2  ;;  %4202 = vmatpush3.bf16.msra.mxu0 %v4512_v2  ;;  %v4514_v19 = vld [vmem:[%s7500_s1 + $0x10] sm:$0xff]   ;;  %v340_v28 = vld [vmem:[%s4677_s25 + $0x78] sm:$0xf] }
  0x1e   : > { %672 = vrot.lane.b32.xlu1 %v369_v61, %s4630_s28  ;;  %v624_v3 = vrot.slane %v623_v58, 4  ;;  %v353_v7 = vor.u32 %v352_v62, %v349_v59  ;;  %v4757_v8 = vrot.slane %v376_v63, 5  ;;  %v382_v9 = vrot.slane %v380_v0, 4  ;;  %4482 = vmatprep.subr.bf16.mxu1 %v4513_v6  ;;  %v1056_v24 = vld [vmem:[%s4677_s25 + $0x74] sm:$0xf] }
  0x1f   : > { %720 = vrot.lane.b32.xlu0 %v609_v57, %s4630_s28  ;;  %v636_v12 = vshll.u32 %v339_v1, 16  ;;  %v614_v14 = vrot.slane %v613_v4, 4  ;;  %v640_v16 = vshrl.u32 %v339_v1, 16  ;;  %v630_v20 = vshrl.u32 %v4704_v32, 16  ;;  %4203 = vmatprep.subr.bf16.mxu0 %v4513_v6  ;;  %v341_v35 = vld [vmem:[%s4677_s25 + $0x7c] sm:$0xf] }
  0x20   : > { %v629_v10 = vsel %vm4711_vm2, %v624_v3, %v4733_v53  ;;  %v354_v13 = vrot.slane %v353_v7, 4  ;;  %v383_v15 = vor.u32 %v382_v9, %v4757_v8  ;;  %v4770_v21 = vrot.slane %v386_v5, 5  ;;  %v1055_v42 = vld [vmem:[%s4677_s25 + $0x70] sm:$0xf]  ;;  %v316_v49 = vld [vmem:[%s4677_s25 + $0x18] sm:$0xf] }
  0x21   : > { %v4779_v26 = vrot.slane %v636_v12, 5  ;;  %v642_v27 = vrot.slane %v640_v16, 4  ;;  %v396_v29 = vshll.u32 %v315_v17, 16  ;;  %v400_v31 = vshrl.u32 %v315_v17, 16  ;;  %4490 = vmatpush3.bf16.msra.mxu1 %v4514_v19  ;;  %4204 = vmatpush3.bf16.msra.mxu0 %v4514_v19  ;;  %v317_v51 = vld [vmem:[%s4677_s25 + $0x1c] sm:$0xf] }
  0x22   : > { %724 = vrot.lane.b32.xlu1 %v629_v10, %s4630_s28  ;;  %v359_v23 = vsel %vm4711_vm2, %v354_v13, %v4701_v30  ;;  %v384_v25 = vrot.slane %v383_v15, 4  ;;  %v619_v32 = vsel %vm4711_vm2, %v614_v14, %v4728_v47  ;;  %v373_v33 = vor.u32 %v372_v11, %v4721_v43  ;;  %v4516_v30 = vld [vmem:[%s7500_s1 + $0x8] sm:$0xff]   ;;  %4483 = vmatprep.subr.bf16.mxu1 %v4515_v22  ;;  %v1032_v52 = vld [vmem:[%s4677_s25 + $0x14] sm:$0xf]  ;;  %v342_v60 = vld [vmem:[%s4677_s25 + $0x80] sm:$0x1] }
  0x23   : > { %670 = vrot.lane.b32.xlu0 %v359_v23, %s4630_s28  ;;  %v390_v36 = vshrl.u32 %v4736_v55, 16  ;;  %v643_v39 = vor.u32 %v642_v27, %v4779_v26  ;;  %v646_v40 = vshll.u32 %v340_v28, 16  ;;  %v632_v41 = vrot.slane %v630_v20, 4  ;;  %4205 = vmatprep.subr.bf16.mxu0 %v4515_v22  ;;  %v4825_v7 = vld [vmem:[%s4677_s25 + $0x20] sm:$0xf] }
  0x24   : > { %v389_v38 = vsel %vm4711_vm2, %v384_v25, %v4770_v21  ;;  %v4802_v43 = vrot.slane %v396_v29, 5  ;;  %v402_v44 = vrot.slane %v400_v31, 4  ;;  %v656_v45 = vshll.u32 %v341_v35, 16  ;;  %v1031_v12 = vld [vmem:[%s4677_s25 + $0x10] sm:$0xf] }
  0x25   : > { %v660_v46 = vshrl.u32 %v341_v35, 16  ;;  %v374_v47 = vrot.slane %v373_v33, 4  ;;  %v650_v48 = vshrl.u32 %v340_v28, 16  ;;  %4491 = vmatpush3.bf16.msra.mxu1 %v4516_v30  ;;  %4206 = vmatpush3.bf16.msra.mxu0 %v4516_v30  ;;  %v644_v54 = vrot.slane %v643_v39, 4  ;;  %v319_v16 = vld [vmem:[%s4677_s25 + $0x24] sm:$0xf] }
  0x26   : > { %1147 = vrot.lane.b32.xlu1 %v1056_v24, %s4630_s28  ;;  %4484 = vmatprep.subr.bf16.mxu1 %v4517_v37  ;;  %v648_v55 = vrot.slane %v646_v40, 5  ;;  %v633_v56 = vor.u32 %v632_v41, %v4733_v53  ;;  %v392_v57 = vrot.slane %v390_v36, 4  ;;  %v403_v58 = vor.u32 %v402_v44, %v4802_v43  ;;  %v4837_v20 = vld [vmem:[%s4677_s25 + $0xc] sm:$0xf]  ;;  %v1058_v23 = vld [vmem:[%s4677_s25 + $0x7c] sm:$0xf] }
  0x27   : > { %722 = vrot.lane.b32.xlu0 %v619_v32, %s4630_s28  ;;  %4207 = vmatprep.subr.bf16.mxu0 %v4517_v37  ;;  %v406_v59 = vshll.u32 %v316_v49, 16  ;;  %v4815_v61 = vrot.slane %v656_v45, 5  ;;  %v662_v62 = vrot.slane %v660_v46, 4  ;;  %v379_v63 = vsel %vm4711_vm2, %v374_v47, %v4757_v8  ;;  %v1998_v8 = vld [vmem:[%s4677_s25 + $0x14] sm:$0xf] }
  0x28   : > { %v652_v0 = vrot.slane %v650_v48, 4  ;;  %v416_v1 = vshll.u32 %v317_v51, 16  ;;  %v420_v53 = vshrl.u32 %v317_v51, 16  ;;  %v410_v2 = vshrl.u32 %v316_v49, 16  ;;  %v4848_v28 = vld [vmem:[%s4677_s25 + $0x10] sm:$0xf] }
  0x29   : > { %4492 = vmatpush3.bf16.msra.mxu1 %v4518_v50  ;;  %4208 = vmatpush3.bf16.msra.mxu0 %v4518_v50  ;;  %v649_v3 = vsel %vm4711_vm2, %v644_v54, %v648_v55  ;;  %v634_v4 = vrot.slane %v633_v56, 4  ;;  %v393_v5 = vor.u32 %v392_v57, %v4770_v21  ;;  %v666_v6 = vshll.u32 %v342_v60, 16  ;;  %v1997_v35 = vld [vmem:[%s4677_s25 + $0x10] sm:$0xf]  ;;  %v2000_v44 = vld [vmem:[%s4677_s25 + $0x1c] sm:$0xf] }
  0x2a   : > { %676 = vrot.lane.b32.xlu1 %v389_v38, %s4630_s28  ;;  %v404_v9 = vrot.slane %v403_v58, 4  ;;  %v408_v10 = vrot.slane %v406_v59, 5  ;;  %v663_v11 = vor.u32 %v662_v62, %v4815_v61  ;;  %v653_v13 = vor.u32 %v652_v0, %v648_v55  ;;  %v1999_v38 = vld [vmem:[%s4677_s25 + $0x18] sm:$0xf]  ;;  %v4875_v48 = vld [vmem:[%s4677_s25 + $0x8] sm:$0xe] }
  0x2b   : > { %1145 = vrot.lane.b32.xlu0 %v1055_v42, %s4630_s28  ;;  %v4831_v14 = vrot.slane %v416_v1, 5  ;;  %v422_v15 = vrot.slane %v420_v53, 4  ;;  %v426_v17 = vshll.u32 %v4825_v7, 16  ;;  %v412_v19 = vrot.slane %v410_v2, 4  ;;  %v1057_v45 = vld [vmem:[%s4677_s25 + $0x78] sm:$0xf] }
  0x2c   : > { %v2040_v21 = vshll.u32 %v1998_v8, 16  ;;  %v2044_v22 = vshrl.u32 %v1998_v8, 16  ;;  %v639_v24 = vsel %vm4711_vm2, %v634_v4, %v4779_v26  ;;  %v4843_v25 = vrot.slane %v393_v5, 4  ;;  %v4531_v51 = vld [vmem:[%s7500_s1 + $0xf8] sm:$0xff]   ;;  %v4905_v8 = vld [vmem:[%s4677_s25 + $0x20] sm:$0xf] }
  0x2d   : > { %v4845_v27 = vrot.slane %v666_v6, 5  ;;  %v409_v29 = vsel %vm4711_vm2, %v404_v9, %v408_v10  ;;  %v4853_v31 = vrot.slane %v663_v11, 4  ;;  %v436_v32 = vshll.u32 %v319_v16, 16  ;;  %v1034_v57 = vld [vmem:[%s4677_s25 + $0x1c] sm:$0xf]  ;;  %4305 = vmatprep.subr.bf16.mxu1 %v4531_v51 }
  0x2e   : > { %1099 = vrot.lane.b32.xlu1 %v1032_v52, %s4630_s28  ;;  %v440_v33 = vshrl.u32 %v319_v16, 16  ;;  %v4856_v26 = vrot.slane %v653_v13, 4  ;;  %v423_v30 = vor.u32 %v422_v15, %v4831_v14  ;;  %v430_v36 = vshrl.u32 %v4825_v7, 16 }
  0x2f   : > { %674 = vrot.lane.b32.xlu0 %v379_v63, %s4630_s28  ;;  %v1710_v37 = vrot.slane %v4837_v20, 5  ;;  %v4863_v39 = vrot.slane %v426_v17, 5  ;;  %v413_v40 = vor.u32 %v412_v19, %v408_v10  ;;  %v4865_v41 = vrot.slane %v2040_v21, 5  ;;  %v321_v63 = vld [vmem:[%s4677_s25 + $0x2c] sm:$0xf] }
  0x30   : > { %v2046_v42 = vrot.slane %v2044_v22, 4  ;;  %v399_v46 = vsel %vm4711_vm2, %v4843_v25, %v4802_v43  ;;  %v1713_v47 = vrot.slane %v4848_v28, 5  ;;  %v2031_v49 = vshrl.u32 %v1997_v35, 16  ;;  %v320_v43 = vld [vmem:[%s4677_s25 + $0x28] sm:$0xf] }
  0x31   : > { %v2034_v50 = vshll.u32 %v1997_v35, 16  ;;  %v669_v52 = vsel %vm4711_vm2, %v4853_v31, %v4845_v27  ;;  %v2050_v54 = vshll.u32 %v1999_v38, 16  ;;  %v4886_v55 = vrot.slane %v436_v32, 5  ;;  %v2002_v21 = vld [vmem:[%s4677_s25 + $0x24] sm:$0xf] }
  0x32   : > { %728 = vrot.lane.b32.xlu1 %v649_v3, %s4630_s28  ;;  %v442_v56 = vrot.slane %v440_v33, 4  ;;  %v4889_v58 = vrot.slane %v423_v30, 4  ;;  %v4893_v59 = vrot.slane %v1710_v37, 4  ;;  %v2060_v60 = vshll.u32 %v2000_v44, 16  ;;  %v4901_v3 = vld [vmem:[%s4677_s25 + $0x14] sm:$0xf] }
  0x33   : > { %1097 = vrot.lane.b32.xlu0 %v1031_v12, %s4630_s28  ;;  %v2064_v62 = vshrl.u32 %v2000_v44, 16  ;;  %v4897_v0 = vrot.slane %v413_v40, 4  ;;  %v2047_v1 = vor.u32 %v2046_v42, %v4865_v41  ;;  %v2054_v53 = vshrl.u32 %v1999_v38, 16  ;;  %v4912_v12 = vld [vmem:[%s4677_s25 + $0x18] sm:$0xf] }
  0x34   : > { %v432_v2 = vrot.slane %v430_v36, 4  ;;  %v446_v5 = vshll.u32 %v320_v43, 16  ;;  %v2033_v6 = vrot.slane %v2031_v49, 4  ;;  %v2036_v7 = vrot.slane %v2034_v50, 5  ;;  %v4924_v25 = vld [vmem:[%s4677_s25 + $0x30] sm:$0xf] }
  0x35   : > { %v4908_v9 = vrot.slane %v2050_v54, 5  ;;  %v443_v10 = vor.u32 %v442_v56, %v4886_v55  ;;  %v450_v11 = vshrl.u32 %v320_v43, 16  ;;  %v456_v13 = vshll.u32 %v321_v63, 16  ;;  %v4936_v40 = vld [vmem:[%s4677_s25 + $0x1c] sm:$0xf] }
  0x36   : > { %1151 = vrot.lane.b32.xlu1 %v1058_v23, %s4630_s28  ;;  %v7504_v15 = vrot.slane %v4901_v3, 5  ;;  %v4915_v16 = vrot.slane %v2060_v60, 5  ;;  %v2066_v17 = vrot.slane %v2064_v62, 4  ;;  %v460_v19 = vshrl.u32 %v321_v63, 16  ;;  %v1060_v44 = vld [vmem:[%s4677_s25 + $0x84] sm:$0xf] }
  0x37   : > { %726 = vrot.lane.b32.xlu0 %v639_v24, %s4630_s28  ;;  %v4919_v22 = vrot.slane %v2047_v1, 4  ;;  %v433_v23 = vor.u32 %v432_v2, %v4863_v39  ;;  %v2070_v24 = vshll.u32 %v4905_v8, 16  ;;  %v2056_v27 = vrot.slane %v2054_v53, 4  ;;  %v4946_v50 = vld [vmem:[%s4677_s25 + $0x20] sm:$0xf] }
  0x38   : > { %v4927_v31 = vrot.slane %v446_v5, 5  ;;  %v2037_v32 = vor.u32 %v2036_v7, %v2033_v6  ;;  %v4929_v33 = vrot.slane %v456_v13, 5  ;;  %v462_v35 = vrot.slane %v460_v19, 4  ;;  %v4956_v60 = vld [vmem:[%s4677_s25 + $0x28] sm:$0xf] }
  0x39   : > { %v4932_v30 = vrot.slane %v443_v10, 4  ;;  %v7505_v36 = vrot.slane %v4912_v12, 5  ;;  %v452_v38 = vrot.slane %v450_v11, 4  ;;  %v2080_v42 = vshll.u32 %v2002_v21, 16  ;;  %v323_v53 = vld [vmem:[%s4677_s25 + $0x34] sm:$0xf] }
  0x3a   : > { %680 = vrot.lane.b32.xlu1 %v409_v29, %s4630_s28  ;;  %v1033_v29 = vld [vmem:[%s4677_s25 + $0x18] sm:$0xf]  ;;  %v2067_v49 = vor.u32 %v2066_v17, %v4915_v16  ;;  %v2084_v51 = vshrl.u32 %v2002_v21, 16  ;;  %v4949_v54 = vrot.slane %v433_v23, 4  ;;  %v4951_v43 = vrot.slane %v2070_v24, 5 }
  0x3b   : > { %1149 = vrot.lane.b32.xlu0 %v1057_v45, %s4630_s28  ;;  %v4941_v45 = vrot.slane %v7504_v15, 4  ;;  %v2074_v56 = vshrl.u32 %v4905_v8, 16  ;;  %v4958_v62 = vrot.slane %v2037_v32, 4  ;;  %v4962_v63 = vrot.slane %v1713_v47, 4  ;;  %v4982_v17 = vld [vmem:[%s4677_s25 + $0x38] sm:$0xf] }
  0x3c   : > { %v463_v1 = vor.u32 %v462_v35, %v4929_v33  ;;  %v659_v2 = vsel %vm4711_vm2, %v4856_v26, %v4815_v61  ;;  %v453_v5 = vor.u32 %v452_v38, %v4927_v31  ;;  %v4973_v6 = vrot.slane %v2080_v42, 5  ;;  %v4989_v19 = vld [vmem:[%s4677_s25 + $0x60] sm:$0xf]  ;;  %v824_v21 = vld [vmem:[%s4677_s25 + $0x64] sm:$0xf] }
  0x3d   : > { %v2086_v7 = vrot.slane %v2084_v51, 4  ;;  %v4975_v8 = vrot.slane %v2067_v49, 4  ;;  %v470_v11 = vshrl.u32 %v4924_v25, 16  ;;  %v2090_v13 = vshll.u32 %v4956_v60, 16  ;;  %7558 = vst [vmem:[#allocation4_spill] sm:$0xff] %v4989_v19 }
  0x3e   : > { %1103 = vrot.lane.b32.xlu1 %v1034_v57, %s4630_s28  ;;  %v2057_v57 = vor.u32 %v2056_v27, %v4908_v9  ;;  %v429_v23 = vsel %vm4711_vm2, %v4889_v58, %v4863_v39  ;;  %v1059_v24 = vld [vmem:[%s4677_s25 + $0x80] sm:$0xf]  ;;  %v5005_v32 = vrot.slane %v453_v5, 4  ;;  %v476_v42 = vshll.u32 %v323_v53, 16  ;;  %v1036_v39 = vld [vmem:[%s4677_s25 + $0x24] sm:$0xf] }
  0x3f   : > { %678 = vrot.lane.b32.xlu0 %v399_v46, %s4630_s28  ;;  %v466_v46 = vshll.u32 %v4924_v25, 16  ;;  %v4997_v25 = vrot.slane %v463_v1, 4  ;;  %v2087_v35 = vor.u32 %v2086_v7, %v4973_v6  ;;  %v5010_v58 = vrot.slane %v2090_v13, 5  ;;  %v5023_v7 = vld [vmem:[%s4677_s25 + $0x68] sm:$0xf] }
  0x40   : > { %v4985_v61 = vrot.slane %v2057_v57, 4  ;;  %v486_v49 = vshll.u32 %v4982_v17, 16  ;;  %v7506_v51 = vrot.slane %v4989_v19, 5  ;;  %v5020_v57 = vrot.slane %v7505_v36, 4  ;;  %v5032_v13 = vld [vmem:[%s4677_s25 + $0x28] sm:$0xf] }
  0x41   : > { %v4977_v10 = vrot.slane %v466_v46, 5  ;;  %v5014_v46 = vld [vmem:[%s4677_s25 + $0x24] sm:$0xf]  ;;  %v2076_v1 = vrot.slane %v2074_v56, 4  ;;  %v799_v15 = vld [vmem:[%s4677_s25] sm:$0xe] }
  0x42   : > { %732 = vrot.lane.b32.xlu1 %v669_v52, %s4630_s28  ;;  %v7503_v52 = vrot.slane %v4936_v40, 5  ;;  %v5038_v56 = vrot.slane %v2087_v35, 4  ;;  %v472_v26 = vrot.slane %v470_v11, 4  ;;  %v800_v38 = vld [vmem:[%s4677_s25 + $0x4] sm:$0xf]  ;;  %v5048_v4 = vrot.slane %v486_v49, 5 }
  0x43   : > { %1101 = vrot.lane.b32.xlu0 %v1033_v29, %s4630_s28  ;;  %v2004_v29 = vld [vmem:[%s4677_s25 + $0x2c] sm:$0xf]  ;;  %v269_v35 = vld [vmem:[%s4677_s25 + $0x60] sm:$0xf]  ;;  %v1714_v11 = vsel %vm5027_vm6, %v4893_v59, %v1713_v47  ;;  %v2005_v49 = vld [vmem:[%s4677_s25 + $0x30] sm:$0xf] }
  0x44   : > { %v5001_v27 = vrot.slane %v7503_v52, 4  ;;  %v2100_v5 = vshll.u32 %v2004_v29, 16  ;;  %v2104_v52 = vshrl.u32 %v2004_v29, 16  ;;  %302 = vst.msk [vmem:[#allocation2 + $0x1e0] sm:$0xf] %vm277_vm5, %v269_v35  ;;  %v7507_v36 = vrot.slane %v5023_v7, 5 }
  0x45   : > { %v4054_v47 = vrot.slane %v799_v15, 9  ;;  %v473_v59 = vor.u32 %v472_v26, %v4977_v10  ;;  %v2053_v35 = vsel %vm4711_vm2, %v4919_v22, %v4908_v9  ;;  %v270_v22 = vld [vmem:[%s4677_s25 + $0x64] sm:$0xf]  ;;  %v247_v19 = vld [vmem:[%s4677_s25 + $0x8] sm:$0xf] }
  0x46   : > { %1155 = vrot.lane.b32.xlu1 %v1060_v44, %s4630_s28  ;;  %v480_v44 = vshrl.u32 %v323_v53, 16  ;;  %v2106_v28 = vrot.slane %v2104_v52, 4  ;;  %v5084_v52 = vld [vmem:[%s4677_s25 + $0x40] sm:$0xf]  ;;  %303 = vst.msk [vmem:[#allocation2 + $0x1f4] sm:$0xf] %vm277_vm5, %v270_v22 }
  0x47   : > { %730 = vrot.lane.b32.xlu0 %v659_v2, %s4630_s28  ;;  %v942_v2 = vrot.slane %v824_v21, 5  ;;  %v5040_v21 = vrot.slane %v476_v42, 5  ;;  %v2077_v42 = vor.u32 %v2076_v1, %v4951_v43  ;;  %v2110_v1 = vshll.u32 %v2005_v49, 16  ;;  %280 = vst.msk [vmem:[#allocation2 + $0x28] sm:$0xf] %vm277_vm5, %v247_v19 }
  0x48   : > { %v482_v29 = vrot.slane %v480_v44, 4  ;;  %v325_v44 = vld [vmem:[%s4677_s25 + $0x3c] sm:$0xf]  ;;  %v7562_v22 = vshrl.u32 %v4956_v60, 16  ;;  %v449_v60 = vsel %vm4711_vm2, %v4932_v30, %v4927_v31  ;;  %v2043_v31 = vsel %vm4711_vm2, %v4958_v62, %v4865_v41  ;;  %v1038_v30 = vld [vmem:[%s4677_s25 + $0x2c] sm:$0xf] }
  0x49   : > { %v500_v26 = vshrl.u32 %v325_v44, 16  ;;  %v7566_v41 = vrot.slane %v4912_v12, 5  ;;  %v274_v19 = vld [vmem:[%s4677_s25 + $0x74] sm:$0xf] }
  0x4a   : > { %684 = vrot.lane.b32.xlu1 %v429_v23, %s4630_s28  ;;  %v941_v23 = vrot.slane %v7506_v51, 4  ;;  %v419_v51 = vsel %vm4711_vm2, %v4897_v0, %v4831_v14  ;;  %v7508_v14 = vrot.slane %v5014_v46, 5  ;;  %v5062_v0 = vrot.slane %v2100_v5, 5  ;;  %307 = vst.msk [vmem:[#allocation2 + $0x244] sm:$0xf] %vm277_vm5, %v274_v19 }
  0x4b   : > { %1153 = vrot.lane.b32.xlu0 %v1059_v24, %s4630_s28  ;;  %v870_v5 = vrot.slane %v800_v38, 5  ;;  %v483_v38 = vor.u32 %v482_v29, %v5040_v21  ;;  %v1720_v62 = vsel %vm5027_vm6, %v4941_v45, %v7566_v41  ;;  %v439_v45 = vsel %vm4711_vm2, %v4949_v54, %v4886_v55  ;;  %v327_v54 = vld [vmem:[%s4677_s25 + $0x44] sm:$0xf]  ;;  %v273_v19 = vld [vmem:[%s4677_s25 + $0x70] sm:$0xf] }
  0x4c   : > { %v943_v24 = vsel %vm5027_vm6, %v941_v23, %v942_v2  ;;  %v944_v23 = vrot.slane %v942_v2, 4  ;;  %v5090_v2 = vrot.slane %v7508_v14, 4  ;;  %v7567_v14 = vrot.slane %v5023_v7, 5  ;;  %306 = vst.msk [vmem:[#allocation2 + $0x230] sm:$0xf] %vm277_vm5, %v273_v19 }
  0x4d   : > { %1021 = vst.msk [vmem:[#allocation2 + $0x1e4] sm:$0xf] %vm277_vm5, %v943_v24  ;;  %v5073_v24 = vld [vmem:[%s4677_s25 + $0x8] sm:$0xf]  ;;  %v871_v9 = vsel %vm5027_vm6, %v4054_v47, %v870_v5  ;;  %v5110_v47 = vrot.slane %v473_v59, 4  ;;  %v2114_v59 = vshrl.u32 %v2005_v49, 16 }
  0x4e   : > { %1107 = vrot.lane.b32.xlu1 %v1036_v39, %s4630_s28  ;;  %v1035_v39 = vld [vmem:[%s4677_s25 + $0x20] sm:$0xf]  ;;  %v946_v15 = vsel %vm5027_vm6, %v944_v23, %v7507_v36  ;;  %v5096_v23 = vrot.slane %v2077_v42, 4  ;;  %v2107_v36 = vor.u32 %v2106_v28, %v5062_v0  ;;  %997 = vst.msk [vmem:[#allocation2 + $0x4] sm:$0xf] %vm277_vm5, %v871_v9  ;;  %v7509_v29 = vrot.slane %v5073_v24, 5 }
  0x4f   : > { %682 = vrot.lane.b32.xlu0 %v419_v51, %s4630_s28  ;;  %v496_v51 = vshll.u32 %v325_v44, 16  ;;  %1022 = vst.msk [vmem:[#allocation2 + $0x1f8] sm:$0xf] %vm277_vm5, %v946_v15  ;;  %v246_v44 = vld [vmem:[%s4677_s25 + $0x4] sm:$0xf]  ;;  %v7561_v15 = vrot.slane %v4875_v48, 9 }
  0x50   : > { %v506_v28 = vshll.u32 %v5084_v52, 16  ;;  %279 = vst.msk [vmem:[#allocation2 + $0x14] sm:$0xf] %vm277_vm5, %v246_v44  ;;  %v502_v9 = vrot.slane %v500_v26, 4  ;;  %v5125_v48 = vrot.slane %v2110_v1, 5 }
  0x51   : > { %v1711_v42 = vsel %vm5027_vm6, %v7561_v15, %v1710_v37  ;;  %v5123_v37 = vrot.slane %v483_v38, 4  ;;  %v510_v38 = vshrl.u32 %v5084_v52, 16  ;;  %v272_v1 = vld [vmem:[%s4677_s25 + $0x6c] sm:$0xf]  ;;  %v245_v15 = vld [vmem:[%s4677_s25] sm:$0xf] }
  0x52   : > { %1807 = vrot.lane.b32.xlu1 %v1714_v11, %s4630_s28  ;;  %v872_v11 = vrot.slane %v870_v5, 4  ;;  %v5114_v5 = vrot.slane %v496_v51, 5  ;;  %v7563_v51 = vrot.slane %v4946_v50, 5  ;;  %v5141_v49 = vrot.slane %v506_v28, 5  ;;  %305 = vst.msk [vmem:[#allocation2 + $0x21c] sm:$0xf] %vm277_vm5, %v272_v1 }
  0x53   : > { %1105 = vrot.lane.b32.xlu0 %v1035_v39, %s4630_s28  ;;  %v2096_v39 = vrot.slane %v7562_v22, 4  ;;  %278 = vst.msk [vmem:[#allocation2] sm:$0xf] %vm277_vm5, %v245_v15  ;;  %v7565_v28 = vrot.slane %v5032_v13, 5  ;;  %v271_v15 = vld [vmem:[%s4677_s25 + $0x68] sm:$0xf] }
  0x54   : > { %v874_v20 = vsel %vm5027_vm6, %v872_v11, %v7509_v29  ;;  %v5129_v26 = vrot.slane %v7563_v51, 4  ;;  %v7564_v11 = vshrl.u32 %v4982_v17, 16  ;;  %v2006_v17 = vld [vmem:[%s4677_s25 + $0x34] sm:$0xf]  ;;  %v5174_v51 = vld [vmem:[%s4677_s25 + $0x70] sm:$0xf] }
  0x55   : > { %998 = vst.msk [vmem:[#allocation2 + $0x18] sm:$0xf] %vm277_vm5, %v874_v20  ;;  %v2097_v52 = vor.u32 %v2096_v39, %v5010_v58  ;;  %v5162_v22 = vrot.slane %v7565_v28, 4  ;;  %v2116_v20 = vrot.slane %v2114_v59, 4  ;;  %v826_v39 = vld [vmem:[%s4677_s25 + $0x6c] sm:$0xf] }
  0x56   : > { %2356 = vrot.lane.b32.xlu1 %v2053_v35, %s4630_s28  ;;  %v5136_v35 = vrot.slane %v2107_v36, 4  ;;  %v492_v44 = vrot.slane %v7564_v11, 4  ;;  %v503_v36 = vor.u32 %v502_v9, %v5114_v5  ;;  %v5170_v9 = vld [vmem:[%s4677_s25 + $0x38] sm:$0xf]  ;;  %v2120_v1 = vshll.u32 %v2006_v17, 16 }
  0x57   : > { %1805 = vrot.lane.b32.xlu0 %v1711_v42, %s4630_s28  ;;  %v5155_v42 = vld [vmem:[%s4677_s25 + $0x2c] sm:$0xf]  ;;  %v2124_v11 = vshrl.u32 %v2006_v17, 16  ;;  %v948_v59 = vrot.slane %v826_v39, 5  ;;  %v7511_v12 = vrot.slane %v5174_v51, 5  ;;  %v5192_v41 = vrot.slane %v2097_v52, 4 }
  0x58   : > { %v5190_v28 = vrot.slane %v503_v36, 4  ;;  %304 = vst.msk [vmem:[#allocation2 + $0x208] sm:$0xf] %vm277_vm5, %v271_v15  ;;  %v493_v17 = vor.u32 %v492_v44, %v5048_v4  ;;  %v947_v29 = vrot.slane %v7567_v14, 4  ;;  %v516_v36 = vshll.u32 %v327_v54, 16 }
  0x59   : > { %v950_v55 = vrot.slane %v948_v59, 4  ;;  %v520_v52 = vshrl.u32 %v327_v54, 16  ;;  %v2117_v15 = vor.u32 %v2116_v20, %v5125_v48  ;;  %v5206_v44 = vrot.slane %v2120_v1, 5  ;;  %v5213_v14 = vld [vmem:[%s4677_s25 + $0x48] sm:$0xf] }
  0x5a   : > { %688 = vrot.lane.b32.xlu1 %v449_v60, %s4630_s28  ;;  %v5178_v60 = vld [vmem:[%s4677_s25 + $0x30] sm:$0xf]  ;;  %v2126_v39 = vrot.slane %v2124_v11, 4  ;;  %v949_v20 = vsel %vm5027_vm6, %v947_v29, %v948_v59  ;;  %v802_v54 = vld [vmem:[%s4677_s25 + $0xc] sm:$0xf]  ;;  %v5221_v1 = vrot.slane %v516_v36, 5 }
  0x5b   : > { %2354 = vrot.lane.b32.xlu0 %v2043_v31, %s4630_s28  ;;  %v2073_v31 = vsel %vm4711_vm2, %v4975_v8, %v4951_v43  ;;  %v1037_v43 = vld [vmem:[%s4677_s25 + $0x28] sm:$0xf]  ;;  %v2130_v8 = vshll.u32 %v5170_v9, 16  ;;  %v952_v7 = vsel %vm5027_vm6, %v950_v55, %v7511_v12  ;;  %v522_v11 = vrot.slane %v520_v52, 4  ;;  %1023 = vst.msk [vmem:[#allocation2 + $0x20c] sm:$0xf] %vm277_vm5, %v949_v20 }
  0x5c   : > { %1024 = vst.msk [vmem:[#allocation2 + $0x220] sm:$0xf] %vm277_vm5, %v952_v7  ;;  %7568 = vst [vmem:[#allocation5_spill] sm:$0xff] %v5221_v1  ;;  %v5225_v55 = vld [vmem:[%s4677_s25 + $0x10] sm:$0xf]  ;;  %v7569_v29 = vrot.slane %v5155_v42, 5  ;;  %v2127_v12 = vor.u32 %v2126_v39, %v5206_v44 }
  0x5d   : > { %v876_v7 = vrot.slane %v802_v54, 5  ;;  %v5236_v52 = vrot.slane %v2130_v8, 5  ;;  %v5239_v20 = vrot.slane %v2117_v15, 4  ;;  %v7573_v54 = vrot.slane %v4901_v3, 5  ;;  %v2008_v36 = vld [vmem:[%s4677_s25 + $0x3c] sm:$0xf] }
  0x5e   : > { %1111 = vrot.lane.b32.xlu1 %v1038_v30, %s4630_s28  ;;  %v248_v30 = vld [vmem:[%s4677_s25 + $0xc] sm:$0xf]  ;;  %v5232_v59 = vrot.slane %v7569_v29, 4  ;;  %v526_v15 = vshll.u32 %v5213_v14, 16  ;;  %v523_v18 = vor.u32 %v522_v11, %v5221_v1  ;;  %v5261_v3 = vld [vmem:[%s4677_s25 + $0x38] sm:$0xf] }
  0x5f   : > { %686 = vrot.lane.b32.xlu0 %v439_v45, %s4630_s28  ;;  %281 = vst.msk [vmem:[#allocation2 + $0x3c] sm:$0xf] %vm277_vm5, %v248_v30  ;;  %v512_v45 = vrot.slane %v510_v38, 4  ;;  %v5228_v30 = vrot.slane %v493_v17, 4  ;;  %7570 = vst [vmem:[#allocation6_spill] sm:$0xff] %v5239_v20  ;;  %v7572_v17 = vrot.slane %v5073_v24, 5  ;;  %v1717_v8 = vsel %vm5027_vm6, %v4962_v63, %v7573_v54 }
  0x60   : > { %v878_v38 = vrot.slane %v876_v7, 4  ;;  %v530_v24 = vshrl.u32 %v5213_v14, 16  ;;  %v7574_v39 = vrot.slane %v5225_v55, 5  ;;  %v828_v54 = vld [vmem:[%s4677_s25 + $0x74] sm:$0xf] }
  0x61   : > { %v875_v29 = vrot.slane %v7572_v17, 4  ;;  %v2144_v17 = vshrl.u32 %v2008_v36, 16  ;;  %v250_v19 = vld [vmem:[%s4677_s25 + $0x14] sm:$0xf] }
  0x62   : > { %1811 = vrot.lane.b32.xlu1 %v1720_v62, %s4630_s28  ;;  %v5243_v62 = vld [vmem:[%s4677_s25 + $0x34] sm:$0xf]  ;;  %v880_v11 = vsel %vm5027_vm6, %v878_v38, %v7574_v39  ;;  %v459_v38 = vsel %vm4711_vm2, %v5005_v32, %v4929_v33  ;;  %v329_v33 = vld [vmem:[%s4677_s25 + $0x4c] sm:$0xf]  ;;  %283 = vst.msk [vmem:[#allocation2 + $0x64] sm:$0xf] %vm277_vm5, %v250_v19 }
  0x63   : > { %7571 = vst [vmem:[#allocation7_spill] sm:$0xff] %v5243_v62  ;;  %1109 = vrot.lane.b32.xlu0 %v1037_v43, %s4630_s28  ;;  %v513_v43 = vor.u32 %v512_v45, %v5141_v49  ;;  %v877_v63 = vsel %vm5027_vm6, %v875_v29, %v876_v7  ;;  %v2140_v45 = vshll.u32 %v2008_v36, 16  ;;  %v469_v7 = vsel %vm4711_vm2, %v4997_v25, %v4977_v10  ;;  %v5288_v36 = vld [vmem:[%s4677_s25 + $0x40] sm:$0xf]  ;;  %v5291_v29 = vld [vmem:[%s4677_s25 + $0x78] sm:$0xf] }
  0x64   : > { %999 = vst.msk [vmem:[#allocation2 + $0x2c] sm:$0xf] %vm277_vm5, %v877_v63  ;;  %1000 = vst.msk [vmem:[#allocation2 + $0x40] sm:$0xf] %vm277_vm5, %v880_v11  ;;  %v5295_v10 = vrot.slane %v2127_v12, 4  ;;  %v5297_v25 = vrot.slane %v526_v15, 5 }
  0x65   : > { %v1040_v32 = vld [vmem:[%s4677_s25 + $0x34] sm:$0xf]  ;;  %v954_v63 = vrot.slane %v828_v54, 5  ;;  %v5306_v11 = vld [vmem:[%s4677_s25 + $0x50] sm:$0xf]  ;;  %v536_v14 = vshll.u32 %v329_v33, 16 }
  0x66   : > { %2360 = vrot.lane.b32.xlu1 %v2073_v31, %s4630_s28  ;;  %v2063_v31 = vsel %vm4711_vm2, %v4985_v61, %v4915_v16  ;;  %v5299_v16 = vrot.slane %v2140_v45, 5  ;;  %v2146_v61 = vrot.slane %v2144_v17, 4  ;;  %v5309_v12 = vrot.slane %v523_v18, 4  ;;  %v804_v18 = vld [vmem:[%s4677_s25 + $0x14] sm:$0xf] }
  0x67   : > { %1809 = vrot.lane.b32.xlu0 %v1717_v8, %s4630_s28  ;;  %v540_v8 = vshrl.u32 %v329_v33, 16  ;;  %v5311_v15 = vrot.slane %v513_v43, 4  ;;  %v2150_v17 = vshll.u32 %v5288_v36, 16  ;;  %v7576_v54 = vrot.slane %v5243_v62, 5 }
  0x68   : > { %7575 = vst [vmem:[#allocation8_spill] sm:$0xff] %v5299_v16  ;;  %v956_v39 = vrot.slane %v954_v63, 4  ;;  %v5320_v20 = vrot.slane %v536_v14, 5  ;;  %v2147_v43 = vor.u32 %v2146_v61, %v5299_v16  ;;  %v546_v45 = vshll.u32 %v5306_v11, 16 }
  0x69   : > { %v5318_v1 = vrot.slane %v7576_v54, 4  ;;  %v542_v33 = vrot.slane %v540_v8, 4  ;;  %v7578_v62 = vrot.slane %v5174_v51, 5  ;;  %v7579_v14 = vrot.slane %v5291_v29, 5 }
  0x6a   : > { %692 = vrot.lane.b32.xlu1 %v469_v7, %s4630_s28  ;;  %v7580_v19 = vshrl.u32 %v5170_v9, 16  ;;  %v532_v61 = vrot.slane %v530_v24, 4  ;;  %v882_v16 = vrot.slane %v804_v18, 5  ;;  %v249_v7 = vld [vmem:[%s4677_s25 + $0x10] sm:$0xf]  ;;  %v5341_v51 = vrot.slane %v2150_v17, 5 }
  0x6b   : > { %7577 = vst [vmem:[#allocation9_spill] sm:$0xff] %v5318_v1  ;;  %2358 = vrot.lane.b32.xlu0 %v2063_v31, %s4630_s28  ;;  %v953_v54 = vrot.slane %v7578_v62, 4  ;;  %v5331_v1 = vld [vmem:[%s4677_s25 + $0x18] sm:$0xf]  ;;  %v958_v8 = vsel %vm5027_vm6, %v956_v39, %v7579_v14  ;;  %v543_v62 = vor.u32 %v542_v33, %v5320_v20  ;;  %282 = vst.msk [vmem:[#allocation2 + $0x50] sm:$0xf] %vm277_vm5, %v249_v7 }
  0x6c   : > { %v2136_v31 = vrot.slane %v7580_v19, 4  ;;  %1026 = vst.msk [vmem:[#allocation2 + $0x248] sm:$0xf] %vm277_vm5, %v958_v8  ;;  %v7517_v9 = vrot.slane %v5331_v1, 5  ;;  %v7581_v24 = vrot.slane %v4946_v50, 5  ;;  %v884_v33 = vrot.slane %v882_v16, 4 }
  0x6d   : > { %v955_v39 = vsel %vm5027_vm6, %v953_v54, %v954_v63  ;;  %v5360_v63 = vld [vmem:[%s4677_s25 + $0x3c] sm:$0xf]  ;;  %v1039_v7 = vld [vmem:[%s4677_s25 + $0x30] sm:$0xf]  ;;  %v5365_v50 = vrot.slane %v2147_v43, 4  ;;  %v5367_v14 = vrot.slane %v546_v45, 5 }
  0x6e   : > { %1115 = vrot.lane.b32.xlu1 %v1040_v32, %s4630_s28  ;;  %v1726_v18 = vsel %vm5027_vm6, %v5001_v27, %v7581_v24  ;;  %v7582_v32 = vrot.slane %v5178_v60, 5  ;;  %1025 = vst.msk [vmem:[#allocation2 + $0x234] sm:$0xf] %vm277_vm5, %v955_v39  ;;  %7583 = vst [vmem:[#allocation10_spill] sm:$0xff] %v5360_v63  ;;  %v276_v54 = vld [vmem:[%s4677_s25 + $0x7c] sm:$0xf]  ;;  %v2137_v39 = vor.u32 %v2136_v31, %v5236_v52 }
  0x6f   : > { %690 = vrot.lane.b32.xlu0 %v459_v38, %s4630_s28  ;;  %v550_v27 = vshrl.u32 %v5306_v11, 16  ;;  %309 = vst.msk [vmem:[#allocation2 + $0x26c] sm:$0xf] %vm277_vm5, %v276_v54  ;;  %v7584_v8 = vrot.slane %v5225_v55, 5  ;;  %v533_v38 = vor.u32 %v532_v61, %v5297_v25  ;;  %v886_v45 = vsel %vm5027_vm6, %v884_v33, %v7517_v9  ;;  %v5380_v43 = vld [vmem:[%s4677_s25 + $0x40] sm:$0xf] }
  0x70   : > { %v5356_v17 = vrot.slane %v7582_v32, 4  ;;  %v2010_v11 = vld [vmem:[%s4677_s25 + $0x44] sm:$0xf]  ;;  %v5384_v24 = vrot.slane %v543_v62, 4  ;;  %1002 = vst.msk [vmem:[#allocation2 + $0x68] sm:$0xf] %vm277_vm5, %v886_v45  ;;  %v2093_v32 = vsel %vm4711_vm2, %v5038_v56, %v5010_v58  ;;  %v489_v56 = vsel %vm4711_vm2, %v5123_v37, %v5048_v4 }
  0x71   : > { %v881_v19 = vrot.slane %v7584_v8, 4  ;;  %v7518_v55 = vrot.slane %v5360_v63, 5  ;;  %v830_v61 = vld [vmem:[%s4677_s25 + $0x7c] sm:$0xf]  ;;  %v5397_v33 = vld [vmem:[%s4677_s25 + $0x48] sm:$0xf] }
  0x72   : > { %1815 = vrot.lane.b32.xlu1 %v1726_v18, %s4630_s28  ;;  %v831_v62 = vld [vmem:[%s4677_s25 + $0x80] sm:$0x1]  ;;  %v275_v18 = vld [vmem:[%s4677_s25 + $0x78] sm:$0xf]  ;;  %v2160_v54 = vshll.u32 %v2010_v11, 16  ;;  %v2164_v8 = vshrl.u32 %v2010_v11, 16 }
  0x73   : > { %v883_v31 = vsel %vm5027_vm6, %v881_v19, %v882_v16  ;;  %1113 = vrot.lane.b32.xlu0 %v1039_v7, %s4630_s28  ;;  %v960_v45 = vrot.slane %v830_v61, 5  ;;  %v963_v16 = vrot.slane %v831_v62, 5  ;;  %308 = vst.msk [vmem:[#allocation2 + $0x258] sm:$0xf] %vm277_vm5, %v275_v18  ;;  %v7585_v19 = vrot.slane %v4936_v40, 5 }
  0x74   : > { %1001 = vst.msk [vmem:[#allocation2 + $0x54] sm:$0xf] %vm277_vm5, %v883_v31  ;;  %v5412_v31 = vrot.slane %v2137_v39, 4  ;;  %v5414_v7 = vrot.slane %v533_v38, 4  ;;  %v331_v11 = vld [vmem:[%s4677_s25 + $0x54] sm:$0xf] }
  0x75   : > { %v1723_v58 = vsel %vm5027_vm6, %v5020_v57, %v7585_v19  ;;  %v962_v40 = vrot.slane %v960_v45, 4  ;;  %v556_v62 = vshll.u32 %v331_v11, 16  ;;  %v560_v18 = vshrl.u32 %v331_v11, 16  ;;  %v252_v38 = vld [vmem:[%s4677_s25 + $0x1c] sm:$0xf] }
  0x76   : > { %2364 = vrot.lane.b32.xlu1 %v2093_v32, %s4630_s28  ;;  %v5421_v57 = vrot.slane %v7518_v55, 4  ;;  %v2170_v4 = vshll.u32 %v5397_v33, 16  ;;  %v7586_v37 = vrot.slane %v5261_v3, 5  ;;  %v7587_v32 = vrot.slane %v5291_v29, 5  ;;  %285 = vst.msk [vmem:[#allocation2 + $0x8c] sm:$0xf] %vm277_vm5, %v252_v38 }
  0x77   : > { %1813 = vrot.lane.b32.xlu0 %v1723_v58, %s4630_s28  ;;  %v5432_v61 = vrot.slane %v2160_v54, 5  ;;  %v2166_v9 = vrot.slane %v2164_v8, 4  ;;  %v964_v11 = vsel %vm5027_vm6, %v962_v40, %v963_v16  ;;  %v7588_v55 = vshrl.u32 %v5288_v36, 16  ;;  %v1042_v58 = vld [vmem:[%s4677_s25 + $0x3c] sm:$0xf] }
  0x78   : > { %v5426_v39 = vrot.slane %v7586_v37, 4  ;;  %v959_v19 = vrot.slane %v7587_v32, 4  ;;  %v2083_v29 = vsel %vm4711_vm2, %v5096_v23, %v4973_v6  ;;  %1028 = vst.msk [vmem:[#allocation2 + $0x270] sm:$0xf] %vm277_vm5, %v964_v11  ;;  %v5446_v54 = vld [vmem:[%s4677_s25 + $0x58] sm:$0xf] }
  0x79   : > { %v2156_v63 = vrot.slane %v7588_v55, 4  ;;  %v5451_v36 = vrot.slane %v556_v62, 5  ;;  %v562_v55 = vrot.slane %v560_v18, 4  ;;  %v552_v16 = vrot.slane %v550_v27, 4  ;;  %v806_v23 = vld [vmem:[%s4677_s25 + $0x1c] sm:$0xf] }
  0x7a   : > { %v961_v8 = vsel %vm5027_vm6, %v959_v19, %v960_v45  ;;  %696 = vrot.lane.b32.xlu1 %v489_v56, %s4630_s28  ;;  %v7589_v40 = vrot.slane %v5331_v1, 5  ;;  %v5458_v37 = vld [vmem:[%s4677_s25 + $0x20] sm:$0xf]  ;;  %v251_v38 = vld [vmem:[%s4677_s25 + $0x18] sm:$0xf]  ;;  %v2174_v45 = vshrl.u32 %v5397_v33, 16  ;;  %v479_v27 = vsel %vm4711_vm2, %v5110_v47, %v5040_v21 }
  0x7b   : > { %1027 = vst.msk [vmem:[#allocation2 + $0x25c] sm:$0xf] %vm277_vm5, %v961_v8  ;;  %2362 = vrot.lane.b32.xlu0 %v2083_v29, %s4630_s28  ;;  %v888_v56 = vrot.slane %v806_v23, 5  ;;  %v7520_v62 = vrot.slane %v5458_v37, 5  ;;  %284 = vst.msk [vmem:[#allocation2 + $0x78] sm:$0xf] %vm277_vm5, %v251_v38  ;;  %v2167_v32 = vor.u32 %v2166_v9, %v5432_v61  ;;  %v563_v21 = vor.u32 %v562_v55, %v5451_v36 }
  0x7c   : > { %v887_v6 = vrot.slane %v7589_v40, 4  ;;  %v5468_v1 = vld [vmem:[%s7500_s1 + $0x118] sm:$0xff]   ;;  %v7590_v18 = vrot.slane %v5032_v13, 5  ;;  %v5481_v19 = vrot.slane %v2170_v4, 5  ;;  %v566_v11 = vshll.u32 %v5446_v54, 16 }
  0x7d   : > { %v890_v29 = vrot.slane %v888_v56, 4  ;;  %4437 = vmatprep.subr.bf16.mxu0 %v5468_v1  ;;  %v1041_v13 = vld [vmem:[%s4677_s25 + $0x38] sm:$0xf]  ;;  %v2157_v47 = vor.u32 %v2156_v63, %v5341_v51  ;;  %v553_v9 = vor.u32 %v552_v16, %v5367_v14  ;;  %v5493_v4 = vld [vmem:[%s4677_s25 + $0x44] sm:$0xf]  ;;  %v5505_v63 = vrot.slane %v2167_v32, 4 }
  0x7e   : > { %v1732_v33 = vsel %vm5027_vm6, %v5090_v2, %v7590_v18  ;;  %1119 = vrot.lane.b32.xlu1 %v1042_v58, %s4630_s28  ;;  %v889_v8 = vsel %vm5027_vm6, %v887_v6, %v888_v56  ;;  %v1222_v58 = vld [vmem:[%s4677_s25 + $0xc] sm:$0xf]  ;;  %v5503_v55 = vld [vmem:[%s4677_s25 + $0x10] sm:$0xf]  ;;  %v5509_v16 = vld [vmem:[%s4677_s25 + $0x48] sm:$0xf]  ;;  %v2113_v56 = vsel %vm4711_vm2, %v5136_v35, %v5125_v48 }
  0x7f   : > { %1003 = vst.msk [vmem:[#allocation2 + $0x7c] sm:$0xf] %vm277_vm5, %v889_v8  ;;  %694 = vrot.lane.b32.xlu0 %v479_v27, %s4630_s28  ;;  %v892_v40 = vsel %vm5027_vm6, %v890_v29, %v7520_v62  ;;  %v1264_v6 = vshll.u32 %v1222_v58, 16  ;;  %v1268_v23 = vshrl.u32 %v1222_v58, 16  ;;  %v1274_v38 = vshll.u32 %v5503_v55, 16 }
  0x80   : > { %1004 = vst.msk [vmem:[#allocation2 + $0x90] sm:$0xf] %vm277_vm5, %v892_v40  ;;  %v5519_v29 = vrot.slane %v563_v21, 4  ;;  %v5521_v32 = vrot.slane %v566_v11, 5  ;;  %v5523_v8 = vrot.slane %v2157_v47, 4  ;;  %v5525_v58 = vrot.slane %v553_v9, 4 }
  0x81   : > { %v5517_v27 = vrot.slane %v1264_v6, 5  ;;  %v1270_v18 = vrot.slane %v1268_v23, 4  ;;  %v2012_v40 = vld [vmem:[%s4677_s25 + $0x4c] sm:$0xf]  ;;  %v5531_v6 = vrot.slane %v1274_v38, 5  ;;  %v7592_v47 = vrot.slane %v5014_v46, 5 }
  0x82   : > { %1819 = vrot.lane.b32.xlu1 %v1732_v33, %s4630_s28  ;;  %7591 = vst [vmem:[#allocation11_spill] sm:$0xff] %v5525_v58  ;;  %v2180_v21 = vshll.u32 %v2012_v40, 16  ;;  %v1934_v11 = vld [vmem:[%s4677_s25 + $0x14] sm:$0xf]  ;;  %v2184_v23 = vshrl.u32 %v2012_v40, 16  ;;  %v509_v46 = vsel %vm4711_vm2, %v5190_v28, %v5141_v49 }
  0x83   : > { %1117 = vrot.lane.b32.xlu0 %v1041_v13, %s4630_s28  ;;  %v1271_v35 = vor.u32 %v1270_v18, %v5517_v27  ;;  %v1729_v9 = vsel %vm5027_vm6, %v5129_v26, %v7592_v47  ;;  %1966 = vst.msk [vmem:[#allocation2 + $0x20] sm:$0xf] %vm277_vm5, %v1934_v11  ;;  %v1221_v38 = vld [vmem:[%s4677_s25 + $0x8] sm:$0xf]  ;;  %v2013_v26 = vld [vmem:[%s4677_s25 + $0x50] sm:$0xf] }
  0x84   : > { %v1142_v33 = vpop.permute.xlu1 %1141  ;;  %v2194_v47 = vshrl.u32 %v2013_v26, 16  ;;  %v1255_v40 = vshrl.u32 %v1221_v38, 16  ;;  %v1258_v13 = vshll.u32 %v1221_v38, 16  ;;  %v333_v28 = vld [vmem:[%s4677_s25 + $0x5c] sm:$0xf] }
  0x85   : > { %v1094_v62 = vpop.permute.xlu0 %1093  ;;  %1213 = vst.msk [vmem:[#allocation2 + $0x1e4] sm:$0xf] %vm766_vm7, %v1142_v33  ;;  %v1272_v18 = vrot.slane %v1271_v35, 4  ;;  %v2176_v33 = vrot.slane %v2174_v45, 4  ;;  %v254_v45 = vld [vmem:[%s4677_s25 + $0x24] sm:$0xf] }
  0x86   : > { %1189 = vst.msk [vmem:[#allocation2 + $0x4] sm:$0xf] %vm766_vm7, %v1094_v62  ;;  %2368 = vrot.lane.b32.xlu1 %v2113_v56, %s4630_s28  ;;  %v5550_v62 = vrot.slane %v2180_v21, 5  ;;  %v2103_v56 = vsel %vm4711_vm2, %v5192_v41, %v5062_v0  ;;  %v1044_v35 = vld [vmem:[%s4677_s25 + $0x44] sm:$0xf]  ;;  %v2186_v21 = vrot.slane %v2184_v23, 4 }
  0x87   : > { %1817 = vrot.lane.b32.xlu0 %v1729_v9, %s4630_s28  ;;  %v1277_v49 = vsel %vm4711_vm2, %v1272_v18, %v5531_v6  ;;  %v1257_v38 = vrot.slane %v1255_v40, 4  ;;  %v1260_v9 = vrot.slane %v1258_v13, 5  ;;  %v576_v48 = vshll.u32 %v333_v28, 16  ;;  %287 = vst.msk [vmem:[#allocation2 + $0xb4] sm:$0xf] %vm277_vm5, %v254_v45 }
  0x88   : > { %v1144_v11 = vpop.permute.xlu1 %1143  ;;  %1611 = vst.msk [vmem:[#allocation2 + $0x1c] sm:$0xf] %vm277_vm5, %v1277_v49  ;;  %v1933_v2 = vld [vmem:[%s4677_s25 + $0x10] sm:$0xf]  ;;  %v580_v0 = vshrl.u32 %v333_v28, 16  ;;  %v7593_v41 = vshrl.u32 %v5446_v54, 16  ;;  %v499_v54 = vsel %vm4711_vm2, %v5228_v30, %v5114_v5 }
  0x89   : > { %1214 = vst.msk [vmem:[#allocation2 + $0x1f8] sm:$0xf] %vm766_vm7, %v1144_v11  ;;  %v1278_v11 = vshrl.u32 %v5503_v55, 16  ;;  %v2190_v23 = vshll.u32 %v2013_v26, 16  ;;  %v1261_v40 = vor.u32 %v1260_v9, %v1257_v38  ;;  %v5573_v49 = vrot.slane %v576_v48, 5 }
  0x8a   : > { %700 = vrot.lane.b32.xlu1 %v509_v46, %s4630_s28  ;;  %1965 = vst.msk [vmem:[#allocation2 + $0xc] sm:$0xf] %vm277_vm5, %v1933_v2  ;;  %v572_v18 = vrot.slane %v7593_v41, 4  ;;  %v582_v45 = vrot.slane %v580_v0, 4  ;;  %v2177_v46 = vor.u32 %v2176_v33, %v5481_v19  ;;  %v808_v28 = vld [vmem:[%s4677_s25 + $0x24] sm:$0xf]  ;;  %v2187_v55 = vor.u32 %v2186_v21, %v5550_v62 }
  0x8b   : > { %2366 = vrot.lane.b32.xlu0 %v2103_v56, %s4630_s28  ;;  %v7594_v2 = vrot.slane %v5458_v37, 5  ;;  %v1262_v26 = vrot.slane %v1261_v40, 4  ;;  %v5586_v56 = vld [vmem:[%s4677_s25 + $0x28] sm:$0xf]  ;;  %v894_v48 = vrot.slane %v808_v28, 5  ;;  %v7595_v37 = vrot.slane %v5178_v60, 5 }
  0x8c   : > { %v1096_v13 = vpop.permute.xlu1 %1095  ;;  %v253_v38 = vld [vmem:[%s4677_s25 + $0x20] sm:$0xf]  ;;  %v2196_v0 = vrot.slane %v2194_v47, 4  ;;  %v573_v5 = vor.u32 %v572_v18, %v5521_v32  ;;  %v7523_v30 = vrot.slane %v5586_v56, 5  ;;  %v7596_v41 = vrot.slane %v5493_v4, 5 }
  0x8d   : > { %v893_v58 = vrot.slane %v7594_v2, 4  ;;  %1190 = vst.msk [vmem:[#allocation2 + $0x18] sm:$0xf] %vm766_vm7, %v1096_v13  ;;  %v719_v9 = vpop.permute.xlu0 %718  ;;  %v1738_v33 = vsel %vm5027_vm6, %v5232_v59, %v7595_v37  ;;  %v896_v60 = vrot.slane %v894_v48, 4  ;;  %v1280_v59 = vrot.slane %v1278_v11, 4 }
  0x8e   : > { %1123 = vrot.lane.b32.xlu1 %v1044_v35, %s4630_s28  ;;  %286 = vst.msk [vmem:[#allocation2 + $0xa0] sm:$0xf] %vm277_vm5, %v253_v38  ;;  %v1267_v35 = vsel %vm4711_vm2, %v1262_v26, %v5517_v27  ;;  %v5607_v18 = vrot.slane %v7596_v41, 4  ;;  %v5609_v40 = vrot.slane %v2190_v23, 5  ;;  %v7597_v13 = vrot.slane %v5380_v43, 5 }
  0x8f   : > { %791 = vst.msk [vmem:[#allocation2 + $0x1e0] sm:$0xf] %vm766_vm7, %v719_v9  ;;  %v895_v21 = vsel %vm5027_vm6, %v893_v58, %v894_v48  ;;  %698 = vrot.lane.b32.xlu0 %v499_v54, %s4630_s28  ;;  %v5616_v27 = vrot.slane %v2177_v46, 4  ;;  %v5619_v58 = vld [vmem:[%s4677_s25 + $0x4c] sm:$0xf]  ;;  %v5624_v2 = vrot.slane %v2187_v55, 4  ;;  %v583_v23 = vor.u32 %v582_v45, %v5573_v49 }
  0x90   : > { %v673_v47 = vpop.permute.xlu1 %672  ;;  %v5613_v28 = vrot.slane %v7597_v13, 4  ;;  %1610 = vst.msk [vmem:[#allocation2 + $0x8] sm:$0xf] %vm277_vm5, %v1267_v35  ;;  %7598 = vst [vmem:[#allocation12_spill] sm:$0xff] %v5619_v58  ;;  %v1043_v11 = vld [vmem:[%s4677_s25 + $0x40] sm:$0xf]  ;;  %v898_v54 = vsel %vm5027_vm6, %v896_v60, %v7523_v30  ;;  %v1281_v46 = vor.u32 %v1280_v59, %v5531_v6  ;;  %v2133_v38 = vsel %vm4711_vm2, %v5295_v10, %v5236_v52 }
  0x91   : > { %1005 = vst.msk [vmem:[#allocation2 + $0xa4] sm:$0xf] %vm277_vm5, %v895_v21  ;;  %v1224_v26 = vld [vmem:[%s4677_s25 + $0x14] sm:$0xf]  ;;  %v721_v48 = vpop.permute.xlu0 %720  ;;  %v2197_v55 = vor.u32 %v2196_v0, %v5609_v40  ;;  %1006 = vst.msk [vmem:[#allocation2 + $0xb8] sm:$0xf] %vm277_vm5, %v898_v54 }
  0x92   : > { %768 = vst.msk [vmem:[#allocation2 + $0x14] sm:$0xf] %vm766_vm7, %v673_v47  ;;  %1823 = vrot.lane.b32.xlu1 %v1738_v33, %s4630_s28  ;;  %v5641_v45 = vld [vmem:[%s4677_s25 + $0x18] sm:$0xf]  ;;  %v1284_v9 = vshll.u32 %v1224_v26, 16  ;;  %v1288_v37 = vshrl.u32 %v1224_v26, 16 }
  0x93   : > { %792 = vst.msk [vmem:[#allocation2 + $0x1f4] sm:$0xf] %vm766_vm7, %v721_v48  ;;  %v5644_v6 = vrot.slane %v573_v5, 4  ;;  %v7522_v33 = vrot.slane %v5619_v58, 5  ;;  %v1294_v35 = vshll.u32 %v5641_v45, 16  ;;  %v7599_v52 = vrot.slane %v5509_v16, 5  ;;  %1121 = vrot.lane.b32.xlu0 %v1043_v11, %s4630_s28 }
  0x94   : > { %v725_v0 = vpop.permute.xlu1 %724  ;;  %v1286_v60 = vrot.slane %v1284_v9, 5  ;;  %v1290_v21 = vrot.slane %v1288_v37, 4  ;;  %v7601_v5 = vrot.slane %v5155_v42, 5  ;;  %v5659_v47 = vrot.slane %v583_v23, 4  ;;  %v5662_v41 = vld [vmem:[%s4677_s25 + $0x50] sm:$0xf] }
  0x95   : > { %v5650_v10 = vrot.slane %v7599_v52, 4  ;;  %794 = vst.msk [vmem:[#allocation2 + $0x21c] sm:$0xf] %vm766_vm7, %v725_v0  ;;  %v2014_v13 = vld [vmem:[%s4677_s25 + $0x54] sm:$0xf]  ;;  %v1282_v54 = vrot.slane %v1281_v46, 4  ;;  %v671_v26 = vpop.permute.xlu0 %670  ;;  %v529_v11 = vsel %vm4711_vm2, %v5309_v12, %v5297_v25 }
  0x96   : > { %v1735_v59 = vsel %vm5027_vm6, %v5162_v22, %v7601_v5  ;;  %2372 = vrot.lane.b32.xlu1 %v2133_v38, %s4630_s28  ;;  %v1291_v48 = vor.u32 %v1290_v21, %v1286_v60  ;;  %v5670_v42 = vrot.slane %v1294_v35, 5  ;;  %v5673_v9 = vld [vmem:[%s4677_s25 + $0x58] sm:$0xf]  ;;  %v1936_v22 = vld [vmem:[%s4677_s25 + $0x1c] sm:$0xf]  ;;  %v2200_v23 = vshll.u32 %v2014_v13, 16 }
  0x97   : > { %7600 = vst [vmem:[#allocation13_spill] sm:$0xff] %v5650_v10  ;;  %767 = vst.msk [vmem:[#allocation2] sm:$0xf] %vm766_vm7, %v671_v26  ;;  %v2204_v46 = vshrl.u32 %v2014_v13, 16  ;;  %v1287_v38 = vsel %vm4711_vm2, %v1282_v54, %v1286_v60  ;;  %v5680_v37 = vrot.slane %v2197_v55, 4  ;;  %1821 = vrot.lane.b32.xlu0 %v1735_v59, %s4630_s28  ;;  %v4532_v12 = vld [vmem:[%s7500_s1 + $0xb8] sm:$0xff]  }
  0x98   : > { %1968 = vst.msk [vmem:[#allocation2 + $0x48] sm:$0xf] %vm277_vm5, %v1936_v22  ;;  %v1148_v25 = vpop.permute.xlu1 %1147  ;;  %v5688_v35 = vrot.slane %v7522_v33, 4  ;;  %v7524_v52 = vrot.slane %v5662_v41, 5  ;;  %v1292_v0 = vrot.slane %v1291_v48, 4  ;;  %v7605_v55 = vld [vmem:[#allocation6_spill] sm:$0xff] }
  0x99   : > { %7602 = vst [vmem:[#allocation14_spill] sm:$0xff] %v5680_v37  ;;  %1612 = vst.msk [vmem:[#allocation2 + $0x30] sm:$0xf] %vm277_vm5, %v1287_v38  ;;  %v5693_v60 = vld [vmem:[%s4677_s25 + $0x54] sm:$0xf]  ;;  %v2123_v21 = vsel %vm4711_vm2, %v7605_v55, %v5206_v44  ;;  %v2210_v54 = vshll.u32 %v5673_v9, 16  ;;  %v723_v22 = vpop.permute.xlu0 %722 }
  0x9a   : > { %7603 = vst [vmem:[#allocation15_spill] sm:$0xff] %v5688_v35  ;;  %7604 = vst [vmem:[#allocation16_spill] sm:$0xff] %v5693_v60  ;;  %v1046_v5 = vld [vmem:[%s4677_s25 + $0x4c] sm:$0xf]  ;;  %v4533_v59 = vld [vmem:[%s7500_s1 + $0xf0] sm:$0xff]   ;;  %704 = vrot.lane.b32.xlu1 %v529_v11, %s4630_s28  ;;  %v1297_v44 = vsel %vm4711_vm2, %v1292_v0, %v5670_v42  ;;  %v2214_v55 = vshrl.u32 %v5673_v9, 16 }
  0x9b   : > { %1216 = vst.msk [vmem:[#allocation2 + $0x220] sm:$0xf] %vm766_vm7, %v1148_v25  ;;  %v256_v26 = vld [vmem:[%s4677_s25 + $0x2c] sm:$0xf]  ;;  %v1935_v48 = vld [vmem:[%s4677_s25 + $0x18] sm:$0xf]  ;;  %2370 = vrot.lane.b32.xlu0 %v2123_v21, %s4630_s28 }
  0x9c   : > { %v4519_v38 = vld [vmem:[#allocation2 + $0x1e0] ss:$20 sps:$4 sm:$0xff]   ;;  %v4521_v25 = vld [vmem:[#allocation2 + $0x1e4] ss:$20 sps:$4 sm:$0xff]   ;;  %289 = vst.msk [vmem:[#allocation2 + $0xdc] sm:$0xf] %vm277_vm5, %v256_v26  ;;  %v677_v26 = vpop.permute.xlu1 %676 }
  0x9d   : > { %1967 = vst.msk [vmem:[#allocation2 + $0x34] sm:$0xf] %vm277_vm5, %v1935_v48  ;;  %1613 = vst.msk [vmem:[#allocation2 + $0x44] sm:$0xf] %vm277_vm5, %v1297_v44  ;;  %v5717_v33 = vrot.slane %v2200_v23, 5  ;;  %v5719_v11 = vrot.slane %v2204_v46, 4  ;;  %3604 = vmatprep.mubr.bf16.mxu1 %v4521_v25  ;;  %v1146_v58 = vpop.permute.xlu0 %1145 }
  0x9e   : > { %793 = vst.msk [vmem:[#allocation2 + $0x208] sm:$0xf] %vm766_vm7, %v723_v22  ;;  %v5722_v13 = vld [vmem:[%s4677_s25 + $0x58] sm:$0xf]  ;;  %v2016_v30 = vld [vmem:[%s4677_s25 + $0x5c] sm:$0xf]  ;;  %3605 = vmatmul.mubr.bf16.vlgmr.msra.gmra.mxu1 %v4519_v38  ;;  %1127 = vrot.lane.b32.xlu1 %v1046_v5, %s4630_s28 }
  0x9f   : > { %7606 = vst [vmem:[#allocation6_spill] sm:$0xff] %v5717_v33  ;;  %v5728_v9 = vrot.slane %v7524_v52, 4  ;;  %v4534_v23 = vld [vmem:[%s7500_s1 + $0xb0] sm:$0xff]   ;;  %v5735_v46 = vld [vmem:[%s4677_s25 + $0x60] sm:$0xf]  ;;  %v2220_v48 = vshll.u32 %v2016_v30, 16  ;;  %4306 = vmatpush3.bf16.msra.mxu1 %v4532_v12 }
  0xa0   : > { %v810_v22 = vld [vmem:[%s4677_s25 + $0x2c] sm:$0xf]  ;;  %v7608_v44 = vrot.slane %v5586_v56, 5  ;;  %770 = vst.msk [vmem:[#allocation2 + $0x3c] sm:$0xf] %vm766_vm7, %v677_v26  ;;  %v7609_v52 = vld [vmem:[#allocation5_spill] sm:$0xff]  ;;  %4307 = vmatprep.subr.bf16.mxu1 %v4533_v59 }
  0xa1   : > { %7607 = vst [vmem:[#allocation17_spill] sm:$0xff] %v5728_v9  ;;  %v519_v21 = vsel %vm4711_vm2, %v5311_v15, %v7609_v52  ;;  %v2224_v25 = vshrl.u32 %v2016_v30, 16  ;;  %v5746_v9 = vld [vmem:[%s4677_s25 + $0x30] sm:$0xf]  ;;  %v900_v37 = vrot.slane %v810_v22, 5  ;;  %v5756_v15 = vrot.slane %v2214_v55, 4 }
  0xa2   : > { %v899_v0 = vrot.slane %v7608_v44, 4  ;;  %v255_v10 = vld [vmem:[%s4677_s25 + $0x28] sm:$0xf]  ;;  %v4522_v35 = vld [vmem:[#allocation2] ss:$20 sps:$4 sm:$0xff]   ;;  %v7610_v44 = vrot.slane %v5261_v3, 5  ;;  %v2207_v52 = vor.u32 %v5719_v11, %v5717_v33  ;;  %702 = vrot.lane.b32.xlu0 %v519_v21, %s4630_s28 }
  0xa3   : > { %v4524_v56 = vld [vmem:[#allocation2 + $0x4] ss:$20 sps:$4 sm:$0xff]   ;;  %v7611_v26 = vld [vmem:[#allocation9_spill] sm:$0xff]  ;;  %288 = vst.msk [vmem:[#allocation2 + $0xc8] sm:$0xf] %vm277_vm5, %v255_v10  ;;  %v4537_v30 = vld [vmem:[%s7500_s1 + $0xe8] sm:$0xff]   ;;  %v1100_v10 = vpop.permute.xlu1 %1099  ;;  %4308 = vmatpush3.bf16.msra.mxu1 %v4534_v23 }
  0xa4   : > { %v1744_v38 = vsel %vm5027_vm6, %v7611_v26, %v7610_v44  ;;  %1215 = vst.msk [vmem:[#allocation2 + $0x20c] sm:$0xf] %vm766_vm7, %v1146_v58  ;;  %v5764_v3 = vrot.slane %v2210_v54, 5  ;;  %v902_v5 = vrot.slane %v900_v37, 4  ;;  %3508 = vmatprep.mubr.bf16.mxu0 %v4524_v56  ;;  %v1045_v58 = vld [vmem:[%s4677_s25 + $0x48] sm:$0xf]  ;;  %v901_v21 = vsel %vm5027_vm6, %v899_v0, %v900_v37  ;;  %4309 = vmatprep.subr.bf16.mxu1 %v4537_v30 }
  0xa5   : > { %v4538_v12 = vld [vmem:[%s7500_s1 + $0xa8] sm:$0xff]   ;;  %v7613_v59 = vrot.slane %v5693_v60, 5  ;;  %v2230_v11 = vshll.u32 %v5735_v46, 16  ;;  %v5783_v56 = vld [vmem:[%s7500_s1 + $0x110] sm:$0xff]   ;;  %1192 = vst.msk [vmem:[#allocation2 + $0x40] sm:$0xf] %vm766_vm7, %v1100_v10  ;;  %3509 = vmatmul.mubr.bf16.vlgmr.msra.gmra.mxu0 %v4522_v35  ;;  %v675_v35 = vpop.permute.xlu0 %674  ;;  %1827 = vrot.lane.b32.xlu1 %v1744_v38, %s4630_s28 }
  0xa6   : > { %7612 = vst [vmem:[#allocation5_spill] sm:$0xff] %v5764_v3  ;;  %v7615_v44 = vld [vmem:[#allocation7_spill] sm:$0xff]  ;;  %v5791_v54 = vrot.slane %v2220_v48, 5  ;;  %v5793_v22 = vrot.slane %v2224_v25, 4  ;;  %v7618_v37 = vrot.slane %v5746_v9, 5  ;;  %v2217_v25 = vor.u32 %v5756_v15, %v5764_v3  ;;  %4438 = vmatpush3.bf16.msra.mxu0 %v5468_v1  ;;  %1125 = vrot.lane.b32.xlu0 %v1045_v58, %s4630_s28 }
  0xa7   : > { %v5774_v55 = vrot.slane %v7613_v59, 4  ;;  %v7616_v26 = vrot.slane %v7615_v44, 5  ;;  %v1226_v60 = vld [vmem:[%s4677_s25 + $0x1c] sm:$0xf]  ;;  %1007 = vst.msk [vmem:[#allocation2 + $0xcc] sm:$0xf] %vm277_vm5, %v901_v21  ;;  %4439 = vmatprep.subr.bf16.mxu0 %v5783_v56  ;;  %v549_v1 = vsel %vm4711_vm2, %v5384_v24, %v5367_v14  ;;  %4310 = vmatpush3.bf16.msra.mxu1 %v4538_v12 }
  0xa8   : > { %7617 = vst [vmem:[#allocation7_spill] sm:$0xff] %v5791_v54  ;;  %v904_v0 = vsel %vm5027_vm6, %v902_v5, %v7618_v37  ;;  %v5811_v48 = vld [vmem:[%s4677_s25 + $0x5c] sm:$0xf]  ;;  %v1304_v5 = vshll.u32 %v1226_v60, 16  ;;  %v1308_v10 = vshrl.u32 %v1226_v60, 16  ;;  %v4539_v38 = vld [vmem:[%s7500_s1 + $0xe0] sm:$0xff]   ;;  %v729_v60 = vpop.permute.xlu1 %728 }
  0xa9   : > { %7614 = vst [vmem:[#allocation9_spill] sm:$0xff] %v5774_v55  ;;  %v1741_v59 = vsel %vm5027_vm6, %v5356_v17, %v7616_v26  ;;  %v5801_v55 = vld [vmem:[%s4677_s25 + $0x20] sm:$0xf]  ;;  %v2153_v17 = vsel %vm4711_vm2, %v5365_v50, %v5341_v51  ;;  %1008 = vst.msk [vmem:[#allocation2 + $0xe0] sm:$0xf] %vm277_vm5, %v904_v0  ;;  %v5820_v51 = vrot.slane %v2207_v52, 4  ;;  %4311 = vmatprep.subr.bf16.mxu1 %v4539_v38 }
  0xaa   : > { %v2018_v44 = vld [vmem:[%s4677_s25 + $0x64] sm:$0xf]  ;;  %769 = vst.msk [vmem:[#allocation2 + $0x28] sm:$0xf] %vm766_vm7, %v675_v35  ;;  %v1314_v50 = vshll.u32 %v5801_v55, 16  ;;  %v7620_v21 = vshrl.u32 %v5641_v45, 16  ;;  %2376 = vrot.lane.b32.xlu1 %v2153_v17, %s4630_s28  ;;  %4440 = vmatpush3.bf16.msra.mxu0 %v5783_v56 }
  0xab   : > { %7619 = vst [vmem:[#allocation18_spill] sm:$0xff] %v5820_v51  ;;  %v2240_v23 = vshll.u32 %v2018_v44, 16  ;;  %v4540_v15 = vld [vmem:[%s7500_s1 + $0xa0] sm:$0xff]   ;;  %v2234_v30 = vshrl.u32 %v5735_v46, 16  ;;  %v5831_v52 = vrot.slane %v1304_v5, 5  ;;  %v1310_v37 = vrot.slane %v1308_v10, 4  ;;  %1825 = vrot.lane.b32.xlu0 %v1741_v59, %s4630_s28 }
  0xac   : > { %v1300_v26 = vrot.slane %v7620_v21, 4  ;;  %v2244_v0 = vshrl.u32 %v2018_v44, 16  ;;  %v1938_v35 = vld [vmem:[%s4677_s25 + $0x24] sm:$0xf]  ;;  %796 = vst.msk [vmem:[#allocation2 + $0x244] sm:$0xf] %vm766_vm7, %v729_v60  ;;  %v2227_v46 = vor.u32 %v5793_v22, %v5791_v54  ;;  %v1098_v21 = vpop.permute.xlu0 %1097  ;;  %4312 = vmatpush3.bf16.msra.mxu1 %v4540_v15 }
  0xad   : > { %v4543_v45 = vld [vmem:[%s7500_s1 + $0xd8] sm:$0xff]   ;;  %v5845_v58 = vrot.slane %v2230_v11, 5  ;;  %v5848_v5 = vld [vmem:[%s4677_s25 + $0x60] sm:$0xf]  ;;  %v5852_v44 = vld [vmem:[%s4677_s25 + $0x68] sm:$0xf]  ;;  %v1311_v10 = vor.u32 %v1310_v37, %v5831_v52 }
  0xae   : > { %1970 = vst.msk [vmem:[#allocation2 + $0x70] sm:$0xf] %vm277_vm5, %v1938_v35  ;;  %v2787_v14 = vld [vmem:[#allocation2 + $0x208] sm:$0xff]  ;;  %v2790_v24 = vld [vmem:[#allocation2 + $0x21c] sm:$0xff]  ;;  %v5860_v11 = vrot.slane %v2217_v25, 4  ;;  %v5863_v54 = vrot.slane %v1314_v50, 5  ;;  %v1301_v33 = vor.u32 %v1300_v26, %v5670_v42  ;;  %v1152_v25 = vpop.permute.xlu1 %1151  ;;  %708 = vrot.lane.b32.xlu1 %v549_v1, %s4630_s28  ;;  %v539_v1 = vsel %vm4711_vm2, %v5414_v7, %v5320_v20  ;;  %4313 = vmatprep.subr.bf16.mxu1 %v4543_v45 }
  0xaf   : > { %v4525_v60 = vld [vmem:[#allocation2 + $0x20c] ss:$20 sps:$4 sm:$0xff]   ;;  %1191 = vst.msk [vmem:[#allocation2 + $0x2c] sm:$0xf] %vm766_vm7, %v1098_v21  ;;  %v4123_v35 = vcombine.low %v2787_v14, %v2790_v24  ;;  %v5866_v17 = vrot.slane %v2240_v23, 5  ;;  %v5868_v3 = vrot.slane %v2244_v0, 4 }
  0xb0   : > { %v7621_v51 = vld [vmem:[#allocation8_spill] sm:$0xff]  ;;  %v258_v12 = vld [vmem:[%s4677_s25 + $0x34] sm:$0xf]  ;;  %3612 = vmatprep.mubr.bf16.mxu1 %v4525_v60  ;;  %v4544_v38 = vld [vmem:[%s7500_s1 + $0x98] sm:$0xff]   ;;  %v2250_v50 = vshll.u32 %v5852_v44, 16  ;;  %v7624_v42 = vrot.slane %v5722_v13, 5  ;;  %v727_v60 = vpop.permute.xlu0 %726 }
  0xb1   : > { %v2143_v22 = vsel %vm4711_vm2, %v5412_v31, %v7621_v51  ;;  %7622 = vst [vmem:[#allocation8_spill] sm:$0xff] %v5866_v17  ;;  %v5872_v31 = vld [vmem:[%s4677_s25 + $0x64] sm:$0xf]  ;;  %v1312_v51 = vrot.slane %v1311_v10, 4  ;;  %v5885_v26 = vrot.slane %v2234_v30, 4  ;;  %3613 = vmatmul.mubr.bf16.gmra.mxu1 %v4123_v35  ;;  %v4545_v37 = vld [vmem:[%s7500_s1 + $0xd0] sm:$0xff]  }
  0xb2   : > { %7623 = vst [vmem:[#allocation19_spill] sm:$0xff] %v5872_v31  ;;  %v5883_v23 = vrot.slane %v7624_v42, 4  ;;  %291 = vst.msk [vmem:[#allocation2 + $0x104] sm:$0xf] %vm277_vm5, %v258_v12  ;;  %v1937_v56 = vld [vmem:[%s4677_s25 + $0x20] sm:$0xf]  ;;  %v2247_v42 = vor.u32 %v5868_v3, %v5866_v17  ;;  %2374 = vrot.lane.b32.xlu0 %v2143_v22, %s4630_s28  ;;  %4314 = vmatpush3.bf16.msra.mxu1 %v4544_v38 }
  0xb3   : > { %1218 = vst.msk [vmem:[#allocation2 + $0x248] sm:$0xf] %vm766_vm7, %v1152_v25  ;;  %v1048_v59 = vld [vmem:[%s4677_s25 + $0x54] sm:$0xf]  ;;  %v5894_v0 = vrot.slane %v2227_v46, 4  ;;  %v7625_v10 = vrot.slane %v5811_v48, 5  ;;  %v1317_v46 = vsel %vm4711_vm2, %v1312_v51, %v5863_v54  ;;  %4315 = vmatprep.subr.bf16.mxu1 %v4545_v37 }
  0xb4   : > { %v1302_v14 = vrot.slane %v1301_v33, 4  ;;  %1969 = vst.msk [vmem:[#allocation2 + $0x5c] sm:$0xf] %vm277_vm5, %v1937_v56  ;;  %v5903_v24 = vld [vmem:[%s4677_s25 + $0x6c] sm:$0xf]  ;;  %v7537_v33 = vrot.slane %v5872_v31, 5  ;;  %v1150_v35 = vpop.permute.xlu0 %1149  ;;  %1131 = vrot.lane.b32.xlu1 %v1048_v59, %s4630_s28 }
  0xb5   : > { %v5898_v21 = vrot.slane %v7625_v10, 4  ;;  %v5911_v12 = vld [vmem:[%s4677_s25 + $0x68] sm:$0xf]  ;;  %v5915_v25 = vld [vmem:[%s4677_s25 + $0x34] sm:$0xf]  ;;  %v7626_v15 = vrot.slane %v5380_v43, 5  ;;  %v681_v43 = vpop.permute.xlu1 %680 }
  0xb6   : > { %795 = vst.msk [vmem:[#allocation2 + $0x230] sm:$0xf] %vm766_vm7, %v727_v60  ;;  %v1307_v56 = vsel %vm4711_vm2, %v1302_v14, %v5831_v52  ;;  %v5934_v10 = vld [vmem:[%s4677_s25 + $0x70] sm:$0xf]  ;;  %v5937_v60 = vld [vmem:[%s4677_s25 + $0x38] sm:$0xf]  ;;  %v2237_v52 = vor.u32 %v5885_v26, %v5845_v58  ;;  %706 = vrot.lane.b32.xlu0 %v539_v1, %s4630_s28 }
  0xb7   : > { %v1750_v51 = vsel %vm5027_vm6, %v5421_v57, %v7626_v15  ;;  %1615 = vst.msk [vmem:[#allocation2 + $0x6c] sm:$0xf] %vm277_vm5, %v1317_v46  ;;  %v257_v20 = vld [vmem:[%s4677_s25 + $0x30] sm:$0xf]  ;;  %v5944_v57 = vrot.slane %v2250_v50, 5  ;;  %v2254_v3 = vshrl.u32 %v5852_v44, 16 }
  0xb8   : > { %v4546_v7 = vld [vmem:[%s7500_s1 + $0x90] sm:$0xff]   ;;  %1614 = vst.msk [vmem:[#allocation2 + $0x58] sm:$0xf] %vm277_vm5, %v1307_v56  ;;  %v2260_v45 = vshll.u32 %v5903_v24, 16  ;;  %290 = vst.msk [vmem:[#allocation2 + $0xf0] sm:$0xf] %vm277_vm5, %v257_v20  ;;  %1831 = vrot.lane.b32.xlu1 %v1750_v51, %s4630_s28 }
  0xb9   : > { %v4578_v22 = vld [vmem:[%s7500_s1 + $0x108] sm:$0xff]   ;;  %772 = vst.msk [vmem:[#allocation2 + $0x64] sm:$0xf] %vm766_vm7, %v681_v43  ;;  %v2718_v14 = vld [vmem:[#allocation2 + $0x3c] sm:$0xff]  ;;  %v2264_v56 = vshrl.u32 %v5903_v24, 16  ;;  %v5977_v15 = vrot.slane %v7537_v33, 4  ;;  %4316 = vmatpush3.bf16.msra.mxu1 %v4546_v7 }
  0xba   : > { %v7627_v50 = vld [vmem:[#allocation10_spill] sm:$0xff]  ;;  %v4549_v26 = vld [vmem:[%s7500_s1 + $0xc8] sm:$0xff]   ;;  %v1228_v43 = vld [vmem:[%s4677_s25 + $0x24] sm:$0xf]  ;;  %v2270_v24 = vshll.u32 %v5934_v10, 16  ;;  %v5987_v38 = vrot.slane %v2247_v42, 4  ;;  %4441 = vmatprep.subr.bf16.mxu0 %v4578_v22 }
  0xbb   : > { %v7628_v46 = vrot.slane %v7627_v50, 5  ;;  %v2715_v50 = vld [vmem:[#allocation2 + $0x28] sm:$0xff]  ;;  %7629 = vst [vmem:[#allocation10_spill] sm:$0xff] %v5977_v15  ;;  %1217 = vst.msk [vmem:[#allocation2 + $0x234] sm:$0xf] %vm766_vm7, %v1150_v35  ;;  %v7631_v33 = vrot.slane %v5915_v25, 5  ;;  %v1104_v35 = vpop.permute.xlu1 %1103  ;;  %4317 = vmatprep.subr.bf16.mxu1 %v4549_v26  ;;  %4442 = vmatpush3.bf16.msra.mxu0 %v4578_v22 }
  0xbc   : > { %v4063_v59 = vcombine.low %v2715_v50, %v2718_v14  ;;  %v1047_v20 = vld [vmem:[%s4677_s25 + $0x50] sm:$0xf]  ;;  %7630 = vst [vmem:[#allocation20_spill] sm:$0xff] %v5987_v38  ;;  %v5992_v31 = vld [vmem:[%s4677_s25 + $0x6c] sm:$0xf]  ;;  %v5998_v14 = vrot.slane %v2237_v52, 4 }
  0xbd   : > { %v5961_v44 = vsel %vm5027_vm6, %v5426_v39, %v7628_v46  ;;  %v4527_v39 = vld [vmem:[#allocation2 + $0x2c] ss:$20 sps:$4 sm:$0xff]   ;;  %v908_v46 = vrot.slane %v7631_v33, 4  ;;  %7632 = vst [vmem:[#allocation21_spill] sm:$0xff] %v5992_v31  ;;  %v5995_v15 = vld [vmem:[%s4677_s25 + $0x28] sm:$0xf]  ;;  %1129 = vrot.lane.b32.xlu0 %v1047_v20, %s4630_s28 }
  0xbe   : > { %3516 = vmatprep.mubr.bf16.mxu0 %v4527_v39  ;;  %7633 = vst [vmem:[#allocation22_spill] sm:$0xff] %v5998_v14  ;;  %v6000_v50 = vrot.slane %v2260_v45, 5  ;;  %v1324_v37 = vshll.u32 %v1228_v43, 16  ;;  %v1328_v42 = vshrl.u32 %v1228_v43, 16  ;;  %v2022_v17 = vld [vmem:[%s4677_s25 + $0x74] sm:$0xf] }
  0xbf   : > { %1194 = vst.msk [vmem:[#allocation2 + $0x68] sm:$0xf] %vm766_vm7, %v1104_v35  ;;  %3517 = vmatmul.mubr.bf16.gmra.mxu0 %v4063_v59  ;;  %v4550_v33 = vld [vmem:[%s7500_s1 + $0x88] sm:$0xff]   ;;  %v6007_v30 = vrot.slane %v2264_v56, 4  ;;  %v2274_v1 = vshrl.u32 %v5934_v10, 16  ;;  %v7634_v52 = vrot.slane %v5937_v60, 5  ;;  %v679_v35 = vpop.permute.xlu0 %678  ;;  %v733_v26 = vpop.permute.xlu1 %732 }
  0xc0   : > { %v6015_v39 = vld [vmem:[%s4677_s25 + $0x70] sm:$0xf]  ;;  %v1334_v43 = vshll.u32 %v5995_v15, 16  ;;  %v6019_v59 = vrot.slane %v2270_v24, 5  ;;  %v6022_v56 = vrot.slane %v2254_v3, 4  ;;  %v6024_v10 = vrot.slane %v1324_v37, 5  ;;  %4318 = vmatpush3.bf16.msra.mxu1 %v4550_v33 }
  0xc1   : > { %v910_v45 = vsel %vm5027_vm6, %v908_v46, %v7634_v52  ;;  %v1330_v14 = vrot.slane %v1328_v42, 4  ;;  %v1940_v38 = vld [vmem:[%s4677_s25 + $0x2c] sm:$0xf]  ;;  %771 = vst.msk [vmem:[#allocation2 + $0x50] sm:$0xf] %vm766_vm7, %v679_v35  ;;  %v4551_v46 = vld [vmem:[%s7500_s1 + $0xc0] sm:$0xff]   ;;  %v569_v42 = vsel %vm4711_vm2, %v5519_v29, %v5521_v32  ;;  %v2267_v22 = vor.u32 %v6007_v30, %v6000_v50  ;;  %1829 = vrot.lane.b32.xlu0 %v5961_v44, %s4630_s28 }
  0xc2   : > { %1010 = vst.msk [vmem:[#allocation2 + $0x108] sm:$0xf] %vm277_vm5, %v910_v45  ;;  %v7635_v51 = vrot.slane %v5848_v5, 5  ;;  %v7636_v3 = vrot.slane %v5746_v9, 5  ;;  %v2280_v52 = vshll.u32 %v2022_v17, 16  ;;  %v4552_v45 = vld [vmem:[%s7500_s1 + $0x80] sm:$0xff]   ;;  %4319 = vmatprep.subr.bf16.mxu1 %v4551_v46 }
  0xc3   : > { %1972 = vst.msk [vmem:[#allocation2 + $0x98] sm:$0xf] %vm277_vm5, %v1940_v38  ;;  %v1331_v9 = vor.u32 %v1330_v14, %v6024_v10  ;;  %v6048_v35 = vrot.slane %v1334_v43, 5  ;;  %v2284_v38 = vshrl.u32 %v2022_v17, 16  ;;  %v7637_v29 = vrot.slane %v5915_v25, 5  ;;  %v1102_v43 = vpop.permute.xlu0 %1101  ;;  %v2793_v30 = vld [vmem:[#allocation2 + $0x230] sm:$0xff] }
  0xc4   : > { %v6033_v7 = vrot.slane %v7635_v51, 4  ;;  %v905_v37 = vrot.slane %v7636_v3, 4  ;;  %v6051_v51 = vld [vmem:[%s4677_s25 + $0x78] sm:$0xf]  ;;  %798 = vst.msk [vmem:[#allocation2 + $0x26c] sm:$0xf] %vm766_vm7, %v733_v26  ;;  %v7640_v17 = vsel %vm4711_vm2, %v5505_v63, %v5481_v19  ;;  %4320 = vmatpush3.bf16.msra.mxu1 %v4552_v45 }
  0xc5   : > { %v6061_v3 = vrot.slane %v2280_v52, 5  ;;  %v6064_v14 = vld [vmem:[%s4677_s25 + $0x74] sm:$0xf]  ;;  %2380 = vrot.lane.b32.xlu1 %v7640_v17, %s4630_s28  ;;  %v2796_v26 = vld [vmem:[#allocation2 + $0x244] sm:$0xff]  ;;  %v2257_v52 = vor.u32 %v6022_v56, %v5944_v57  ;;  %v2286_v19 = vrot.slane %v2284_v38, 4  ;;  %v7642_v17 = vrot.slane %v5509_v16, 5  ;;  %v1156_v16 = vpop.permute.xlu1 %1155 }
  0xc6   : > { %v907_v32 = vsel %vm5027_vm6, %v905_v37, %v7637_v29  ;;  %7639 = vst [vmem:[#allocation24_spill] sm:$0xff] %v6064_v14  ;;  %v4529_v25 = vld [vmem:[#allocation2 + $0x234] ss:$20 sps:$4 sm:$0xff]   ;;  %v7641_v20 = vld [vmem:[#allocation11_spill] sm:$0xff]  ;;  %v1332_v29 = vrot.slane %v1331_v9, 4  ;;  %v4128_v63 = vcombine.low %v2793_v30, %v2796_v26  ;;  %v2290_v33 = vshll.u32 %v6051_v51, 16 }
  0xc7   : > { %7638 = vst [vmem:[#allocation23_spill] sm:$0xff] %v6061_v3  ;;  %v559_v37 = vsel %vm4711_vm2, %v7641_v20, %v5451_v36  ;;  %1009 = vst.msk [vmem:[#allocation2 + $0xf4] sm:$0xf] %vm277_vm5, %v907_v32  ;;  %v6085_v24 = vsel %vm5027_vm6, %v5607_v18, %v7642_v17  ;;  %v7643_v56 = vshrl.u32 %v5801_v55, 16  ;;  %v260_v32 = vld [vmem:[%s4677_s25 + $0x3c] sm:$0xf]  ;;  %3620 = vmatprep.mubr.bf16.mxu1 %v4529_v25 }
  0xc8   : > { %1193 = vst.msk [vmem:[#allocation2 + $0x54] sm:$0xf] %vm766_vm7, %v1102_v43  ;;  %v1939_v38 = vld [vmem:[%s4677_s25 + $0x28] sm:$0xf]  ;;  %v1337_v18 = vsel %vm4711_vm2, %v1332_v29, %v6048_v35  ;;  %v2287_v46 = vor.u32 %v2286_v19, %v6061_v3  ;;  %v6099_v43 = vld [vmem:[%s4677_s25 + $0x78] sm:$0xf]  ;;  %3621 = vmatmul.mubr.bf16.gmra.mxu1 %v4128_v63 }
  0xc9   : > { %v1320_v9 = vrot.slane %v7643_v56, 4  ;;  %v7541_v55 = vrot.slane %v6064_v14, 5  ;;  %v2276_v30 = vrot.slane %v2274_v1, 4  ;;  %293 = vst.msk [vmem:[#allocation2 + $0x12c] sm:$0xf] %vm277_vm5, %v260_v32  ;;  %v6107_v25 = vrot.slane %v2267_v22, 4  ;;  %v731_v32 = vpop.permute.xlu0 %730  ;;  %712 = vrot.lane.b32.xlu1 %v569_v42, %s4630_s28 }
  0xca   : > { %1971 = vst.msk [vmem:[#allocation2 + $0x84] sm:$0xf] %vm277_vm5, %v1939_v38  ;;  %v2024_v26 = vld [vmem:[%s4677_s25 + $0x7c] sm:$0xf]  ;;  %v7644_v29 = vrot.slane %v5992_v31, 5  ;;  %v6119_v63 = vrot.slane %v2257_v52, 4 }
  0xcb   : > { %1220 = vst.msk [vmem:[#allocation2 + $0x270] sm:$0xf] %vm766_vm7, %v1156_v16  ;;  %v1050_v44 = vld [vmem:[%s4677_s25 + $0x5c] sm:$0xf]  ;;  %v1321_v1 = vor.u32 %v1320_v9, %v5863_v54  ;;  %v6116_v17 = vld [vmem:[%s4677_s25 + $0x80] sm:$0xf] }
  0xcc   : > { %v6111_v19 = vrot.slane %v7644_v29, 4  ;;  %1617 = vst.msk [vmem:[#allocation2 + $0x94] sm:$0xf] %vm277_vm5, %v1337_v18  ;;  %v2300_v56 = vshll.u32 %v2024_v26, 16  ;;  %v2294_v38 = vshrl.u32 %v6051_v51, 16  ;;  %v2304_v16 = vshrl.u32 %v2024_v26, 16  ;;  %v685_v26 = vpop.permute.xlu1 %684 }
  0xcd   : > { %v6124_v29 = vld [vmem:[%s4677_s25 + $0x3c] sm:$0xf]  ;;  %797 = vst.msk [vmem:[#allocation2 + $0x258] sm:$0xf] %vm766_vm7, %v731_v32  ;;  %v6127_v54 = vrot.slane %v2290_v33, 5  ;;  %v7645_v9 = vrot.slane %v5911_v12, 5  ;;  %v7647_v51 = vsel %vm4711_vm2, %v5523_v8, %v5432_v61  ;;  %1135 = vrot.lane.b32.xlu1 %v1050_v44, %s4630_s28 }
  0xce   : > { %v1322_v42 = vrot.slane %v1321_v1, 4  ;;  %v6135_v52 = vld [vmem:[%s4677_s25 + $0x40] sm:$0xf]  ;;  %2378 = vrot.lane.b32.xlu0 %v7647_v51, %s4630_s28  ;;  %v6143_v32 = vrot.slane %v2287_v46, 4  ;;  %v6147_v33 = vrot.slane %v7541_v55, 4  ;;  %v2277_v1 = vor.u32 %v2276_v30, %v6019_v59  ;;  %v2724_v22 = vld [vmem:[#allocation2 + $0x64] sm:$0xff]  ;;  %v1154_v30 = vpop.permute.xlu0 %1153 }
  0xcf   : > { %v6131_v18 = vrot.slane %v7645_v9, 4  ;;  %v2310_v9 = vshll.u32 %v6116_v17, 16  ;;  %v259_v45 = vld [vmem:[%s4677_s25 + $0x38] sm:$0xf]  ;;  %774 = vst.msk [vmem:[#allocation2 + $0x8c] sm:$0xf] %vm766_vm7, %v685_v26 }
  0xd0   : > { %7648 = vst [vmem:[#allocation25_spill] sm:$0xff] %v6147_v33  ;;  %v1327_v61 = vsel %vm4711_vm2, %v1322_v42, %v6024_v10  ;;  %v6156_v8 = vrot.slane %v2300_v56, 5  ;;  %v7542_v46 = vrot.slane %v6124_v29, 5  ;;  %292 = vst.msk [vmem:[#allocation2 + $0x118] sm:$0xf] %vm277_vm5, %v259_v45  ;;  %v2721_v26 = vld [vmem:[#allocation2 + $0x50] sm:$0xff]  ;;  %v2193_v10 = vsel %vm4711_vm2, %v5624_v2, %v5609_v40 }
  0xd1   : > { %7646 = vst [vmem:[#allocation11_spill] sm:$0xff] %v6131_v18  ;;  %v4535_v55 = vld [vmem:[#allocation2 + $0x54] ss:$20 sps:$4 sm:$0xff]   ;;  %v7650_v56 = vrot.slane %v5493_v4, 5  ;;  %1616 = vst.msk [vmem:[#allocation2 + $0x80] sm:$0xf] %vm277_vm5, %v1327_v61  ;;  %v4068_v4 = vcombine.low %v2721_v26, %v2724_v22  ;;  %v1108_v22 = vpop.permute.xlu1 %1107  ;;  %1835 = vrot.lane.b32.xlu1 %v6085_v24, %s4630_s28 }
  0xd2   : > { %7649 = vst [vmem:[#allocation26_spill] sm:$0xff] %v6156_v8  ;;  %v6178_v45 = vrot.slane %v2304_v16, 4  ;;  %v6181_v51 = vld [vmem:[%s4677_s25 + $0x7c] sm:$0xf]  ;;  %1219 = vst.msk [vmem:[#allocation2 + $0x25c] sm:$0xf] %vm766_vm7, %v1154_v30  ;;  %710 = vrot.lane.b32.xlu0 %v559_v37, %s4630_s28  ;;  %3524 = vmatprep.mubr.bf16.mxu0 %v4535_v55  ;;  %v683_v14 = vpop.permute.xlu0 %682 }
  0xd3   : > { %v6171_v42 = vsel %vm5027_vm6, %v5613_v28, %v7650_v56  ;;  %7651 = vst [vmem:[#allocation27_spill] sm:$0xff] %v6181_v51  ;;  %v1049_v40 = vld [vmem:[%s4677_s25 + $0x58] sm:$0xf]  ;;  %v914_v56 = vrot.slane %v7542_v46, 4  ;;  %v6193_v61 = vld [vmem:[%s4677_s25 + $0x80] sm:$0xf]  ;;  %3525 = vmatmul.mubr.bf16.gmra.mxu0 %v4068_v4 }
  0xd4   : > { %v1230_v16 = vld [vmem:[%s4677_s25 + $0x2c] sm:$0xf]  ;;  %v6202_v30 = vrot.slane %v2277_v1, 4  ;;  %v6204_v26 = vrot.slane %v2294_v38, 4  ;;  %v6207_v28 = vld [vmem:[%s4677_s25 + $0x30] sm:$0xf]  ;;  %v2307_v4 = vor.u32 %v6178_v45, %v6156_v8 }
  0xd5   : > { %v1344_v44 = vshll.u32 %v1230_v16, 16  ;;  %v1348_v2 = vshrl.u32 %v1230_v16, 16  ;;  %1196 = vst.msk [vmem:[#allocation2 + $0x90] sm:$0xf] %vm766_vm7, %v1108_v22  ;;  %v6210_v46 = vrot.slane %v2310_v9, 5  ;;  %v7654_v36 = vrot.slane %v6015_v39, 5  ;;  %2384 = vrot.lane.b32.xlu1 %v2193_v10, %s4630_s28 }
  0xd6   : > { %7652 = vst [vmem:[#allocation28_spill] sm:$0xff] %v6202_v30  ;;  %v7656_v37 = vrot.slane %v6135_v52, 5  ;;  %v1354_v38 = vshll.u32 %v6207_v28, 16  ;;  %v2026_v1 = vld [vmem:[%s4677_s25 + $0x84] sm:$0xf]  ;;  %v7658_v9 = vrot.slane %v5937_v60, 5  ;;  %1133 = vrot.lane.b32.xlu0 %v1049_v40, %s4630_s28  ;;  %v2297_v45 = vor.u32 %v6204_v26, %v6127_v54  ;;  %v1106_v18 = vpop.permute.xlu0 %1105 }
  0xd7   : > { %7653 = vst [vmem:[#allocation29_spill] sm:$0xff] %v6210_v46  ;;  %v6214_v20 = vrot.slane %v7654_v36, 4  ;;  %v7657_v16 = vld [vmem:[#allocation3_spill] sm:$0xff]  ;;  %v6231_v22 = vrot.slane %v1344_v44, 5  ;;  %v6234_v36 = vld [vmem:[%s4677_s25 + $0x88] sm:$0xf]  ;;  %v1808_v44 = vpop.permute.xlu1 %1807 }
  0xd8   : > { %v916_v55 = vsel %vm5027_vm6, %v914_v56, %v7656_v37  ;;  %v1350_v56 = vrot.slane %v1348_v2, 4  ;;  %v1942_v37 = vld [vmem:[%s4677_s25 + $0x34] sm:$0xf]  ;;  %773 = vst.msk [vmem:[#allocation2 + $0x78] sm:$0xf] %vm766_vm7, %v683_v14  ;;  %v911_v46 = vrot.slane %v7658_v9, 4 }
  0xd9   : > { %7655 = vst [vmem:[#allocation30_spill] sm:$0xff] %v6214_v20  ;;  %1012 = vst.msk [vmem:[#allocation2 + $0x130] sm:$0xf] %vm277_vm5, %v916_v55  ;;  %v2320_v30 = vshll.u32 %v2026_v1, 16  ;;  %v6247_v2 = vrot.slane %v1354_v38, 5  ;;  %v2324_v55 = vshrl.u32 %v2026_v1, 16 }
  0xda   : > { %1974 = vst.msk [vmem:[#allocation2 + $0xc0] sm:$0xf] %vm277_vm5, %v1942_v37  ;;  %v1351_v14 = vor.u32 %v1350_v56, %v6231_v22  ;;  %v6250_v20 = vld [vmem:[%s4677_s25 + $0x84] sm:$0xf]  ;;  %v2802_v9 = vld [vmem:[#allocation2 + $0x26c] sm:$0xff]  ;;  %v7660_v40 = vrot.slane %v5662_v41, 5  ;;  %1833 = vrot.lane.b32.xlu0 %v6171_v42, %s4630_s28 }
  0xdb   : > { %7659 = vst [vmem:[#allocation3_spill] sm:$0xff] %v6250_v20  ;;  %v4585_v60 = vld [vmem:[%s7500_s1 + $0x100] sm:$0xff]   ;;  %1902 = vst.msk [vmem:[#allocation2 + $0x1c] sm:$0xf] %vm766_vm7, %v1808_v44  ;;  %v7662_v56 = vld [vmem:[#allocation12_spill] sm:$0xff]  ;;  %v7665_v8 = vrot.slane %v6124_v29, 5 }
  0xdc   : > { %v7661_v37 = vld [vmem:[#allocation15_spill] sm:$0xff]  ;;  %v7663_v38 = vrot.slane %v7662_v56, 5  ;;  %v7664_v24 = vld [vmem:[#allocation13_spill] sm:$0xff]  ;;  %v2330_v3 = vshll.u32 %v6234_v36, 16  ;;  %v7666_v56 = vld [vmem:[#allocation6_spill] sm:$0xff]  ;;  %v6283_v29 = vrot.slane %v2320_v30, 5  ;;  %4443 = vmatprep.subr.bf16.mxu0 %v4585_v60 }
  0xdd   : > { %v6261_v26 = vsel %vm5027_vm6, %v7661_v37, %v7660_v40  ;;  %v913_v44 = vsel %vm5027_vm6, %v911_v46, %v7665_v8  ;;  %v262_v41 = vld [vmem:[%s4677_s25 + $0x44] sm:$0xf]  ;;  %v1941_v33 = vld [vmem:[%s4677_s25 + $0x30] sm:$0xf]  ;;  %v2799_v40 = vld [vmem:[#allocation2 + $0x258] sm:$0xff]  ;;  %v6285_v8 = vrot.slane %v2324_v55, 4  ;;  %4444 = vmatpush3.bf16.msra.mxu0 %v4585_v60  ;;  %v2357_v55 = vpop.permute.xlu1 %2356 }
  0xde   : > { %v6268_v1 = vsel %vm5027_vm6, %v7664_v24, %v7663_v38  ;;  %v4541_v37 = vld [vmem:[#allocation2 + $0x25c] ss:$20 sps:$4 sm:$0xff]   ;;  %v1352_v38 = vrot.slane %v1351_v14, 4  ;;  %1011 = vst.msk [vmem:[#allocation2 + $0x11c] sm:$0xf] %vm277_vm5, %v913_v44  ;;  %7668 = vst [vmem:[#allocation15_spill] sm:$0xff] %v6283_v29  ;;  %v4133_v46 = vcombine.low %v2799_v40, %v2802_v9 }
  0xdf   : > { %v7667_v31 = vld [vmem:[#allocation14_spill] sm:$0xff]  ;;  %295 = vst.msk [vmem:[#allocation2 + $0x154] sm:$0xf] %vm277_vm5, %v262_v41  ;;  %1973 = vst.msk [vmem:[#allocation2 + $0xac] sm:$0xf] %vm277_vm5, %v1941_v33  ;;  %v6290_v10 = vrot.slane %v2307_v4, 4  ;;  %3628 = vmatprep.mubr.bf16.mxu1 %v4541_v37 }
  0xe0   : > { %1195 = vst.msk [vmem:[#allocation2 + $0x7c] sm:$0xf] %vm766_vm7, %v1106_v18  ;;  %v7669_v14 = vshrl.u32 %v5995_v15, 16  ;;  %v7670_v33 = vrot.slane %v6181_v51, 5  ;;  %v6301_v18 = vrot.slane %v2297_v45, 4  ;;  %v1357_v15 = vsel %vm4711_vm2, %v1352_v38, %v6247_v2  ;;  %3629 = vmatmul.mubr.bf16.gmra.mxu1 %v4133_v46  ;;  %v7681_v4 = vld [vmem:[#allocation17_spill] sm:$0xff] }
  0xe1   : > { %v6308_v9 = vld [vmem:[%s4677_s25 + $0x88] sm:$0x1]  ;;  %2451 = vst.msk [vmem:[#allocation2 + $0x20] sm:$0xf] %vm766_vm7, %v2357_v55  ;;  %v1052_v42 = vld [vmem:[%s4677_s25 + $0x64] sm:$0xf]  ;;  %v7674_v46 = vsel %vm4711_vm2, %v5659_v47, %v7657_v16  ;;  %v2327_v47 = vor.u32 %v6285_v8, %v6283_v29 }
  0xe2   : > { %v1340_v24 = vrot.slane %v7669_v14, 4  ;;  %v6299_v44 = vrot.slane %v7670_v33, 4  ;;  %7671 = vst [vmem:[#allocation12_spill] sm:$0xff] %v6308_v9  ;;  %1619 = vst.msk [vmem:[#allocation2 + $0xbc] sm:$0xf] %vm277_vm5, %v1357_v15  ;;  %v6313_v45 = vrot.slane %v2330_v3, 5  ;;  %v1806_v14 = vpop.permute.xlu0 %1805  ;;  %716 = vrot.lane.b32.xlu1 %v7674_v46, %s4630_s28 }
  0xe3   : > { %v7672_v41 = vrot.slane %v6099_v43, 5  ;;  %v6322_v38 = vld [vmem:[%s4677_s25 + $0x8c] sm:$0xf]  ;;  %v7675_v3 = vld [vmem:[#allocation5_spill] sm:$0xff]  ;;  %v7676_v55 = vld [vmem:[#allocation18_spill] sm:$0xff]  ;;  %v7677_v15 = vrot.slane %v5722_v13, 5 }
  0xe4   : > { %v1341_v37 = vor.u32 %v1340_v24, %v6048_v35  ;;  %v7679_v24 = vld [vmem:[#allocation16_spill] sm:$0xff]  ;;  %v6351_v16 = vld [vmem:[%s4677_s25 + $0x90] sm:$0x1]  ;;  %v6354_v46 = vld [vmem:[%s4677_s25 + $0x44] sm:$0xf] }
  0xe5   : > { %v6318_v40 = vrot.slane %v7672_v41, 4  ;;  %v7678_v41 = vld [vmem:[#allocation9_spill] sm:$0xff]  ;;  %v7680_v60 = vrot.slane %v7679_v24, 5  ;;  %v6357_v13 = vld [vmem:[%s4677_s25 + $0x48] sm:$0xf] }
  0xe6   : > { %v6339_v35 = vsel %vm5027_vm6, %v7678_v41, %v7677_v15  ;;  %v261_v33 = vld [vmem:[%s4677_s25 + $0x40] sm:$0xf]  ;;  %1901 = vst.msk [vmem:[#allocation2 + $0x8] sm:$0xf] %vm766_vm7, %v1806_v14  ;;  %v1342_v15 = vrot.slane %v1341_v37, 4  ;;  %v7682_v41 = vrot.slane %v6250_v20, 5  ;;  %v7685_v37 = vsel %vm4711_vm2, %v5616_v27, %v5550_v62  ;;  %v689_v14 = vpop.permute.xlu1 %688  ;;  %v2355_v29 = vpop.permute.xlu0 %2354  ;;  %1139 = vrot.lane.b32.xlu1 %v1052_v42, %s4630_s28 }
  0xe7   : > { %7673 = vst [vmem:[#allocation13_spill] sm:$0xff] %v6318_v40  ;;  %v6346_v30 = vsel %vm5027_vm6, %v7681_v4, %v7680_v60  ;;  %v7684_v60 = vshrl.u32 %v6116_v17, 16  ;;  %294 = vst.msk [vmem:[#allocation2 + $0x140] sm:$0xf] %vm277_vm5, %v261_v33  ;;  %2382 = vrot.lane.b32.xlu0 %v7685_v37, %s4630_s28  ;;  %v7686_v20 = vrot.slane %v5848_v5, 5  ;;  %v7688_v27 = vrot.slane %v5811_v48, 5 }
  0xe8   : > { %v6363_v24 = vrot.slane %v7682_v41, 4  ;;  %v2730_v41 = vld [vmem:[#allocation2 + $0x8c] sm:$0xff]  ;;  %v1232_v62 = vld [vmem:[%s4677_s25 + $0x34] sm:$0xf]  ;;  %776 = vst.msk [vmem:[#allocation2 + $0xb4] sm:$0xf] %vm766_vm7, %v689_v14  ;;  %v1347_v5 = vsel %vm4711_vm2, %v1342_v15, %v6231_v22 }
  0xe9   : > { %v6368_v8 = vrot.slane %v7684_v60, 4  ;;  %v6382_v17 = vsel %vm5027_vm6, %v5898_v21, %v7686_v20  ;;  %v7687_v60 = vld [vmem:[#allocation7_spill] sm:$0xff]  ;;  %v918_v21 = vrot.slane %v6354_v46, 5  ;;  %v921_v20 = vrot.slane %v6357_v13, 5  ;;  %v6402_v37 = vld [vmem:[%s4677_s25 + $0x38] sm:$0xf] }
  0xea   : > { %7683 = vst [vmem:[#allocation6_spill] sm:$0xff] %v6363_v24  ;;  %v1944_v33 = vld [vmem:[%s4677_s25 + $0x3c] sm:$0xf]  ;;  %v6411_v22 = vsel %vm5027_vm6, %v5883_v23, %v7688_v27  ;;  %v6413_v46 = vrot.slane %v2327_v47, 4  ;;  %1618 = vst.msk [vmem:[#allocation2 + $0xa8] sm:$0xf] %vm277_vm5, %v1347_v5  ;;  %v7689_v47 = vsel %vm4711_vm2, %v5644_v6, %v5573_v49  ;;  %1839 = vrot.lane.b32.xlu1 %v6261_v26, %s4630_s28 }
  0xeb   : > { %v2727_v14 = vld [vmem:[#allocation2 + $0x78] sm:$0xff]  ;;  %v1364_v13 = vshll.u32 %v1232_v62, 16  ;;  %v1368_v15 = vshrl.u32 %v1232_v62, 16  ;;  %1976 = vst.msk [vmem:[#allocation2 + $0xe8] sm:$0xf] %vm277_vm5, %v1944_v33  ;;  %v920_v9 = vrot.slane %v918_v21, 4  ;;  %714 = vrot.lane.b32.xlu0 %v7689_v47, %s4630_s28  ;;  %v1112_v33 = vpop.permute.xlu1 %1111 }
  0xec   : > { %v4547_v4 = vld [vmem:[#allocation2 + $0x7c] ss:$20 sps:$4 sm:$0xff]   ;;  %2450 = vst.msk [vmem:[#allocation2 + $0xc] sm:$0xf] %vm766_vm7, %v2355_v29  ;;  %v4073_v42 = vcombine.low %v2727_v14, %v2730_v41  ;;  %v1051_v24 = vld [vmem:[%s4677_s25 + $0x60] sm:$0xf] }
  0xed   : > { %v1374_v40 = vshll.u32 %v6402_v37, 16  ;;  %v264_v23 = vld [vmem:[%s4677_s25 + $0x4c] sm:$0xf]  ;;  %3532 = vmatprep.mubr.bf16.mxu0 %v4547_v4  ;;  %v7690_v29 = vrot.slane %v5911_v12, 5  ;;  %v7691_v41 = vld [vmem:[#allocation10_spill] sm:$0xff]  ;;  %v7692_v27 = vrot.slane %v6193_v61, 5  ;;  %v922_v4 = vsel %vm5027_vm6, %v920_v9, %v921_v20 }
  0xee   : > { %v6439_v14 = vrot.slane %v1364_v13, 5  ;;  %v1370_v48 = vrot.slane %v1368_v15, 4  ;;  %297 = vst.msk [vmem:[#allocation2 + $0x17c] sm:$0xf] %vm277_vm5, %v264_v23  ;;  %v1943_v49 = vld [vmem:[%s4677_s25 + $0x38] sm:$0xf]  ;;  %3533 = vmatmul.mubr.bf16.gmra.mxu0 %v4073_v42  ;;  %v687_v42 = vpop.permute.xlu0 %686 }
  0xef   : > { %v6433_v62 = vsel %vm5027_vm6, %v7691_v41, %v7690_v29  ;;  %v6437_v5 = vrot.slane %v7692_v27, 4  ;;  %1198 = vst.msk [vmem:[#allocation2 + $0xb8] sm:$0xf] %vm766_vm7, %v1112_v33  ;;  %v7694_v6 = vld [vmem:[#allocation20_spill] sm:$0xff]  ;;  %v1378_v47 = vshrl.u32 %v6402_v37, 16  ;;  %v7695_v13 = vrot.slane %v6135_v52, 5  ;;  %1137 = vrot.lane.b32.xlu0 %v1051_v24, %s4630_s28 }
  0xf0   : > { %1975 = vst.msk [vmem:[#allocation2 + $0xd4] sm:$0xf] %vm277_vm5, %v1943_v49  ;;  %v818_v23 = vld [vmem:[%s4677_s25 + $0x4c] sm:$0xf]  ;;  %v819_v33 = vld [vmem:[%s4677_s25 + $0x50] sm:$0xf]  ;;  %v1371_v29 = vor.u32 %v1370_v48, %v6439_v14 }
  0xf1   : > { %7693 = vst [vmem:[#allocation14_spill] sm:$0xff] %v6437_v5  ;;  %v917_v15 = vrot.slane %v7695_v13, 4  ;;  %1014 = vst.msk [vmem:[#allocation2 + $0x158] sm:$0xf] %vm277_vm5, %v922_v4  ;;  %v6460_v9 = vrot.slane %v1374_v40, 5  ;;  %v7696_v37 = vshrl.u32 %v6207_v28, 16 }
  0xf2   : > { %v924_v41 = vrot.slane %v818_v23, 5  ;;  %v263_v27 = vld [vmem:[%s4677_s25 + $0x48] sm:$0xf]  ;;  %775 = vst.msk [vmem:[#allocation2 + $0xa0] sm:$0xf] %vm766_vm7, %v687_v42  ;;  %v7698_v13 = vld [vmem:[#allocation22_spill] sm:$0xff]  ;;  %v1812_v23 = vpop.permute.xlu1 %1811 }
  0xf3   : > { %v1360_v52 = vrot.slane %v7696_v37, 4  ;;  %v7697_v49 = vld [vmem:[#allocation8_spill] sm:$0xff]  ;;  %v919_v26 = vsel %vm5027_vm6, %v917_v15, %v918_v21  ;;  %v927_v4 = vrot.slane %v819_v33, 5  ;;  %296 = vst.msk [vmem:[#allocation2 + $0x168] sm:$0xf] %vm277_vm5, %v263_v27  ;;  %v923_v28 = vrot.slane %v921_v20, 4  ;;  %1837 = vrot.lane.b32.xlu0 %v6268_v1, %s4630_s28 }
  0xf4   : > { %v1234_v40 = vld [vmem:[%s4677_s25 + $0x3c] sm:$0xf]  ;;  %v1235_v48 = vld [vmem:[%s4677_s25 + $0x40] sm:$0xf]  ;;  %v1372_v12 = vrot.slane %v1371_v29, 4  ;;  %v926_v15 = vrot.slane %v924_v41, 4 }
  0xf5   : > { %v7699_v37 = vld [vmem:[#allocation19_spill] sm:$0xff]  ;;  %1013 = vst.msk [vmem:[#allocation2 + $0x144] sm:$0xf] %vm277_vm5, %v919_v26  ;;  %v1361_v21 = vor.u32 %v1360_v52, %v6247_v2  ;;  %v1384_v20 = vshll.u32 %v1234_v40, 16  ;;  %v1388_v27 = vshrl.u32 %v1234_v40, 16  ;;  %v1394_v24 = vshll.u32 %v1235_v48, 16 }
  0xf6   : > { %v7700_v5 = vrot.slane %v7699_v37, 5  ;;  %v1946_v33 = vld [vmem:[%s4677_s25 + $0x44] sm:$0xf]  ;;  %1904 = vst.msk [vmem:[#allocation2 + $0x44] sm:$0xf] %vm766_vm7, %v1812_v23  ;;  %v1398_v51 = vshrl.u32 %v1235_v48, 16  ;;  %v1110_v37 = vpop.permute.xlu0 %1109  ;;  %v1377_v29 = vsel %vm4711_vm2, %v1372_v12, %v6460_v9  ;;  %v928_v26 = vsel %vm5027_vm6, %v926_v15, %v927_v4 }
  0xf7   : > { %1978 = vst.msk [vmem:[#allocation2 + $0x110] sm:$0xf] %vm277_vm5, %v1946_v33  ;;  %v4553_v2 = vld [vmem:[#allocation2 + $0x8] ss:$20 sps:$4 sm:$0xff]   ;;  %v1362_v52 = vrot.slane %v1361_v21, 4  ;;  %v925_v40 = vsel %vm5027_vm6, %v923_v28, %v924_v41  ;;  %v7702_v48 = vshll.u32 %v6322_v38, 16  ;;  %v2361_v41 = vpop.permute.xlu1 %2360 }
  0xf8   : > { %v6481_v42 = vsel %vm5027_vm6, %v6033_v7, %v7700_v5  ;;  %v7701_v7 = vsel %vm4711_vm2, %v7676_v55, %v7675_v3  ;;  %v4555_v5 = vld [vmem:[#allocation2 + $0xc] ss:$20 sps:$4 sm:$0xff]   ;;  %1197 = vst.msk [vmem:[#allocation2 + $0xa4] sm:$0xf] %vm766_vm7, %v1110_v37  ;;  %v6508_v55 = vrot.slane %v1384_v20, 5  ;;  %v1390_v12 = vrot.slane %v1388_v27, 4 }
  0xf9   : > { %2388 = vrot.lane.b32.xlu1 %v7701_v7, %s4630_s28  ;;  %v6504_v3 = vrot.slane %v7702_v48, 5  ;;  %1621 = vst.msk [vmem:[#allocation2 + $0xe4] sm:$0xf] %vm277_vm5, %v1377_v29  ;;  %1016 = vst.msk [vmem:[#allocation2 + $0x180] sm:$0xf] %vm277_vm5, %v928_v26  ;;  %v1380_v23 = vrot.slane %v1378_v47, 4  ;;  %3669 = vmatprep.mubr.bf16.mxu1 %v4555_v5  ;;  %v1367_v47 = vsel %vm4711_vm2, %v1362_v52, %v6439_v14 }
  0xfa   : > { %1015 = vst.msk [vmem:[#allocation2 + $0x16c] sm:$0xf] %vm277_vm5, %v925_v40  ;;  %v266_v21 = vld [vmem:[%s4677_s25 + $0x54] sm:$0xf]  ;;  %v7703_v28 = vrot.slane %v6015_v39, 5  ;;  %v7704_v33 = vshrl.u32 %v6322_v38, 16  ;;  %3670 = vmatmul.mubr.bf16.vlgmr.msra.gmra.mxu1 %v4553_v2  ;;  %v1391_v39 = vor.u32 %v1390_v12, %v6508_v55  ;;  %v1810_v29 = vpop.permute.xlu0 %1809 }
  0xfb   : > { %299 = vst.msk [vmem:[#allocation2 + $0x1a4] sm:$0xf] %vm277_vm5, %v266_v21  ;;  %v1945_v1 = vld [vmem:[%s4677_s25 + $0x40] sm:$0xf]  ;;  %v820_v27 = vld [vmem:[%s4677_s25 + $0x54] sm:$0xf]  ;;  %v1381_v38 = vor.u32 %v1380_v23, %v6460_v9  ;;  %v2263_v9 = vsel %vm4711_vm2, %v6119_v63, %v6000_v50  ;;  %v7705_v21 = vsel %vm4711_vm2, %v7667_v31, %v7666_v56 }
  0xfc   : > { %v6519_v15 = vsel %vm5027_vm6, %v6111_v19, %v7703_v28  ;;  %v6523_v20 = vrot.slane %v7704_v33, 4  ;;  %v929_v37 = vrot.slane %v927_v4, 4  ;;  %2453 = vst.msk [vmem:[#allocation2 + $0x48] sm:$0xf] %vm766_vm7, %v2361_v41  ;;  %v1396_v19 = vrot.slane %v1394_v24, 5  ;;  %2386 = vrot.lane.b32.xlu0 %v7705_v21, %s4630_s28  ;;  %v693_v41 = vpop.permute.xlu1 %692  ;;  %v7709_v21 = vld [vmem:[#allocation11_spill] sm:$0xff] }
  0xfd   : > { %1620 = vst.msk [vmem:[#allocation2 + $0xd0] sm:$0xf] %vm277_vm5, %v1367_v47  ;;  %1977 = vst.msk [vmem:[#allocation2 + $0xfc] sm:$0xf] %vm277_vm5, %v1945_v1  ;;  %v821_v14 = vld [vmem:[%s4677_s25 + $0x58] sm:$0xf]  ;;  %1843 = vrot.lane.b32.xlu1 %v6339_v35, %s4630_s28  ;;  %v2273_v4 = vsel %vm4711_vm2, %v6107_v25, %v6019_v59 }
  0xfe   : > { %v930_v7 = vrot.slane %v820_v27, 5  ;;  %v265_v5 = vld [vmem:[%s4677_s25 + $0x50] sm:$0xf]  ;;  %v933_v24 = vrot.slane %v821_v14, 5  ;;  %v1236_v2 = vld [vmem:[%s4677_s25 + $0x44] sm:$0xf] }
  0xff   : > { %298 = vst.msk [vmem:[#allocation2 + $0x190] sm:$0xf] %vm277_vm5, %v265_v5  ;;  %v6551_v52 = vld [vmem:[%s4677_s25 + $0x48] sm:$0xf]  ;;  %v1400_v26 = vrot.slane %v1398_v51, 4  ;;  %v1392_v35 = vrot.slane %v1391_v39, 4  ;;  %v7706_v5 = vsel %vm4711_vm2, %v5894_v0, %v5845_v58  ;;  %v2293_v0 = vsel %vm4711_vm2, %v6143_v32, %v6127_v54 }
 0x100   : > { %1903 = vst.msk [vmem:[#allocation2 + $0x30] sm:$0xf] %vm766_vm7, %v1810_v29  ;;  %v1382_v40 = vrot.slane %v1381_v38, 4  ;;  %v932_v48 = vrot.slane %v930_v7, 4  ;;  %v1404_v12 = vshll.u32 %v1236_v2, 16  ;;  %v1408_v28 = vshrl.u32 %v1236_v2, 16  ;;  %1841 = vrot.lane.b32.xlu0 %v6346_v30, %s4630_s28 }
 0x101   : > { %v1948_v23 = vld [vmem:[%s4677_s25 + $0x4c] sm:$0xf]  ;;  %v1414_v51 = vshll.u32 %v6551_v52, 16  ;;  %v1418_v33 = vshrl.u32 %v6551_v52, 16  ;;  %v931_v47 = vsel %vm5027_vm6, %v929_v37, %v930_v7  ;;  %v268_v1 = vld [vmem:[%s4677_s25 + $0x5c] sm:$0xf]  ;;  %v1397_v31 = vsel %vm4711_vm2, %v1392_v35, %v1396_v19  ;;  %v2359_v7 = vpop.permute.xlu0 %2358  ;;  %2392 = vrot.lane.b32.xlu1 %v7706_v5, %s4630_s28 }
 0x102   : > { %1980 = vst.msk [vmem:[#allocation2 + $0x138] sm:$0xf] %vm277_vm5, %v1948_v23  ;;  %v2736_v27 = vld [vmem:[#allocation2 + $0xb4] sm:$0xff]  ;;  %v1387_v56 = vsel %vm4711_vm2, %v1382_v40, %v6508_v55  ;;  %v934_v39 = vsel %vm5027_vm6, %v932_v48, %v933_v24  ;;  %v1406_v38 = vrot.slane %v1404_v12, 5  ;;  %1017 = vst.msk [vmem:[#allocation2 + $0x194] sm:$0xf] %vm277_vm5, %v931_v47  ;;  %v1401_v40 = vor.u32 %v1400_v26, %v1396_v19  ;;  %v1116_v47 = vpop.permute.xlu1 %1115 }
 0x103   : > { %778 = vst.msk [vmem:[#allocation2 + $0xdc] sm:$0xf] %vm766_vm7, %v693_v41  ;;  %v1947_v37 = vld [vmem:[%s4677_s25 + $0x48] sm:$0xf]  ;;  %v822_v14 = vld [vmem:[%s4677_s25 + $0x5c] sm:$0xf] }
 0x104   : > { %301 = vst.msk [vmem:[#allocation2 + $0x1cc] sm:$0xf] %vm277_vm5, %v268_v1  ;;  %v2733_v55 = vld [vmem:[#allocation2 + $0xa0] sm:$0xff]  ;;  %1623 = vst.msk [vmem:[#allocation2 + $0x10c] sm:$0xf] %vm277_vm5, %v1397_v31  ;;  %v1410_v2 = vrot.slane %v1408_v28, 4 }
 0x105   : > { %v4556_v29 = vld [vmem:[#allocation2 + $0xa4] ss:$20 sps:$4 sm:$0xff]   ;;  %1622 = vst.msk [vmem:[#allocation2 + $0xf8] sm:$0xf] %vm277_vm5, %v1387_v56  ;;  %1018 = vst.msk [vmem:[#allocation2 + $0x1a8] sm:$0xf] %vm277_vm5, %v934_v39  ;;  %v4078_v58 = vcombine.low %v2733_v55, %v2736_v27  ;;  %1847 = vrot.lane.b32.xlu1 %v6382_v17, %s4630_s28 }
 0x106   : > { %v6588_v35 = vrot.slane %v1414_v51, 5  ;;  %1979 = vst.msk [vmem:[#allocation2 + $0x124] sm:$0xf] %vm277_vm5, %v1947_v37  ;;  %v936_v48 = vrot.slane %v822_v14, 5  ;;  %v7707_v12 = vld [vmem:[#allocation21_spill] sm:$0xff]  ;;  %v7710_v19 = vrot.slane %v6099_v43, 5  ;;  %3540 = vmatprep.mubr.bf16.mxu0 %v4556_v29  ;;  %v1411_v1 = vor.u32 %v1410_v2, %v1406_v38 }
 0x107   : > { %2452 = vst.msk [vmem:[#allocation2 + $0x34] sm:$0xf] %vm766_vm7, %v2359_v7  ;;  %v7708_v23 = vrot.slane %v7707_v12, 5  ;;  %v7711_v26 = vld [vmem:[#allocation25_spill] sm:$0xff]  ;;  %v267_v51 = vld [vmem:[%s4677_s25 + $0x58] sm:$0xf]  ;;  %3541 = vmatmul.mubr.bf16.gmra.mxu0 %v4078_v58 }
 0x108   : > { %v6608_v28 = vsel %vm5027_vm6, %v7711_v26, %v7710_v19  ;;  %v1402_v27 = vrot.slane %v1401_v40, 4  ;;  %v938_v31 = vrot.slane %v936_v48, 4  ;;  %300 = vst.msk [vmem:[#allocation2 + $0x1b8] sm:$0xf] %vm277_vm5, %v267_v51  ;;  %v1238_v56 = vld [vmem:[%s4677_s25 + $0x4c] sm:$0xf]  ;;  %v691_v40 = vpop.permute.xlu0 %690 }
 0x109   : > { %v6601_v41 = vsel %vm5027_vm6, %v7709_v21, %v7708_v23  ;;  %v935_v43 = vrot.slane %v933_v24, 4  ;;  %1200 = vst.msk [vmem:[#allocation2 + $0xe0] sm:$0xf] %vm766_vm7, %v1116_v47  ;;  %v7712_v39 = vld [vmem:[#allocation23_spill] sm:$0xff]  ;;  %v7713_v37 = vld [vmem:[#allocation28_spill] sm:$0xff]  ;;  %v7714_v14 = vld [vmem:[#allocation29_spill] sm:$0xff] }
 0x10a   : > { %v2283_v30 = vsel %vm4711_vm2, %v7713_v37, %v7712_v39  ;;  %v2317_v7 = vor.u32 %v6368_v8, %v7714_v14  ;;  %v1239_v5 = vld [vmem:[%s4677_s25 + $0x50] sm:$0xf]  ;;  %v1424_v55 = vshll.u32 %v1238_v56, 16  ;;  %v1428_v29 = vshrl.u32 %v1238_v56, 16  ;;  %v1950_v2 = vld [vmem:[%s4677_s25 + $0x54] sm:$0xf]  ;;  %v1816_v56 = vpop.permute.xlu1 %1815 }
 0x10b   : > { %v1412_v24 = vrot.slane %v1411_v1, 4  ;;  %v1407_v58 = vsel %vm4711_vm2, %v1402_v27, %v1406_v38  ;;  %v7715_v12 = vld [vmem:[#allocation4_spill] sm:$0xff]  ;;  %v1434_v19 = vshll.u32 %v1239_v5, 16  ;;  %1982 = vst.msk [vmem:[#allocation2 + $0x160] sm:$0xf] %vm277_vm5, %v1950_v2  ;;  %v1438_v47 = vshrl.u32 %v1239_v5, 16 }
 0x10c   : > { %v7716_v23 = vrot.slane %v7715_v12, 5  ;;  %v1240_v26 = vld [vmem:[%s4677_s25 + $0x54] sm:$0xf]  ;;  %v6635_v51 = vld [vmem:[%s4677_s25 + $0x58] sm:$0xf]  ;;  %v6640_v17 = vrot.slane %v1424_v55, 5  ;;  %v937_v1 = vsel %vm5027_vm6, %v935_v43, %v936_v48  ;;  %v2313_v8 = vsel %vm4711_vm2, %v6290_v10, %v7714_v14 }
 0x10d   : > { %777 = vst.msk [vmem:[#allocation2 + $0xc8] sm:$0xf] %vm766_vm7, %v691_v40  ;;  %v1430_v38 = vrot.slane %v1428_v29, 4  ;;  %v1949_v27 = vld [vmem:[%s4677_s25 + $0x50] sm:$0xf]  ;;  %v1417_v55 = vsel %vm4711_vm2, %v1412_v24, %v6588_v35  ;;  %v1436_v2 = vrot.slane %v1434_v19, 5 }
 0x10e   : > { %v940_v21 = vsel %vm5027_vm6, %v938_v31, %v7716_v23  ;;  %1624 = vst.msk [vmem:[#allocation2 + $0x120] sm:$0xf] %vm277_vm5, %v1407_v58  ;;  %v7717_v31 = vsel %vm4711_vm2, %v5860_v11, %v7687_v60  ;;  %1019 = vst.msk [vmem:[#allocation2 + $0x1bc] sm:$0xf] %vm277_vm5, %v937_v1  ;;  %v1420_v48 = vrot.slane %v1418_v33, 4  ;;  %v1444_v43 = vshll.u32 %v1240_v26, 16  ;;  %v1114_v33 = vpop.permute.xlu0 %1113 }
 0x10f   : > { %1020 = vst.msk [vmem:[#allocation2 + $0x1d0] sm:$0xf] %vm277_vm5, %v940_v21  ;;  %2390 = vrot.lane.b32.xlu0 %v7717_v31, %s4630_s28  ;;  %1981 = vst.msk [vmem:[#allocation2 + $0x14c] sm:$0xf] %vm277_vm5, %v1949_v27  ;;  %v1952_v5 = vld [vmem:[%s4677_s25 + $0x5c] sm:$0xf]  ;;  %v1431_v60 = vor.u32 %v1430_v38, %v6640_v17  ;;  %v7718_v58 = vsel %vm4711_vm2, %v7694_v6, %v5944_v57  ;;  %v2365_v57 = vpop.permute.xlu1 %2364 }
 0x110   : > { %1906 = vst.msk [vmem:[#allocation2 + $0x6c] sm:$0xf] %vm766_vm7, %v1816_v56  ;;  %v2719_v11 = vld [vmem:[#allocation2 + $0x44] sm:$0xff]  ;;  %v1448_v29 = vshrl.u32 %v1240_v26, 16  ;;  %v1454_v40 = vshll.u32 %v6635_v51, 16  ;;  %v1458_v24 = vshrl.u32 %v6635_v51, 16  ;;  %2396 = vrot.lane.b32.xlu1 %v7718_v58, %s4630_s28  ;;  %v1421_v21 = vor.u32 %v1420_v48, %v6588_v35 }
 0x111   : > { %1625 = vst.msk [vmem:[#allocation2 + $0x134] sm:$0xf] %vm277_vm5, %v1417_v55  ;;  %1984 = vst.msk [vmem:[#allocation2 + $0x188] sm:$0xf] %vm277_vm5, %v1952_v5  ;;  %v1242_v52 = vld [vmem:[%s4677_s25 + $0x5c] sm:$0xf] }
 0x112   : > { %v2716_v12 = vld [vmem:[#allocation2 + $0x30] sm:$0xff]  ;;  %v1446_v19 = vrot.slane %v1444_v43, 5  ;;  %v1440_v26 = vrot.slane %v1438_v47, 4  ;;  %v1464_v51 = vshll.u32 %v1242_v52, 16  ;;  %1199 = vst.msk [vmem:[#allocation2 + $0xcc] sm:$0xf] %vm766_vm7, %v1114_v33 }
 0x113   : > { %v4558_v23 = vld [vmem:[#allocation2 + $0x34] ss:$20 sps:$4 sm:$0xff]   ;;  %v4065_v38 = vcombine.low %v2716_v12, %v2719_v11  ;;  %v1432_v1 = vrot.slane %v1431_v60, 4  ;;  %v1450_v27 = vrot.slane %v1448_v29, 4  ;;  %v6674_v31 = vrot.slane %v1454_v40, 5  ;;  %1845 = vrot.lane.b32.xlu0 %v6411_v22, %s4630_s28  ;;  %v1814_v40 = vpop.permute.xlu0 %1813 }
 0x114   : > { %v1243_v56 = vld [vmem:[%s4677_s25 + $0x60] sm:$0xf]  ;;  %3677 = vmatprep.mubr.bf16.mxu1 %v4558_v23  ;;  %v1422_v6 = vrot.slane %v1421_v21, 4  ;;  %v1441_v35 = vor.u32 %v1440_v26, %v1436_v2  ;;  %v6679_v55 = vrot.slane %v1464_v51, 5  ;;  %v1468_v47 = vshrl.u32 %v1242_v52, 16  ;;  %1851 = vrot.lane.b32.xlu1 %v6433_v62, %s4630_s28 }
 0x115   : > { %v1951_v48 = vld [vmem:[%s4677_s25 + $0x58] sm:$0xf]  ;;  %2455 = vst.msk [vmem:[#allocation2 + $0x70] sm:$0xf] %vm766_vm7, %v2365_v57  ;;  %3678 = vmatmul.mubr.bf16.gmra.mxu1 %v4065_v38  ;;  %v1437_v43 = vsel %vm4711_vm2, %v1432_v1, %v1436_v2  ;;  %v1451_v5 = vor.u32 %v1450_v27, %v1446_v19  ;;  %v1474_v11 = vshll.u32 %v1243_v56, 16  ;;  %v1478_v60 = vshrl.u32 %v1243_v56, 16  ;;  %v697_v38 = vpop.permute.xlu1 %696 }
 0x116   : > { %1983 = vst.msk [vmem:[#allocation2 + $0x174] sm:$0xf] %vm277_vm5, %v1951_v48  ;;  %v2482_v22 = vld [vmem:[%s4677_s25 + $0x10] sm:$0xe]  ;;  %v2483_v29 = vld [vmem:[%s4677_s25 + $0x14] sm:$0xf]  ;;  %v1427_v52 = vsel %vm4711_vm2, %v1422_v6, %v6640_v17  ;;  %v7719_v17 = vsel %vm4711_vm2, %v7698_v13, %v7697_v49 }
 0x117   : > { %1627 = vst.msk [vmem:[#allocation2 + $0x15c] sm:$0xf] %vm277_vm5, %v1437_v43  ;;  %v1442_v33 = vrot.slane %v1441_v35, 4  ;;  %v1470_v2 = vrot.slane %v1468_v47, 4  ;;  %v2484_v58 = vld [vmem:[%s4677_s25 + $0x18] sm:$0xf]  ;;  %2394 = vrot.lane.b32.xlu0 %v7719_v17, %s4630_s28 }
 0x118   : > { %v4056_v12 = vrot.slane %v2482_v22, 9  ;;  %1905 = vst.msk [vmem:[#allocation2 + $0x58] sm:$0xf] %vm766_vm7, %v1814_v40  ;;  %v1452_v23 = vrot.slane %v1451_v5, 4  ;;  %v6697_v21 = vrot.slane %v1474_v11, 5  ;;  %v2550_v62 = vrot.slane %v2483_v29, 5  ;;  %2400 = vrot.lane.b32.xlu1 %v2273_v4, %s4630_s28 }
 0x119   : > { %1626 = vst.msk [vmem:[#allocation2 + $0x148] sm:$0xf] %vm277_vm5, %v1427_v52  ;;  %v2553_v26 = vrot.slane %v2484_v58, 5  ;;  %v1954_v51 = vld [vmem:[%s4677_s25 + $0x64] sm:$0xf]  ;;  %v2742_v1 = vld [vmem:[#allocation2 + $0xdc] sm:$0xff]  ;;  %v1447_v27 = vsel %vm4711_vm2, %v1442_v33, %v1446_v19  ;;  %v1471_v56 = vor.u32 %v1470_v2, %v6679_v55  ;;  %v1120_v58 = vpop.permute.xlu1 %1119 }
 0x11a   : > { %1986 = vst.msk [vmem:[#allocation2 + $0x1b0] sm:$0xf] %vm277_vm5, %v1954_v51  ;;  %v1460_v57 = vrot.slane %v1458_v24, 4  ;;  %v2485_v6 = vld [vmem:[%s4677_s25 + $0x1c] sm:$0xf]  ;;  %v6712_v47 = vrot.slane %v1478_v60, 4  ;;  %v1457_v49 = vsel %vm4711_vm2, %v1452_v23, %v6674_v31  ;;  %v2551_v13 = vsel %vm5027_vm6, %v4056_v12, %v2550_v62  ;;  %v2363_v24 = vpop.permute.xlu0 %2362 }
 0x11b   : > { %v2486_v35 = vld [vmem:[%s4677_s25 + $0x20] sm:$0xf]  ;;  %780 = vst.msk [vmem:[#allocation2 + $0x104] sm:$0xf] %vm766_vm7, %v697_v38  ;;  %v2552_v19 = vrot.slane %v2550_v62, 4  ;;  %v2555_v48 = vrot.slane %v2553_v26, 4  ;;  %1849 = vrot.lane.b32.xlu0 %v6481_v42, %s4630_s28 }
 0x11c   : > { %1628 = vst.msk [vmem:[#allocation2 + $0x170] sm:$0xf] %vm277_vm5, %v1447_v27  ;;  %v1244_v43 = vld [vmem:[%s4677_s25 + $0x64] sm:$0xf]  ;;  %v6723_v5 = vld [vmem:[%s4677_s25 + $0x68] sm:$0xf]  ;;  %v1461_v29 = vor.u32 %v1460_v57, %v6674_v31  ;;  %1855 = vrot.lane.b32.xlu1 %v6519_v15, %s4630_s28 }
 0x11d   : > { %v2739_v11 = vld [vmem:[#allocation2 + $0xc8] sm:$0xff]  ;;  %1629 = vst.msk [vmem:[#allocation2 + $0x184] sm:$0xf] %vm277_vm5, %v1457_v49  ;;  %v1472_v22 = vrot.slane %v1471_v56, 4  ;;  %2677 = vst.msk [vmem:[#allocation2 + $0x10] sm:$0xf] %vm277_vm5, %v2551_v13  ;;  %v2554_v2 = vsel %vm5027_vm6, %v2552_v19, %v2553_v26 }
 0x11e   : > { %v4560_v60 = vld [vmem:[#allocation2 + $0xcc] ss:$20 sps:$4 sm:$0xff]   ;;  %v2556_v40 = vrot.slane %v2485_v6, 5  ;;  %v2559_v52 = vrot.slane %v2486_v35, 5  ;;  %2454 = vst.msk [vmem:[#allocation2 + $0x5c] sm:$0xf] %vm766_vm7, %v2363_v24  ;;  %v4083_v33 = vcombine.low %v2739_v11, %v2742_v1  ;;  %v695_v27 = vpop.permute.xlu0 %694  ;;  %v1820_v11 = vpop.permute.xlu1 %1819 }
 0x11f   : > { %v1484_v59 = vshll.u32 %v1244_v43, 16  ;;  %v1488_v25 = vshrl.u32 %v1244_v43, 16  ;;  %v1953_v4 = vld [vmem:[%s4677_s25 + $0x60] sm:$0xf]  ;;  %3548 = vmatprep.mubr.bf16.mxu0 %v4560_v60  ;;  %v1477_v31 = vsel %vm4711_vm2, %v1472_v22, %v6697_v21  ;;  %2678 = vst.msk [vmem:[#allocation2 + $0x24] sm:$0xf] %vm277_vm5, %v2554_v2  ;;  %2398 = vrot.lane.b32.xlu0 %v2263_v9, %s4630_s28 }
 0x120   : > { %v1462_v12 = vrot.slane %v1461_v29, 4  ;;  %v2557_v23 = vsel %vm5027_vm6, %v2555_v48, %v2556_v40  ;;  %v2558_v62 = vrot.slane %v2556_v40, 4  ;;  %1985 = vst.msk [vmem:[#allocation2 + $0x19c] sm:$0xf] %vm277_vm5, %v1953_v4  ;;  %v2487_v26 = vld [vmem:[%s4677_s25 + $0x24] sm:$0xf]  ;;  %3549 = vmatmul.mubr.bf16.gmra.mxu0 %v4083_v33  ;;  %2404 = vrot.lane.b32.xlu1 %v2293_v0, %s4630_s28 }
 0x121   : > { %1202 = vst.msk [vmem:[#allocation2 + $0x108] sm:$0xf] %vm766_vm7, %v1120_v58  ;;  %v1486_v42 = vrot.slane %v1484_v59, 5  ;;  %v1490_v51 = vrot.slane %v1488_v25, 4  ;;  %v1494_v17 = vshll.u32 %v6723_v5, 16  ;;  %v1498_v38 = vshrl.u32 %v6723_v5, 16 }
 0x122   : > { %1631 = vst.msk [vmem:[#allocation2 + $0x1ac] sm:$0xf] %vm277_vm5, %v1477_v31  ;;  %2679 = vst.msk [vmem:[#allocation2 + $0x38] sm:$0xf] %vm277_vm5, %v2557_v23  ;;  %v2488_v1 = vld [vmem:[%s4677_s25 + $0x28] sm:$0xf]  ;;  %v1467_v56 = vsel %vm4711_vm2, %v1462_v12, %v6679_v55  ;;  %v2560_v57 = vsel %vm5027_vm6, %v2558_v62, %v2559_v52  ;;  %v1481_v55 = vor.u32 %v6712_v47, %v6697_v21  ;;  %v1118_v50 = vpop.permute.xlu0 %1117  ;;  %v2369_v62 = vpop.permute.xlu1 %2368 }
 0x123   : > { %v2561_v6 = vrot.slane %v2559_v52, 4  ;;  %v2562_v35 = vrot.slane %v2487_v26, 5  ;;  %v1956_v49 = vld [vmem:[%s4677_s25 + $0x6c] sm:$0xf]  ;;  %779 = vst.msk [vmem:[#allocation2 + $0xf0] sm:$0xf] %vm766_vm7, %v695_v27  ;;  %v1491_v15 = vor.u32 %v1490_v51, %v1486_v42  ;;  %1853 = vrot.lane.b32.xlu0 %v6601_v41, %s4630_s28 }
 0x124   : > { %v2489_v13 = vld [vmem:[%s4677_s25 + $0x2c] sm:$0xf]  ;;  %1630 = vst.msk [vmem:[#allocation2 + $0x198] sm:$0xf] %vm277_vm5, %v1467_v56  ;;  %2680 = vst.msk [vmem:[#allocation2 + $0x4c] sm:$0xf] %vm277_vm5, %v2560_v57  ;;  %1859 = vrot.lane.b32.xlu1 %v6608_v28, %s4630_s28 }
 0x125   : > { %v6766_v19 = vrot.slane %v1494_v17, 5  ;;  %v2565_v48 = vrot.slane %v2488_v1, 5  ;;  %1988 = vst.msk [vmem:[#allocation2 + $0x1d8] sm:$0xf] %vm277_vm5, %v1956_v49  ;;  %v2490_v43 = vld [vmem:[%s4677_s25 + $0x30] sm:$0xf]  ;;  %v2563_v22 = vsel %vm5027_vm6, %v2561_v6, %v2562_v35 }
 0x126   : > { %v1246_v24 = vld [vmem:[%s4677_s25 + $0x6c] sm:$0xf]  ;;  %v2564_v29 = vrot.slane %v2562_v35, 4  ;;  %v2568_v40 = vrot.slane %v2489_v13, 5  ;;  %v2571_v52 = vrot.slane %v2490_v43, 5  ;;  %v1492_v21 = vrot.slane %v1491_v15, 4  ;;  %v1818_v49 = vpop.permute.xlu0 %1817 }
 0x127   : > { %v2725_v60 = vld [vmem:[#allocation2 + $0x6c] sm:$0xff]  ;;  %1908 = vst.msk [vmem:[#allocation2 + $0x94] sm:$0xf] %vm766_vm7, %v1820_v11  ;;  %v1482_v47 = vrot.slane %v1481_v55, 4  ;;  %v2567_v2 = vrot.slane %v2565_v48, 4  ;;  %v1504_v59 = vshll.u32 %v1246_v24, 16  ;;  %2402 = vrot.lane.b32.xlu0 %v2283_v30, %s4630_s28 }
 0x128   : > { %v1247_v33 = vld [vmem:[%s4677_s25 + $0x70] sm:$0xf]  ;;  %2681 = vst.msk [vmem:[#allocation2 + $0x60] sm:$0xf] %vm277_vm5, %v2563_v22  ;;  %v2722_v63 = vld [vmem:[#allocation2 + $0x58] sm:$0xff]  ;;  %v2566_v25 = vsel %vm5027_vm6, %v2564_v29, %v2565_v48  ;;  %v2570_v4 = vrot.slane %v2568_v40, 4  ;;  %v1497_v23 = vsel %vm4711_vm2, %v1492_v21, %v6766_v19  ;;  %2408 = vrot.lane.b32.xlu1 %v2313_v8, %s4630_s28 }
 0x129   : > { %v4562_v9 = vld [vmem:[#allocation2 + $0x5c] ss:$20 sps:$4 sm:$0xff]   ;;  %v1508_v58 = vshrl.u32 %v1246_v24, 16  ;;  %v1514_v31 = vshll.u32 %v1247_v33, 16  ;;  %1201 = vst.msk [vmem:[#allocation2 + $0xf4] sm:$0xf] %vm766_vm7, %v1118_v50  ;;  %v4070_v12 = vcombine.low %v2722_v63, %v2725_v60  ;;  %v1487_v54 = vsel %vm4711_vm2, %v1482_v47, %v1486_v42 }
 0x12a   : > { %2682 = vst.msk [vmem:[#allocation2 + $0x74] sm:$0xf] %vm277_vm5, %v2566_v25  ;;  %v2569_v32 = vsel %vm5027_vm6, %v2567_v2, %v2568_v40  ;;  %v1955_v0 = vld [vmem:[%s4677_s25 + $0x68] sm:$0xf]  ;;  %3685 = vmatprep.mubr.bf16.mxu1 %v4562_v9  ;;  %v6807_v26 = vrot.slane %v2317_v7, 4  ;;  %v2572_v42 = vsel %vm5027_vm6, %v2570_v4, %v2571_v52  ;;  %v6814_v51 = vrot.slane %v1504_v59, 5 }
 0x12b   : > { %1633 = vst.msk [vmem:[#allocation2 + $0x1d4] sm:$0xf] %vm277_vm5, %v1497_v23  ;;  %1632 = vst.msk [vmem:[#allocation2 + $0x1c0] sm:$0xf] %vm277_vm5, %v1487_v54  ;;  %v1510_v41 = vrot.slane %v1508_v58, 4  ;;  %3686 = vmatmul.mubr.bf16.gmra.mxu1 %v4070_v12  ;;  %v7720_v7 = vld [vmem:[#allocation24_spill] sm:$0xff] }
 0x12c   : > { %2683 = vst.msk [vmem:[#allocation2 + $0x88] sm:$0xf] %vm277_vm5, %v2569_v32  ;;  %1987 = vst.msk [vmem:[#allocation2 + $0x1c4] sm:$0xf] %vm277_vm5, %v1955_v0  ;;  %v7721_v17 = vrot.slane %v7720_v7, 5  ;;  %v7722_v1 = vld [vmem:[#allocation30_spill] sm:$0xff] }
 0x12d   : > { %2457 = vst.msk [vmem:[#allocation2 + $0x98] sm:$0xf] %vm766_vm7, %v2369_v62  ;;  %v1518_v56 = vshrl.u32 %v1247_v33, 16  ;;  %v2491_v57 = vld [vmem:[%s4677_s25 + $0x34] sm:$0xf]  ;;  %v2573_v35 = vrot.slane %v2571_v52, 4  ;;  %v1511_v10 = vor.u32 %v1510_v41, %v6814_v51 }
 0x12e   : > { %v1789_v27 = vsel %vm5027_vm6, %v7722_v1, %v7721_v17  ;;  %2684 = vst.msk [vmem:[#allocation2 + $0x9c] sm:$0xf] %vm277_vm5, %v2572_v42  ;;  %v2492_v6 = vld [vmem:[%s4677_s25 + $0x38] sm:$0xf]  ;;  %v6833_v14 = vrot.slane %v1514_v31, 5  ;;  %v2574_v13 = vrot.slane %v2491_v57, 5  ;;  %v2333_v1 = vsel %vm4711_vm2, %v6413_v46, %v6313_v45 }
 0x12f   : > { %v2577_v15 = vrot.slane %v2492_v6, 5  ;;  %1907 = vst.msk [vmem:[#allocation2 + $0x80] sm:$0xf] %vm766_vm7, %v1818_v49  ;;  %v7723_v48 = vrot.slane %v6193_v61, 5  ;;  %v7724_v43 = vld [vmem:[#allocation26_spill] sm:$0xff]  ;;  %v1500_v11 = vrot.slane %v1498_v38, 4  ;;  %v701_v61 = vpop.permute.xlu1 %700  ;;  %1857 = vrot.lane.b32.xlu0 %v1789_v27, %s4630_s28 }
 0x130   : > { %v2303_v28 = vsel %vm4711_vm2, %v6301_v18, %v7724_v43  ;;  %v1958_v24 = vld [vmem:[%s4677_s25 + $0x74] sm:$0xf]  ;;  %v2493_v60 = vld [vmem:[%s4677_s25 + $0x3c] sm:$0xf]  ;;  %v6849_v22 = vrot.slane %v1518_v56, 4  ;;  %v1512_v29 = vrot.slane %v1511_v10, 4  ;;  %v2575_v5 = vsel %vm5027_vm6, %v2573_v35, %v2574_v13 }
 0x131   : > { %v1798_v55 = vsel %vm5027_vm6, %v6299_v44, %v7723_v48  ;;  %v2347_v44 = vor.u32 %v6523_v20, %v6504_v3  ;;  %v2576_v38 = vrot.slane %v2574_v13, 4  ;;  %1990 = vst.msk [vmem:[#allocation2 + $0x200] sm:$0xf] %vm277_vm5, %v1958_v24  ;;  %v2494_v40 = vld [vmem:[%s4677_s25 + $0x40] sm:$0xf]  ;;  %v2748_v52 = vld [vmem:[#allocation2 + $0x104] sm:$0xff]  ;;  %v1501_v39 = vor.u32 %v1500_v11, %v6766_v19  ;;  %v2367_v20 = vpop.permute.xlu0 %2366 }
 0x132   : > { %782 = vst.msk [vmem:[#allocation2 + $0x12c] sm:$0xf] %vm766_vm7, %v701_v61  ;;  %v2579_v37 = vrot.slane %v2577_v15, 4  ;;  %v2580_v30 = vrot.slane %v2493_v60, 5  ;;  %v2583_v33 = vrot.slane %v2494_v40, 5  ;;  %v2745_v47 = vld [vmem:[#allocation2 + $0xf0] sm:$0xff]  ;;  %v1517_v59 = vsel %vm4711_vm2, %v1512_v29, %v6833_v14  ;;  %1863 = vrot.lane.b32.xlu1 %v1798_v55, %s4630_s28 }
 0x133   : > { %2685 = vst.msk [vmem:[#allocation2 + $0xb0] sm:$0xf] %vm277_vm5, %v2575_v5  ;;  %v1248_v21 = vld [vmem:[%s4677_s25 + $0x74] sm:$0xf]  ;;  %v2578_v50 = vsel %vm5027_vm6, %v2576_v38, %v2577_v15  ;;  %v1521_v19 = vor.u32 %v6849_v22, %v6833_v14  ;;  %v4088_v9 = vcombine.low %v2745_v47, %v2748_v52  ;;  %1635 = vst.msk [vmem:[#allocation2 + $0x1fc] sm:$0xf] %vm277_vm5, %v1517_v59  ;;  %v1124_v31 = vpop.permute.xlu1 %1123  ;;  %2406 = vrot.lane.b32.xlu0 %v2303_v28, %s4630_s28 }
 0x134   : > { %v4565_v2 = vld [vmem:[#allocation2 + $0xf4] ss:$20 sps:$4 sm:$0xff]   ;;  %v1524_v63 = vshll.u32 %v1248_v21, 16  ;;  %2456 = vst.msk [vmem:[#allocation2 + $0x84] sm:$0xf] %vm766_vm7, %v2367_v20  ;;  %v1502_v25 = vrot.slane %v1501_v39, 4  ;;  %v2581_v4 = vsel %vm5027_vm6, %v2579_v37, %v2580_v30 }
 0x135   : > { %2686 = vst.msk [vmem:[#allocation2 + $0xc4] sm:$0xf] %vm277_vm5, %v2578_v50  ;;  %v2582_v58 = vrot.slane %v2580_v30, 4  ;;  %3556 = vmatprep.mubr.bf16.mxu0 %v4565_v2  ;;  %v6881_v12 = vrot.slane %v2347_v44, 4  ;;  %v7725_v23 = vshll.u32 %v6351_v16, 16  ;;  %v7726_v32 = vshrl.u32 %v6234_v36, 16  ;;  %v699_v17 = vpop.permute.xlu0 %698 }
 0x136   : > { %2687 = vst.msk [vmem:[#allocation2 + $0xd8] sm:$0xf] %vm277_vm5, %v2581_v4  ;;  %v1526_v62 = vrot.slane %v1524_v63, 5  ;;  %3557 = vmatmul.mubr.bf16.gmra.mxu0 %v4088_v9  ;;  %v1507_v42 = vsel %vm4711_vm2, %v1502_v25, %v6814_v51  ;;  %v1249_v41 = vld [vmem:[%s4677_s25 + $0x78] sm:$0xf]  ;;  %v1528_v8 = vshrl.u32 %v1248_v21, 16  ;;  %2412 = vrot.lane.b32.xlu1 %v2333_v1, %s4630_s28 }
 0x137   : > { %v6885_v54 = vrot.slane %v7725_v23, 5  ;;  %v2336_v0 = vrot.slane %v7726_v32, 4  ;;  %1204 = vst.msk [vmem:[#allocation2 + $0x130] sm:$0xf] %vm766_vm7, %v1124_v31  ;;  %v2584_v16 = vsel %vm5027_vm6, %v2582_v58, %v2583_v33  ;;  %v1957_v7 = vld [vmem:[%s4677_s25 + $0x70] sm:$0xf]  ;;  %v1824_v46 = vpop.permute.xlu1 %1823 }
 0x138   : > { %v2585_v36 = vrot.slane %v2583_v33, 4  ;;  %1634 = vst.msk [vmem:[#allocation2 + $0x1e8] sm:$0xf] %vm277_vm5, %v1507_v42  ;;  %2688 = vst.msk [vmem:[#allocation2 + $0xec] sm:$0xf] %vm277_vm5, %v2584_v16  ;;  %v1534_v51 = vshll.u32 %v1249_v41, 16 }
 0x139   : > { %v1538_v27 = vshrl.u32 %v1249_v41, 16  ;;  %1989 = vst.msk [vmem:[#allocation2 + $0x1ec] sm:$0xf] %vm277_vm5, %v1957_v7  ;;  %v2495_v56 = vld [vmem:[%s4677_s25 + $0x44] sm:$0xf]  ;;  %v1530_v6 = vrot.slane %v1528_v8, 4  ;;  %v2337_v24 = vor.u32 %v2336_v0, %v6313_v45  ;;  %v1122_v38 = vpop.permute.xlu0 %1121 }
 0x13a   : > { %v2496_v57 = vld [vmem:[%s4677_s25 + $0x48] sm:$0xf]  ;;  %781 = vst.msk [vmem:[#allocation2 + $0x118] sm:$0xf] %vm766_vm7, %v699_v17  ;;  %v2586_v35 = vrot.slane %v2495_v56, 5  ;;  %v1522_v14 = vrot.slane %v1521_v19, 4 }
 0x13b   : > { %v2589_v49 = vrot.slane %v2496_v57, 5  ;;  %v1960_v10 = vld [vmem:[%s4677_s25 + $0x7c] sm:$0xf]  ;;  %v7727_v13 = vld [vmem:[#allocation27_spill] sm:$0xff]  ;;  %v7729_v48 = vld [vmem:[#allocation13_spill] sm:$0xff]  ;;  %v1536_v11 = vrot.slane %v1534_v51, 5  ;;  %v1531_v18 = vor.u32 %v1530_v6, %v1526_v62  ;;  %v2373_v19 = vpop.permute.xlu1 %2372 }
 0x13c   : > { %v7728_v15 = vrot.slane %v7727_v13, 5  ;;  %1992 = vst.msk [vmem:[#allocation2 + $0x228] sm:$0xf] %vm277_vm5, %v1960_v10  ;;  %v2497_v60 = vld [vmem:[%s4677_s25 + $0x4c] sm:$0xf]  ;;  %v1540_v22 = vrot.slane %v1538_v27, 4  ;;  %v2587_v43 = vsel %vm5027_vm6, %v2585_v36, %v2586_v35  ;;  %v1527_v44 = vsel %vm4711_vm2, %v1522_v14, %v1526_v62 }
 0x13d   : > { %1910 = vst.msk [vmem:[#allocation2 + $0xbc] sm:$0xf] %vm766_vm7, %v1824_v46  ;;  %v2731_v61 = vld [vmem:[#allocation2 + $0x94] sm:$0xff]  ;;  %v2588_v28 = vrot.slane %v2586_v35, 4  ;;  %v2498_v29 = vld [vmem:[%s4677_s25 + $0x50] sm:$0xf]  ;;  %v1822_v62 = vpop.permute.xlu0 %1821  ;;  %v2353_v36 = vsel %vm4711_vm2, %v6881_v12, %v6885_v54 }
 0x13e   : > { %v1795_v55 = vsel %vm5027_vm6, %v7729_v48, %v7728_v15  ;;  %v1250_v5 = vld [vmem:[%s4677_s25 + $0x7c] sm:$0xf]  ;;  %v2728_v45 = vld [vmem:[#allocation2 + $0x80] sm:$0xff]  ;;  %v7730_v52 = vld [vmem:[#allocation12_spill] sm:$0xff]  ;;  %2689 = vst.msk [vmem:[#allocation2 + $0x100] sm:$0xf] %vm277_vm5, %v2587_v43  ;;  %v1541_v47 = vor.u32 %v1540_v22, %v1536_v11 }
 0x13f   : > { %v4567_v40 = vld [vmem:[#allocation2 + $0x84] ss:$20 sps:$4 sm:$0xff]   ;;  %v7731_v39 = vrot.slane %v7730_v52, 5  ;;  %1636 = vst.msk [vmem:[#allocation2 + $0x210] sm:$0xf] %vm277_vm5, %v1527_v44  ;;  %v2591_v20 = vrot.slane %v2589_v49, 4  ;;  %v4075_v2 = vcombine.low %v2728_v45, %v2731_v61  ;;  %v2590_v50 = vsel %vm5027_vm6, %v2588_v28, %v2589_v49  ;;  %1861 = vrot.lane.b32.xlu0 %v1795_v55, %s4630_s28  ;;  %v705_v57 = vpop.permute.xlu1 %704 }
 0x140   : > { %v7732_v37 = vld [vmem:[#allocation6_spill] sm:$0xff]  ;;  %v7733_v33 = vld [vmem:[#allocation15_spill] sm:$0xff]  ;;  %1203 = vst.msk [vmem:[#allocation2 + $0x11c] sm:$0xf] %vm766_vm7, %v1122_v38  ;;  %v1532_v59 = vrot.slane %v1531_v18, 4  ;;  %v2592_v63 = vrot.slane %v2497_v60, 5  ;;  %3693 = vmatprep.mubr.bf16.mxu1 %v4567_v40 }
 0x141   : > { %v1804_v30 = vsel %vm5027_vm6, %v7732_v37, %v7731_v39  ;;  %v2323_v21 = vsel %vm4711_vm2, %v6807_v26, %v7733_v33  ;;  %v6947_v26 = vrot.slane %v2337_v24, 4  ;;  %2690 = vst.msk [vmem:[#allocation2 + $0x114] sm:$0xf] %vm277_vm5, %v2590_v50  ;;  %v2595_v9 = vrot.slane %v2498_v29, 5  ;;  %v1251_v25 = vld [vmem:[%s4677_s25 + $0x80] sm:$0xf]  ;;  %3694 = vmatmul.mubr.bf16.gmra.mxu1 %v4075_v2  ;;  %v2371_v22 = vpop.permute.xlu0 %2370 }
 0x142   : > { %v1544_v4 = vshll.u32 %v1250_v5, 16  ;;  %v1548_v58 = vshrl.u32 %v1250_v5, 16  ;;  %2459 = vst.msk [vmem:[#allocation2 + $0xc0] sm:$0xf] %vm766_vm7, %v2373_v19  ;;  %v1537_v31 = vsel %vm4711_vm2, %v1532_v59, %v1536_v11  ;;  %v2593_v23 = vsel %vm5027_vm6, %v2591_v20, %v2592_v63  ;;  %1867 = vrot.lane.b32.xlu1 %v1804_v30, %s4630_s28  ;;  %v1959_v8 = vld [vmem:[%s4677_s25 + $0x78] sm:$0xf] }
 0x143   : > { %v2594_v32 = vrot.slane %v2592_v63, 4  ;;  %v1554_v0 = vshll.u32 %v1251_v25, 16  ;;  %1637 = vst.msk [vmem:[#allocation2 + $0x224] sm:$0xf] %vm277_vm5, %v1537_v31  ;;  %2691 = vst.msk [vmem:[#allocation2 + $0x128] sm:$0xf] %vm277_vm5, %v2593_v23  ;;  %2410 = vrot.lane.b32.xlu0 %v2323_v21, %s4630_s28  ;;  %v2343_v48 = vsel %vm4711_vm2, %v6947_v26, %v6504_v3  ;;  %v1128_v40 = vpop.permute.xlu1 %1127 }
 0x144   : > { %v1546_v42 = vrot.slane %v1544_v4, 5  ;;  %v1550_v16 = vrot.slane %v1548_v58, 4  ;;  %v1558_v41 = vshrl.u32 %v1251_v25, 16  ;;  %v2597_v7 = vrot.slane %v2595_v9, 4  ;;  %1909 = vst.msk [vmem:[#allocation2 + $0xa8] sm:$0xf] %vm766_vm7, %v1822_v62 }
 0x145   : > { %v2596_v17 = vsel %vm5027_vm6, %v2594_v32, %v2595_v9  ;;  %v6967_v1 = vrot.slane %v1554_v0, 5  ;;  %1991 = vst.msk [vmem:[#allocation2 + $0x214] sm:$0xf] %vm277_vm5, %v1959_v8  ;;  %v2499_v51 = vld [vmem:[%s4677_s25 + $0x54] sm:$0xf]  ;;  %v1542_v56 = vrot.slane %v1541_v47, 4  ;;  %v703_v59 = vpop.permute.xlu0 %702 }
 0x146   : > { %v2500_v27 = vld [vmem:[%s4677_s25 + $0x58] sm:$0xf]  ;;  %v7734_v6 = vld [vmem:[#allocation3_spill] sm:$0xff]  ;;  %v2754_v54 = vld [vmem:[#allocation2 + $0x12c] sm:$0xff]  ;;  %2692 = vst.msk [vmem:[#allocation2 + $0x13c] sm:$0xf] %vm277_vm5, %v2596_v17  ;;  %v1551_v10 = vor.u32 %v1550_v16, %v1546_v42  ;;  %2416 = vrot.lane.b32.xlu1 %v2353_v36, %s4630_s28 }
 0x147   : > { %v7735_v35 = vrot.slane %v7734_v6, 5  ;;  %v7736_v49 = vld [vmem:[#allocation14_spill] sm:$0xff]  ;;  %v2598_v14 = vrot.slane %v2499_v51, 5  ;;  %v2601_v46 = vrot.slane %v2500_v27, 5  ;;  %v1962_v13 = vld [vmem:[%s4677_s25 + $0x84] sm:$0xf]  ;;  %v1547_v55 = vsel %vm4711_vm2, %v1542_v56, %v1546_v42  ;;  %v1828_v25 = vpop.permute.xlu1 %1827 }
 0x148   : > { %v2501_v15 = vld [vmem:[%s4677_s25 + $0x5c] sm:$0xf]  ;;  %784 = vst.msk [vmem:[#allocation2 + $0x154] sm:$0xf] %vm766_vm7, %v705_v57  ;;  %v2502_v24 = vld [vmem:[%s4677_s25 + $0x60] sm:$0xf] }
 0x149   : > { %v1801_v12 = vsel %vm5027_vm6, %v7736_v49, %v7735_v35  ;;  %1994 = vst.msk [vmem:[#allocation2 + $0x250] sm:$0xf] %vm277_vm5, %v1962_v13  ;;  %v2604_v11 = vrot.slane %v2501_v15, 5  ;;  %v1560_v60 = vrot.slane %v1558_v41, 4  ;;  %v2751_v61 = vld [vmem:[#allocation2 + $0x118] sm:$0xff]  ;;  %v1552_v43 = vrot.slane %v1551_v10, 4  ;;  %v1126_v8 = vpop.permute.xlu0 %1125 }
 0x14a   : > { %v4569_v18 = vld [vmem:[#allocation2 + $0x11c] ss:$20 sps:$4 sm:$0xff]   ;;  %v2599_v28 = vsel %vm5027_vm6, %v2597_v7, %v2598_v14  ;;  %v2600_v44 = vrot.slane %v2598_v14, 4  ;;  %1638 = vst.msk [vmem:[#allocation2 + $0x238] sm:$0xf] %vm277_vm5, %v1547_v55  ;;  %v2603_v3 = vrot.slane %v2601_v46, 4  ;;  %v4093_v29 = vcombine.low %v2751_v61, %v2754_v54  ;;  %1865 = vrot.lane.b32.xlu0 %v1801_v12, %s4630_s28 }
 0x14b   : > { %2458 = vst.msk [vmem:[#allocation2 + $0xac] sm:$0xf] %vm766_vm7, %v2371_v22  ;;  %v2606_v5 = vrot.slane %v2604_v11, 4  ;;  %v2607_v38 = vrot.slane %v2502_v24, 5  ;;  %v1561_v45 = vor.u32 %v1560_v60, %v6967_v1  ;;  %3564 = vmatprep.mubr.bf16.mxu0 %v4569_v18  ;;  %v1557_v52 = vsel %vm4711_vm2, %v1552_v43, %v6967_v1  ;;  %v1252_v30 = vld [vmem:[%s4677_s25 + $0x84] sm:$0xf]  ;;  %v2377_v49 = vpop.permute.xlu1 %2376 }
 0x14c   : > { %2693 = vst.msk [vmem:[#allocation2 + $0x150] sm:$0xf] %vm277_vm5, %v2599_v28  ;;  %v2602_v39 = vsel %vm5027_vm6, %v2600_v44, %v2601_v46  ;;  %v2605_v37 = vsel %vm5027_vm6, %v2603_v3, %v2604_v11  ;;  %v1253_v33 = vld [vmem:[%s4677_s25 + $0x88] sm:$0x1]  ;;  %3565 = vmatmul.mubr.bf16.gmra.mxu0 %v4093_v29  ;;  %1639 = vst.msk [vmem:[#allocation2 + $0x24c] sm:$0xf] %vm277_vm5, %v1557_v52 }
 0x14d   : > { %1206 = vst.msk [vmem:[#allocation2 + $0x158] sm:$0xf] %vm766_vm7, %v1128_v40  ;;  %v2608_v21 = vsel %vm5027_vm6, %v2606_v5, %v2607_v38  ;;  %v1564_v20 = vshll.u32 %v1252_v30, 16  ;;  %v1568_v47 = vshrl.u32 %v1252_v30, 16  ;;  %v1574_v2 = vshll.u32 %v1253_v33, 16  ;;  %v2737_v4 = vld [vmem:[#allocation2 + $0xbc] sm:$0xff]  ;;  %v1826_v14 = vpop.permute.xlu0 %1825 }
 0x14e   : > { %2694 = vst.msk [vmem:[#allocation2 + $0x164] sm:$0xf] %vm277_vm5, %v2602_v39  ;;  %2695 = vst.msk [vmem:[#allocation2 + $0x178] sm:$0xf] %vm277_vm5, %v2605_v37  ;;  %v1961_v50 = vld [vmem:[%s4677_s25 + $0x80] sm:$0xf]  ;;  %2414 = vrot.lane.b32.xlu0 %v2343_v48, %s4630_s28 }
 0x14f   : > { %2696 = vst.msk [vmem:[#allocation2 + $0x18c] sm:$0xf] %vm277_vm5, %v2608_v21  ;;  %v2503_v63 = vld [vmem:[%s4677_s25 + $0x64] sm:$0xf]  ;;  %v2504_v19 = vld [vmem:[%s4677_s25 + $0x68] sm:$0xf]  ;;  %v709_v60 = vpop.permute.xlu1 %708 }
 0x150   : > { %783 = vst.msk [vmem:[#allocation2 + $0x140] sm:$0xf] %vm766_vm7, %v703_v59  ;;  %v1566_v26 = vrot.slane %v1564_v20, 5  ;;  %v1570_v9 = vrot.slane %v1568_v47, 4  ;;  %v2609_v58 = vrot.slane %v2607_v38, 4  ;;  %v2610_v31 = vrot.slane %v2503_v63, 5 }
 0x151   : > { %1993 = vst.msk [vmem:[#allocation2 + $0x23c] sm:$0xf] %vm277_vm5, %v1961_v50  ;;  %v2613_v23 = vrot.slane %v2504_v19, 5  ;;  %v1964_v32 = vld [vmem:[%s4677_s25 + $0x8c] sm:$0xf]  ;;  %v1576_v62 = vrot.slane %v1574_v2, 5 }
 0x152   : > { %1912 = vst.msk [vmem:[#allocation2 + $0xe4] sm:$0xf] %vm766_vm7, %v1828_v25  ;;  %v1571_v0 = vor.u32 %v1570_v9, %v1566_v26  ;;  %v1562_v42 = vrot.slane %v1561_v45, 4  ;;  %v2505_v16 = vld [vmem:[%s4677_s25 + $0x6c] sm:$0xf]  ;;  %v2611_v17 = vsel %vm5027_vm6, %v2609_v58, %v2610_v31  ;;  %v2612_v1 = vrot.slane %v2610_v31, 4  ;;  %v2375_v45 = vpop.permute.xlu0 %2374 }
 0x153   : > { %1996 = vst.msk [vmem:[#allocation2 + $0x278] sm:$0xf] %vm277_vm5, %v1964_v32  ;;  %v2506_v41 = vld [vmem:[%s4677_s25 + $0x70] sm:$0xf]  ;;  %v2734_v7 = vld [vmem:[#allocation2 + $0xa8] sm:$0xff]  ;;  %v2615_v57 = vrot.slane %v2613_v23, 4  ;;  %v1132_v50 = vpop.permute.xlu1 %1131 }
 0x154   : > { %v4572_v36 = vld [vmem:[#allocation2 + $0xac] ss:$20 sps:$4 sm:$0xff]   ;;  %1205 = vst.msk [vmem:[#allocation2 + $0x144] sm:$0xf] %vm766_vm7, %v1126_v8  ;;  %v4080_v51 = vcombine.low %v2734_v7, %v2737_v4  ;;  %v1572_v27 = vrot.slane %v1571_v0, 4  ;;  %v1567_v56 = vsel %vm4711_vm2, %v1562_v42, %v1566_v26  ;;  %v2614_v12 = vsel %vm5027_vm6, %v2612_v1, %v2613_v23  ;;  %v2760_v44 = vld [vmem:[#allocation2 + $0x154] sm:$0xff] }
 0x155   : > { %2697 = vst.msk [vmem:[#allocation2 + $0x1a0] sm:$0xf] %vm277_vm5, %v2611_v17  ;;  %v1963_v6 = vld [vmem:[%s4677_s25 + $0x88] sm:$0xf]  ;;  %v2507_v35 = vld [vmem:[%s4677_s25 + $0x74] sm:$0xf]  ;;  %3701 = vmatprep.mubr.bf16.mxu1 %v4572_v36 }
 0x156   : > { %1640 = vst.msk [vmem:[#allocation2 + $0x260] sm:$0xf] %vm277_vm5, %v1567_v56  ;;  %v2616_v54 = vrot.slane %v2505_v16, 5  ;;  %1995 = vst.msk [vmem:[#allocation2 + $0x264] sm:$0xf] %vm277_vm5, %v1963_v6  ;;  %3702 = vmatmul.mubr.bf16.gmra.mxu1 %v4080_v51  ;;  %v1577_v10 = vsel %vm4711_vm2, %v1572_v27, %v1576_v62  ;;  %v2619_v15 = vrot.slane %v2506_v41, 5  ;;  %v707_v4 = vpop.permute.xlu0 %706 }
 0x157   : > { %2461 = vst.msk [vmem:[#allocation2 + $0xe8] sm:$0xf] %vm766_vm7, %v2377_v49  ;;  %v2508_v48 = vld [vmem:[%s4677_s25 + $0x78] sm:$0xf]  ;;  %v2622_v55 = vrot.slane %v2507_v35, 5  ;;  %v1832_v32 = vpop.permute.xlu1 %1831 }
 0x158   : > { %2698 = vst.msk [vmem:[#allocation2 + $0x1b4] sm:$0xf] %vm277_vm5, %v2614_v12  ;;  %1641 = vst.msk [vmem:[#allocation2 + $0x274] sm:$0xf] %vm277_vm5, %v1577_v10  ;;  %v2617_v46 = vsel %vm5027_vm6, %v2615_v57, %v2616_v54  ;;  %v2618_v13 = vrot.slane %v2616_v54, 4  ;;  %v2625_v34 = vrot.slane %v2508_v48, 5 }
 0x159   : > { %1911 = vst.msk [vmem:[#allocation2 + $0xd0] sm:$0xf] %vm766_vm7, %v1826_v14  ;;  %v2509_v24 = vld [vmem:[%s4677_s25 + $0x7c] sm:$0xf]  ;;  %v2510_v11 = vld [vmem:[%s4677_s25 + $0x80] sm:$0xf] }
 0x15a   : > { %2699 = vst.msk [vmem:[#allocation2 + $0x1c8] sm:$0xf] %vm277_vm5, %v2617_v46  ;;  %v2620_v22 = vsel %vm5027_vm6, %v2618_v13, %v2619_v15  ;;  %v2621_v61 = vrot.slane %v2619_v15, 4  ;;  %v2624_v18 = vrot.slane %v2622_v55, 4  ;;  %v2628_v43 = vrot.slane %v2509_v24, 5  ;;  %v1130_v16 = vpop.permute.xlu0 %1129 }
 0x15b   : > { %v2511_v28 = vld [vmem:[%s4677_s25 + $0x84] sm:$0xf]  ;;  %786 = vst.msk [vmem:[#allocation2 + $0x17c] sm:$0xf] %vm766_vm7, %v709_v60  ;;  %v2627_v3 = vrot.slane %v2625_v34, 4  ;;  %v2631_v29 = vrot.slane %v2510_v11, 5  ;;  %v2381_v36 = vpop.permute.xlu1 %2380 }
 0x15c   : > { %2700 = vst.msk [vmem:[#allocation2 + $0x1dc] sm:$0xf] %vm277_vm5, %v2620_v22  ;;  %v2512_v5 = vld [vmem:[%s4677_s25 + $0x88] sm:$0xf]  ;;  %v2634_v38 = vrot.slane %v2511_v28, 5  ;;  %v2757_v40 = vld [vmem:[#allocation2 + $0x140] sm:$0xff]  ;;  %v2623_v39 = vsel %vm5027_vm6, %v2621_v61, %v2622_v55  ;;  %v2626_v37 = vsel %vm5027_vm6, %v2624_v18, %v2625_v34 }
 0x15d   : > { %v4574_v52 = vld [vmem:[#allocation2 + $0x144] ss:$20 sps:$4 sm:$0xff]   ;;  %v2630_v30 = vrot.slane %v2628_v43, 4  ;;  %2460 = vst.msk [vmem:[#allocation2 + $0xd4] sm:$0xf] %vm766_vm7, %v2375_v45  ;;  %v4098_v33 = vcombine.low %v2757_v40, %v2760_v44  ;;  %v2629_v21 = vsel %vm5027_vm6, %v2627_v3, %v2628_v43  ;;  %v2633_v20 = vrot.slane %v2631_v29, 4 }
 0x15e   : > { %2701 = vst.msk [vmem:[#allocation2 + $0x1f0] sm:$0xf] %vm277_vm5, %v2623_v39  ;;  %2702 = vst.msk [vmem:[#allocation2 + $0x204] sm:$0xf] %vm277_vm5, %v2626_v37  ;;  %v2636_v47 = vrot.slane %v2634_v38, 4  ;;  %3572 = vmatprep.mubr.bf16.mxu0 %v4574_v52  ;;  %v2637_v19 = vrot.slane %v2512_v5, 5  ;;  %v1830_v17 = vpop.permute.xlu0 %1829 }
 0x15f   : > { %v2513_v2 = vld [vmem:[%s4677_s25 + $0x8c] sm:$0xf]  ;;  %v2514_v59 = vld [vmem:[%s4677_s25 + $0x90] sm:$0x1]  ;;  %v2632_v63 = vsel %vm5027_vm6, %v2630_v30, %v2631_v29  ;;  %2703 = vst.msk [vmem:[#allocation2 + $0x218] sm:$0xf] %vm277_vm5, %v2629_v21  ;;  %3573 = vmatmul.mubr.bf16.gmra.mxu0 %v4098_v33  ;;  %v2635_v26 = vsel %vm5027_vm6, %v2633_v20, %v2634_v38  ;;  %v713_v53 = vpop.permute.xlu1 %712 }
 0x160   : > { %1208 = vst.msk [vmem:[#allocation2 + $0x180] sm:$0xf] %vm766_vm7, %v1132_v50  ;;  %v2640_v9 = vrot.slane %v2513_v2, 5  ;;  %v2643_v25 = vrot.slane %v2514_v59, 5  ;;  %v2638_v58 = vsel %vm5027_vm6, %v2636_v47, %v2637_v19  ;;  %v2639_v31 = vrot.slane %v2637_v19, 4  ;;  %v2743_v62 = vld [vmem:[#allocation2 + $0xe4] sm:$0xff] }
 0x161   : > { %2704 = vst.msk [vmem:[#allocation2 + $0x22c] sm:$0xf] %vm277_vm5, %v2632_v63  ;;  %2705 = vst.msk [vmem:[#allocation2 + $0x240] sm:$0xf] %vm277_vm5, %v2635_v26  ;;  %v4592_v40 = vld [vmem:[#allocation2 + $0x10] ss:$20 sps:$4 sm:$0xff]  }
 0x162   : > { %785 = vst.msk [vmem:[#allocation2 + $0x168] sm:$0xf] %vm766_vm7, %v707_v4  ;;  %v2642_v23 = vrot.slane %v2640_v9, 4  ;;  %v2641_v0 = vsel %vm5027_vm6, %v2639_v31, %v2640_v9  ;;  %1914 = vst.msk [vmem:[#allocation2 + $0x10c] sm:$0xf] %vm766_vm7, %v1832_v32  ;;  %v2379_v1 = vpop.permute.xlu0 %2378  ;;  %v4281_v31 = vpop.f32.mrf.mxu1 }
 0x163   : > { %2706 = vst.msk [vmem:[#allocation2 + $0x254] sm:$0xf] %vm277_vm5, %v2638_v58  ;;  %2707 = vst.msk [vmem:[#allocation2 + $0x268] sm:$0xf] %vm277_vm5, %v2641_v0  ;;  %v1136_v6 = vpop.permute.xlu1 %1135  ;;  %v4593_v2 = vld [vmem:[#allocation2 + $0x38] ss:$20 sps:$4 sm:$0xff]  }
 0x164   : > { %v2644_v42 = vsel %vm5027_vm6, %v2642_v23, %v2643_v25  ;;  %v2740_v41 = vld [vmem:[#allocation2 + $0xd0] sm:$0xff]  ;;  %1207 = vst.msk [vmem:[#allocation2 + $0x16c] sm:$0xf] %vm766_vm7, %v1130_v16  ;;  %2463 = vst.msk [vmem:[#allocation2 + $0x110] sm:$0xf] %vm766_vm7, %v2381_v36 }
 0x165   : > { %v4576_v8 = vld [vmem:[#allocation2 + $0xd4] ss:$20 sps:$4 sm:$0xff]   ;;  %2708 = vst.msk [vmem:[#allocation2 + $0x27c] sm:$0xf] %vm277_vm5, %v2644_v42  ;;  %v4085_v7 = vcombine.low %v2740_v41, %v2743_v62  ;;  %v4600_v32 = vld [vmem:[#allocation2 + $0xb0] ss:$20 sps:$4 sm:$0xff]   ;;  %v4282_v41 = vpop.f32.mrf.mxu1 }
 0x166   : > { %3709 = vmatprep.mubr.bf16.mxu1 %v4576_v8  ;;  %1913 = vst.msk [vmem:[#allocation2 + $0xf8] sm:$0xf] %vm766_vm7, %v1830_v17  ;;  %788 = vst.msk [vmem:[#allocation2 + $0x1a4] sm:$0xf] %vm766_vm7, %v713_v53  ;;  %v711_v35 = vpop.permute.xlu0 %710  ;;  %v4596_v59 = vld [vmem:[#allocation2 + $0x60] ss:$20 sps:$4 sm:$0xff]   ;;  %v4209_v17 = vpop.f32.mrf.mxu0 }
 0x167   : > { %3710 = vmatmul.mubr.bf16.gmra.mxu1 %v4085_v7  ;;  %v2766_v27 = vld [vmem:[#allocation2 + $0x17c] sm:$0xff]  ;;  %2462 = vst.msk [vmem:[#allocation2 + $0xfc] sm:$0xf] %vm766_vm7, %v2379_v1  ;;  %1210 = vst.msk [vmem:[#allocation2 + $0x1a8] sm:$0xf] %vm766_vm7, %v1136_v6  ;;  %v1836_v49 = vpop.permute.xlu1 %1835  ;;  %v7117_v7 = vadd.f32 %v4282_v41, %v4281_v31  ;;  %v4284_v53 = vpop.f32.mrf.mxu1 }
 0x168   : > { %787 = vst.msk [vmem:[#allocation2 + $0x190] sm:$0xf] %vm766_vm7, %v711_v35  ;;  %1916 = vst.msk [vmem:[#allocation2 + $0x134] sm:$0xf] %vm766_vm7, %v1836_v49  ;;  %v4597_v23 = vld [vmem:[#allocation2 + $0x88] ss:$20 sps:$4 sm:$0xff]  }
 0x169   : > { %7737 = vst [vmem:[#allocation5_spill] sm:$0xff] %v7117_v7  ;;  %v4601_v49 = vld [vmem:[#allocation2 + $0xd8] ss:$20 sps:$4 sm:$0xff]  }
 0x16a   : > { %v1134_v12 = vpop.permute.xlu0 %1133 }
 0x16b   : > { %v2763_v51 = vld [vmem:[#allocation2 + $0x168] sm:$0xff]  ;;  %1209 = vst.msk [vmem:[#allocation2 + $0x194] sm:$0xf] %vm766_vm7, %v1134_v12  ;;  %v2385_v13 = vpop.permute.xlu1 %2384  ;;  %v4604_v12 = vld [vmem:[#allocation2 + $0x100] ss:$20 sps:$4 sm:$0xff]  }
 0x16c   : > { %v4579_v56 = vld [vmem:[#allocation2 + $0x16c] ss:$20 sps:$4 sm:$0xff]   ;;  %v4103_v57 = vcombine.low %v2763_v51, %v2766_v27  ;;  %2465 = vst.msk [vmem:[#allocation2 + $0x138] sm:$0xf] %vm766_vm7, %v2385_v13  ;;  %v4210_v51 = vpop.f32.mrf.mxu0  ;;  %v4285_v27 = vpop.f32.mrf.mxu1 }
 0x16d   : > { %3580 = vmatprep.mubr.bf16.mxu0 %v4579_v56  ;;  %v2749_v10 = vld [vmem:[#allocation2 + $0x10c] sm:$0xff]  ;;  %v7123_v56 = vadd.f32 %v4210_v51, %v4209_v17 }
 0x16e   : > { %3581 = vmatmul.mubr.bf16.gmra.mxu0 %v4103_v57  ;;  %v2746_v54 = vld [vmem:[#allocation2 + $0xf8] sm:$0xff]  ;;  %v1834_v15 = vpop.permute.xlu0 %1833  ;;  %v2772_v24 = vld [vmem:[#allocation2 + $0x1a4] sm:$0xff]  ;;  %v7125_v57 = vadd.f32 %v4285_v27, %v4284_v53  ;;  %v4212_v35 = vpop.f32.mrf.mxu0 }
 0x16f   : > { %v4581_v14 = vld [vmem:[#allocation2 + $0xfc] ss:$20 sps:$4 sm:$0xff]   ;;  %v4090_v46 = vcombine.low %v2746_v54, %v2749_v10  ;;  %1915 = vst.msk [vmem:[#allocation2 + $0x120] sm:$0xf] %vm766_vm7, %v1834_v15  ;;  %v717_v48 = vpop.permute.xlu1 %716 }
 0x170   : > { %3717 = vmatprep.mubr.bf16.mxu1 %v4581_v14  ;;  %790 = vst.msk [vmem:[#allocation2 + $0x1cc] sm:$0xf] %vm766_vm7, %v717_v48  ;;  %7738 = vst [vmem:[#allocation18_spill] sm:$0xff] %v7125_v57  ;;  %v4213_v13 = vpop.f32.mrf.mxu0 }
 0x171   : > { %3718 = vmatmul.mubr.bf16.gmra.mxu1 %v4090_v46  ;;  %v7129_v48 = vadd.f32 %v4213_v13, %v4212_v35 }
 0x172   : > { %v2383_v55 = vpop.permute.xlu0 %2382  ;;  %v2769_v34 = vld [vmem:[#allocation2 + $0x190] sm:$0xff] }
 0x173   : > { %v4583_v11 = vld [vmem:[#allocation2 + $0x194] ss:$20 sps:$4 sm:$0xff]   ;;  %2464 = vst.msk [vmem:[#allocation2 + $0x124] sm:$0xf] %vm766_vm7, %v2383_v55  ;;  %v4108_v60 = vcombine.low %v2769_v34, %v2772_v24  ;;  %v1140_v22 = vpop.permute.xlu1 %1139  ;;  %v4287_v34 = vpop.f32.mrf.mxu1 }
 0x174   : > { %3588 = vmatprep.mubr.bf16.mxu0 %v4583_v11  ;;  %1212 = vst.msk [vmem:[#allocation2 + $0x1d0] sm:$0xf] %vm766_vm7, %v1140_v22  ;;  %v2755_v44 = vld [vmem:[#allocation2 + $0x134] sm:$0xff] }
 0x175   : > { %v4288_v11 = vpop.f32.mrf.mxu1 }
 0x176   : > { %3589 = vmatmul.mubr.bf16.gmra.mxu0 %v4108_v60  ;;  %v715_v61 = vpop.permute.xlu0 %714  ;;  %v7135_v60 = vadd.f32 %v4288_v11, %v4287_v34 }
 0x177   : > { %789 = vst.msk [vmem:[#allocation2 + $0x1b8] sm:$0xf] %vm766_vm7, %v715_v61  ;;  %v1840_v18 = vpop.permute.xlu1 %1839  ;;  %v4290_v61 = vpop.f32.mrf.mxu1 }
 0x178   : > { %1918 = vst.msk [vmem:[#allocation2 + $0x15c] sm:$0xf] %vm766_vm7, %v1840_v18  ;;  %7739 = vst [vmem:[#allocation9_spill] sm:$0xff] %v7135_v60  ;;  %v4605_v18 = vld [vmem:[#allocation2 + $0x128] ss:$20 sps:$4 sm:$0xff]  }
 0x17a   : > { %v1138_v43 = vpop.permute.xlu0 %1137  ;;  %v2752_v28 = vld [vmem:[#allocation2 + $0x120] sm:$0xff] }
 0x17b   : > { %v4586_v3 = vld [vmem:[#allocation2 + $0x124] ss:$20 sps:$4 sm:$0xff]   ;;  %1211 = vst.msk [vmem:[#allocation2 + $0x1bc] sm:$0xf] %vm766_vm7, %v1138_v43  ;;  %v4095_v29 = vcombine.low %v2752_v28, %v2755_v44  ;;  %v2389_v5 = vpop.permute.xlu1 %2388  ;;  %v2778_v37 = vld [vmem:[#allocation2 + $0x1cc] sm:$0xff] }
 0x17c   : > { %3725 = vmatprep.mubr.bf16.mxu1 %v4586_v3  ;;  %2467 = vst.msk [vmem:[#allocation2 + $0x160] sm:$0xf] %vm766_vm7, %v2389_v5  ;;  %v4608_v43 = vld [vmem:[#allocation2 + $0x150] ss:$20 sps:$4 sm:$0xff]   ;;  %v4291_v5 = vpop.f32.mrf.mxu1 }
 0x17d   : > { %3726 = vmatmul.mubr.bf16.gmra.mxu1 %v4095_v29 }
 0x17e   : > { %v1838_v38 = vpop.permute.xlu0 %1837 }
 0x17f   : > { %1917 = vst.msk [vmem:[#allocation2 + $0x148] sm:$0xf] %vm766_vm7, %v1838_v38  ;;  %v1844_v45 = vpop.permute.xlu1 %1843 }
 0x180   : > { %1920 = vst.msk [vmem:[#allocation2 + $0x184] sm:$0xf] %vm766_vm7, %v1844_v45  ;;  %v7139_v45 = vadd.f32 %v4291_v5, %v4290_v61 }
 0x182   : > { %v2387_v52 = vpop.permute.xlu0 %2386  ;;  %v2775_v39 = vld [vmem:[#allocation2 + $0x1b8] sm:$0xff]  ;;  %7740 = vst [vmem:[#allocation16_spill] sm:$0xff] %v7139_v45 }
 0x183   : > { %v4588_v30 = vld [vmem:[#allocation2 + $0x1bc] ss:$20 sps:$4 sm:$0xff]   ;;  %2466 = vst.msk [vmem:[#allocation2 + $0x14c] sm:$0xf] %vm766_vm7, %v2387_v52  ;;  %v4113_v33 = vcombine.low %v2775_v39, %v2778_v37  ;;  %v2393_v21 = vpop.permute.xlu1 %2392  ;;  %v4215_v52 = vpop.f32.mrf.mxu0 }
 0x184   : > { %3596 = vmatprep.mubr.bf16.mxu0 %v4588_v30  ;;  %2469 = vst.msk [vmem:[#allocation2 + $0x188] sm:$0xf] %vm766_vm7, %v2393_v21  ;;  %v2761_v19 = vld [vmem:[#allocation2 + $0x15c] sm:$0xff] }
 0x185   : > { %3597 = vmatmul.mubr.bf16.gmra.mxu0 %v4113_v33  ;;  %v4216_v37 = vpop.f32.mrf.mxu0 }
 0x186   : > { %v1842_v20 = vpop.permute.xlu0 %1841  ;;  %4445 = vmatprep.mubr.msk.bf16.mxu0 %vm3427_vm8, %v4592_v40  ;;  %v7145_v30 = vadd.f32 %v4216_v37, %v4215_v52 }
 0x187   : > { %1919 = vst.msk [vmem:[#allocation2 + $0x170] sm:$0xf] %vm766_vm7, %v1842_v20  ;;  %v1848_v47 = vpop.permute.xlu1 %1847  ;;  %v4218_v21 = vpop.f32.mrf.mxu0  ;;  %v4609_v20 = vld [vmem:[#allocation2 + $0x178] ss:$20 sps:$4 sm:$0xff]  }
 0x188   : > { %1922 = vst.msk [vmem:[#allocation2 + $0x1ac] sm:$0xf] %vm766_vm7, %v1848_v47  ;;  %v4612_v47 = vld [vmem:[#allocation2 + $0x1a0] ss:$20 sps:$4 sm:$0xff]  }
 0x18a   : > { %v2391_v50 = vpop.permute.xlu0 %2390  ;;  %v2758_v63 = vld [vmem:[#allocation2 + $0x148] sm:$0xff] }
 0x18b   : > { %v4590_v26 = vld [vmem:[#allocation2 + $0x14c] ss:$20 sps:$4 sm:$0xff]   ;;  %2468 = vst.msk [vmem:[#allocation2 + $0x174] sm:$0xf] %vm766_vm7, %v2391_v50  ;;  %v4100_v9 = vcombine.low %v2758_v63, %v2761_v19  ;;  %v2397_v25 = vpop.permute.xlu1 %2396  ;;  %v2767_v42 = vld [vmem:[#allocation2 + $0x184] sm:$0xff]  ;;  %v4219_v19 = vpop.f32.mrf.mxu0 }
 0x18c   : > { %3733 = vmatprep.mubr.bf16.mxu1 %v4590_v26  ;;  %2471 = vst.msk [vmem:[#allocation2 + $0x1b0] sm:$0xf] %vm766_vm7, %v2397_v25 }
 0x18d   : > { %3734 = vmatmul.mubr.bf16.gmra.mxu1 %v4100_v9  ;;  %4446 = vmatmul.mubr.msk.bf16.vlgmr.msra.gmra.mxu0 %vm3427_vm8, %v4593_v2  ;;  %v7149_v9 = vadd.f32 %v4219_v19, %v4218_v21 }
 0x18e   : > { %v1846_v4 = vpop.permute.xlu0 %1845  ;;  %4449 = vmatprep.mubr.msk.bf16.mxu0 %vm3427_vm8, %v4596_v59 }
 0x18f   : > { %1921 = vst.msk [vmem:[#allocation2 + $0x198] sm:$0xf] %vm766_vm7, %v1846_v4  ;;  %v1852_v58 = vpop.permute.xlu1 %1851  ;;  %v4293_v4 = vpop.f32.mrf.mxu1 }
 0x190   : > { %1924 = vst.msk [vmem:[#allocation2 + $0x1d4] sm:$0xf] %vm766_vm7, %v1852_v58 }
 0x191   : > { %v4294_v31 = vpop.f32.mrf.mxu1 }
 0x192   : > { %v2395_v0 = vpop.permute.xlu0 %2394  ;;  %v2764_v62 = vld [vmem:[#allocation2 + $0x170] sm:$0xff] }
 0x193   : > { %v4594_v16 = vld [vmem:[#allocation2 + $0x174] ss:$20 sps:$4 sm:$0xff]   ;;  %2470 = vst.msk [vmem:[#allocation2 + $0x19c] sm:$0xf] %vm766_vm7, %v2395_v0  ;;  %v4105_v8 = vcombine.low %v2764_v62, %v2767_v42  ;;  %v2401_v36 = vpop.permute.xlu1 %2400  ;;  %v2773_v14 = vld [vmem:[#allocation2 + $0x1ac] sm:$0xff]  ;;  %v4296_v0 = vpop.f32.mrf.mxu1 }
 0x194   : > { %3741 = vmatprep.mubr.bf16.mxu1 %v4594_v16  ;;  %2473 = vst.msk [vmem:[#allocation2 + $0x1d8] sm:$0xf] %vm766_vm7, %v2401_v36  ;;  %v4613_v62 = vld [vmem:[#allocation2 + $0x1c8] ss:$20 sps:$4 sm:$0xff]   ;;  %v4616_v42 = vld [vmem:[#allocation2 + $0x1f0] ss:$20 sps:$4 sm:$0xff]   ;;  %v4221_v27 = vpop.f32.mrf.mxu0 }
 0x195   : > { %3742 = vmatmul.mubr.bf16.gmra.mxu1 %v4105_v8  ;;  %4450 = vmatmul.mubr.msk.bf16.gmra.mxu0 %vm3427_vm8, %v4597_v23  ;;  %v7155_v23 = vadd.f32 %v4294_v31, %v4293_v4  ;;  %v4297_v17 = vpop.f32.mrf.mxu1 }
 0x196   : > { %v1850_v1 = vpop.permute.xlu0 %1849  ;;  %4453 = vmatprep.mubr.msk.bf16.mxu0 %vm3427_vm8, %v4600_v32  ;;  %v4222_v35 = vpop.f32.mrf.mxu0 }
 0x197   : > { %1923 = vst.msk [vmem:[#allocation2 + $0x1c0] sm:$0xf] %vm766_vm7, %v1850_v1  ;;  %v1856_v6 = vpop.permute.xlu1 %1855  ;;  %7741 = vst [vmem:[#allocation17_spill] sm:$0xff] %v7155_v23  ;;  %v7159_v1 = vadd.f32 %v4297_v17, %v4296_v0 }
 0x198   : > { %1926 = vst.msk [vmem:[#allocation2 + $0x1fc] sm:$0xf] %vm766_vm7, %v1856_v6 }
 0x199   : > { %7742 = vst [vmem:[#allocation7_spill] sm:$0xff] %v7159_v1 }
 0x19a   : > { %v2399_v54 = vpop.permute.xlu0 %2398  ;;  %v2770_v10 = vld [vmem:[#allocation2 + $0x198] sm:$0xff] }
 0x19b   : > { %v4598_v46 = vld [vmem:[#allocation2 + $0x19c] ss:$20 sps:$4 sm:$0xff]   ;;  %2472 = vst.msk [vmem:[#allocation2 + $0x1c4] sm:$0xf] %vm766_vm7, %v2399_v54  ;;  %v4110_v15 = vcombine.low %v2770_v10, %v2773_v14  ;;  %v2405_v55 = vpop.permute.xlu1 %2404  ;;  %v2779_v3 = vld [vmem:[#allocation2 + $0x1d4] sm:$0xff] }
 0x19c   : > { %3749 = vmatprep.mubr.bf16.mxu1 %v4598_v46  ;;  %2475 = vst.msk [vmem:[#allocation2 + $0x200] sm:$0xf] %vm766_vm7, %v2405_v55  ;;  %v4617_v54 = vld [vmem:[#allocation2 + $0x218] ss:$20 sps:$4 sm:$0xff]   ;;  %v4620_v10 = vld [vmem:[#allocation2 + $0x240] ss:$20 sps:$4 sm:$0xff]  }
 0x19d   : > { %3750 = vmatmul.mubr.bf16.gmra.mxu1 %v4110_v15  ;;  %4454 = vmatmul.mubr.msk.bf16.gmra.mxu0 %vm3427_vm8, %v4601_v49  ;;  %v7165_v49 = vadd.f32 %v4222_v35, %v4221_v27 }
 0x19e   : > { %v1854_v24 = vpop.permute.xlu0 %1853  ;;  %4457 = vmatprep.mubr.msk.bf16.mxu0 %vm3427_vm8, %v4604_v12  ;;  %v4224_v12 = vpop.f32.mrf.mxu0 }
 0x19f   : > { %1925 = vst.msk [vmem:[#allocation2 + $0x1e8] sm:$0xf] %vm766_vm7, %v1854_v24  ;;  %v1860_v22 = vpop.permute.xlu1 %1859 }
 0x1a0   : > { %1928 = vst.msk [vmem:[#allocation2 + $0x224] sm:$0xf] %vm766_vm7, %v1860_v22  ;;  %v4225_v55 = vpop.f32.mrf.mxu0  ;;  %v4299_v11 = vpop.f32.mrf.mxu1 }
 0x1a1   : > { %v7168_v24 = vadd.f32 %v4225_v55, %v4224_v12 }
 0x1a2   : > { %v2403_v28 = vpop.permute.xlu0 %2402  ;;  %v2776_v44 = vld [vmem:[#allocation2 + $0x1c0] sm:$0xff]  ;;  %v4300_v22 = vpop.f32.mrf.mxu1 }
 0x1a3   : > { %v4602_v29 = vld [vmem:[#allocation2 + $0x1c4] ss:$20 sps:$4 sm:$0xff]   ;;  %2474 = vst.msk [vmem:[#allocation2 + $0x1ec] sm:$0xf] %vm766_vm7, %v2403_v28  ;;  %v4115_v38 = vcombine.low %v2776_v44, %v2779_v3  ;;  %v2409_v40 = vpop.permute.xlu1 %2408  ;;  %v2785_v50 = vld [vmem:[#allocation2 + $0x1fc] sm:$0xff]  ;;  %v7172_v61 = vadd.f32 %v4300_v22, %v4299_v11 }
 0x1a4   : > { %3757 = vmatprep.mubr.bf16.mxu1 %v4602_v29  ;;  %2477 = vst.msk [vmem:[#allocation2 + $0x228] sm:$0xf] %vm766_vm7, %v2409_v40 }
 0x1a5   : > { %3758 = vmatmul.mubr.bf16.gmra.mxu1 %v4115_v38  ;;  %4458 = vmatmul.mubr.msk.bf16.gmra.mxu0 %vm3427_vm8, %v4605_v18  ;;  %7743 = vst [vmem:[#allocation10_spill] sm:$0xff] %v7172_v61  ;;  %v4302_v18 = vpop.f32.mrf.mxu1 }
 0x1a6   : > { %v1858_v39 = vpop.permute.xlu0 %1857  ;;  %4461 = vmatprep.mubr.msk.bf16.mxu0 %vm3427_vm8, %v4608_v43  ;;  %v4621_v43 = vld [vmem:[#allocation2 + $0x268] ss:$20 sps:$4 sm:$0xff]  }
 0x1a7   : > { %1927 = vst.msk [vmem:[#allocation2 + $0x210] sm:$0xf] %vm766_vm7, %v1858_v39  ;;  %v1864_v33 = vpop.permute.xlu1 %1863  ;;  %v4303_v29 = vpop.f32.mrf.mxu1 }
 0x1a8   : > { %1930 = vst.msk [vmem:[#allocation2 + $0x24c] sm:$0xf] %vm766_vm7, %v1864_v33  ;;  %v7174_v38 = vadd.f32 %v4303_v29, %v4302_v18 }
 0x1aa   : > { %v2407_v2 = vpop.permute.xlu0 %2406  ;;  %v2782_v59 = vld [vmem:[#allocation2 + $0x1e8] sm:$0xff]  ;;  %7744 = vst [vmem:[#allocation20_spill] sm:$0xff] %v7174_v38 }
 0x1ab   : > { %v4606_v63 = vld [vmem:[#allocation2 + $0x1ec] ss:$20 sps:$4 sm:$0xff]   ;;  %2476 = vst.msk [vmem:[#allocation2 + $0x214] sm:$0xf] %vm766_vm7, %v2407_v2  ;;  %v4120_v26 = vcombine.low %v2782_v59, %v2785_v50  ;;  %v2413_v25 = vpop.permute.xlu1 %2412  ;;  %v2791_v8 = vld [vmem:[#allocation2 + $0x224] sm:$0xff] }
 0x1ac   : > { %3765 = vmatprep.mubr.bf16.mxu1 %v4606_v63  ;;  %2479 = vst.msk [vmem:[#allocation2 + $0x250] sm:$0xf] %vm766_vm7, %v2413_v25 }
 0x1ad   : > { %3766 = vmatmul.mubr.bf16.gmra.mxu1 %v4120_v26  ;;  %4462 = vmatmul.mubr.msk.bf16.gmra.mxu0 %vm3427_vm8, %v4609_v20 }
 0x1ae   : > { %4465 = vmatprep.mubr.msk.bf16.mxu0 %vm3427_vm8, %v4612_v47  ;;  %v4227_v40 = vpop.f32.mrf.mxu0 }
 0x1b0   : > { %v4228_v52 = vpop.f32.mrf.mxu0 }
 0x1b1   : > { %v1862_v58 = vpop.permute.xlu0 %1861  ;;  %v7177_v39 = vadd.f32 %v4228_v52, %v4227_v40 }
 0x1b2   : > { %1929 = vst.msk [vmem:[#allocation2 + $0x238] sm:$0xf] %vm766_vm7, %v1862_v58  ;;  %v2788_v41 = vld [vmem:[#allocation2 + $0x210] sm:$0xff]  ;;  %v4230_v37 = vpop.f32.mrf.mxu0 }
 0x1b3   : > { %v4610_v36 = vld [vmem:[#allocation2 + $0x214] ss:$20 sps:$4 sm:$0xff]   ;;  %v4125_v53 = vcombine.low %v2788_v41, %v2791_v8  ;;  %v2797_v13 = vld [vmem:[#allocation2 + $0x24c] sm:$0xff] }
 0x1b4   : > { %v1868_v32 = vpop.permute.xlu1 %1867  ;;  %3773 = vmatprep.mubr.bf16.mxu1 %v4610_v36  ;;  %v4231_v33 = vpop.f32.mrf.mxu0 }
 0x1b5   : > { %1932 = vst.msk [vmem:[#allocation2 + $0x274] sm:$0xf] %vm766_vm7, %v1868_v32  ;;  %v2411_v16 = vpop.permute.xlu0 %2410  ;;  %3774 = vmatmul.mubr.bf16.gmra.mxu1 %v4125_v53  ;;  %4466 = vmatmul.mubr.msk.bf16.gmra.mxu0 %vm3427_vm8, %v4613_v62  ;;  %v7179_v21 = vadd.f32 %v4231_v33, %v4230_v37 }
 0x1b6   : > { %2478 = vst.msk [vmem:[#allocation2 + $0x23c] sm:$0xf] %vm766_vm7, %v2411_v16  ;;  %4469 = vmatprep.mubr.msk.bf16.mxu0 %vm3427_vm8, %v4616_v42 }
 0x1b8   : > { %v2417_v51 = vpop.permute.xlu1 %2416 }
 0x1b9   : > { %2481 = vst.msk [vmem:[#allocation2 + $0x278] sm:$0xf] %vm766_vm7, %v2417_v51 }
 0x1ba   : > { %v7185_v19 = vpop.f32.mrf.mxu1 }
 0x1bc   : > { %v1866_v6 = vpop.permute.xlu0 %1865  ;;  %v7187_v26 = vpop.f32.mrf.mxu1 }
 0x1bd   : > { %1931 = vst.msk [vmem:[#allocation2 + $0x260] sm:$0xf] %vm766_vm7, %v1866_v6  ;;  %v2794_v46 = vld [vmem:[#allocation2 + $0x238] sm:$0xff]  ;;  %4470 = vmatmul.mubr.msk.bf16.gmra.mxu0 %vm3427_vm8, %v4617_v54 }
 0x1be   : > { %v4614_v15 = vld [vmem:[#allocation2 + $0x23c] ss:$20 sps:$4 sm:$0xff]   ;;  %v4130_v34 = vcombine.low %v2794_v46, %v2797_v13  ;;  %4473 = vmatprep.mubr.msk.bf16.mxu0 %vm3427_vm8, %v4620_v10  ;;  %v7189_v25 = vpop.f32.mrf.mxu1 }
 0x1bf   : > { %3781 = vmatprep.mubr.bf16.mxu1 %v4614_v15 }
 0x1c0   : > { %v2415_v14 = vpop.permute.xlu0 %2414  ;;  %3782 = vmatmul.mubr.bf16.gmra.mxu1 %v4130_v34  ;;  %v2803_v44 = vld [vmem:[#allocation2 + $0x274] sm:$0xff]  ;;  %v7193_v32 = vpop.f32.mrf.mxu1 }
 0x1c1   : > { %2480 = vst.msk [vmem:[#allocation2 + $0x264] sm:$0xf] %vm766_vm7, %v2415_v14 }
 0x1c5   : > { %4474 = vmatmul.mubr.msk.bf16.gmra.mxu0 %vm3427_vm8, %v4621_v43 }
 0x1c7   : > { %v4233_v20 = vpop.f32.mrf.mxu0 }
 0x1c8   : > { %v2800_v28 = vld [vmem:[#allocation2 + $0x260] sm:$0xff] }
 0x1c9   : > { %v4618_v3 = vld [vmem:[#allocation2 + $0x264] ss:$20 sps:$4 sm:$0xff]   ;;  %v4135_v5 = vcombine.low %v2800_v28, %v2803_v44  ;;  %v4234_v47 = vpop.f32.mrf.mxu0 }
 0x1ca   : > { %3789 = vmatprep.mubr.bf16.mxu1 %v4618_v3  ;;  %v7181_v2 = vadd.f32 %v4234_v47, %v4233_v20 }
 0x1cb   : > { %3790 = vmatmul.mubr.bf16.gmra.mxu1 %v4135_v5  ;;  %v4236_v59 = vpop.f32.mrf.mxu0 }
 0x1cd   : > { %v4237_v50 = vpop.f32.mrf.mxu0 }
 0x1ce   : > { %v7183_v63 = vadd.f32 %v4237_v50, %v4236_v59 }
 0x1d5   : > { %v4327_v62 = vpop.f32.mrf.mxu1 }
 0x1d7   : > { %v4328_v41 = vpop.f32.mrf.mxu1 }
 0x1d8   : > { %v4329_v60 = vadd.f32 %v4328_v41, %v4327_v62 }
 0x1d9   : > { %v4330_v8 = vpop.f32.mrf.mxu1 }
 0x1db   : > { %v4331_v17 = vpop.f32.mrf.mxu1 }
 0x1dc   : > { %v4332_v41 = vadd.f32 %v4331_v17, %v4330_v8 }
 0x1e0   : > { %v4239_v4 = vpop.f32.mrf.mxu0 }
 0x1e2   : > { %v4240_v58 = vpop.f32.mrf.mxu0 }
 0x1e3   : > { %v7191_v31 = vadd.f32 %v4240_v58, %v4239_v4 }
 0x1e4   : > { %v4242_v0 = vpop.f32.mrf.mxu0 }
 0x1e6   : > { %v4243_v42 = vpop.f32.mrf.mxu0 }
 0x1e7   : > { %v7195_v16 = vadd.f32 %v4243_v42, %v4242_v0 }
 0x1eb   : > { %v7199_v27 = vpop.f32.mrf.mxu1 }
 0x1ed   : > { %v7203_v54 = vpop.f32.mrf.mxu1 }
 0x1ef   : > { %v7205_v10 = vpop.f32.mrf.mxu1 }
 0x1f1   : > { %v7207_v14 = vpop.f32.mrf.mxu1 }
 0x1f6   : > { %v4245_v36 = vpop.f32.mrf.mxu0 }
 0x1f8   : > { %v4246_v53 = vpop.f32.mrf.mxu0 }
 0x1f9   : > { %v7197_v51 = vadd.f32 %v4246_v53, %v4245_v36 }
 0x1fa   : > { %v4248_v6 = vpop.f32.mrf.mxu0 }
 0x1fc   : > { %v4249_v35 = vpop.f32.mrf.mxu0 }
 0x1fd   : > { %v7201_v12 = vadd.f32 %v4249_v35, %v4248_v6 }
 0x201   : > { %v4339_v46 = vpop.f32.mrf.mxu1 }
 0x203   : > { %v4340_v13 = vpop.f32.mrf.mxu1 }
 0x204   : > { %v4341_v17 = vadd.f32 %v4340_v13, %v4339_v46 }
 0x205   : > { %v7211_v55 = vpop.f32.mrf.mxu1 }
 0x207   : > { %v7215_v11 = vpop.f32.mrf.mxu1 }
 0x20c   : > { %v7209_v15 = vpop.f32.mrf.mxu0 }
 0x20e   : > { %v7213_v34 = vpop.f32.mrf.mxu0 }
 0x210   : > { %v7217_v22 = vpop.f32.mrf.mxu0 }
 0x212   : > { %v7221_v43 = vpop.f32.mrf.mxu0 }
 0x216   : > { %v7219_v18 = vpop.f32.mrf.mxu1 }
 0x218   : > { %v7223_v28 = vpop.f32.mrf.mxu1 }
 0x21a   : > { %v7227_v3 = vpop.f32.mrf.mxu1 }
 0x21c   : > { %v7231_v5 = vpop.f32.mrf.mxu1 }
 0x21f   : > { %v7225_v44 = vpop.f32.mrf.mxu0 }
 0x221   : > { %v7229_v29 = vpop.f32.mrf.mxu0 }
 0x223   : > { %v7233_v40 = vpop.f32.mrf.mxu0 }
 0x224   : > { %7745 = vst [vmem:[#allocation8_spill] sm:$0xff] %v7233_v40 }
 0x225   : > { %v7237_v37 = vpop.f32.mrf.mxu0 }
 0x226   : > { %7746 = vst [vmem:[#allocation22_spill] sm:$0xff] %v7237_v37 }
 0x227   : > { %v7235_v52 = vpop.f32.mrf.mxu1 }
 0x229   : > { %v7239_v33 = vpop.f32.mrf.mxu1 }
 0x22b   : > { %v7243_v47 = vpop.f32.mrf.mxu1 }
 0x22d   : > { %v7247_v50 = vpop.f32.mrf.mxu1 }
 0x22e   : > { %v7241_v20 = vpop.f32.mrf.mxu0 }
 0x230   : > { %v7245_v59 = vpop.f32.mrf.mxu0 }
 0x231   : > { %v7251_v58 = vpop.f32.mrf.mxu1 }
 0x232   : > { %v7249_v4 = vpop.f32.mrf.mxu0 }
 0x233   : > { %v7255_v42 = vpop.f32.mrf.mxu1 }
 0x234   : > { %v7253_v0 = vpop.f32.mrf.mxu0 }
 0x235   : > { %7747 = vst [vmem:[#allocation19_spill] sm:$0xff] %v7253_v0  ;;  %v7259_v53 = vpop.f32.mrf.mxu1 }
 0x236   : > { %v7257_v36 = vpop.f32.mrf.mxu0 }
 0x237   : > { %7748 = vst [vmem:[#allocation21_spill] sm:$0xff] %v7257_v36  ;;  %v7263_v35 = vpop.f32.mrf.mxu1 }
 0x238   : > { %v7261_v6 = vpop.f32.mrf.mxu0 }
 0x239   : > { %7749 = vst [vmem:[#allocation11_spill] sm:$0xff] %v7261_v6  ;;  %v7282_v6 = vld [vmem:[%s7501_s2] ss:$0 sm:$0xff] }
 0x23a   : > { %v7265_v38 = vpop.f32.mrf.mxu0  ;;  %v3511_v62 = vadd.f32 %v7123_v56, %v7282_v6  ;;  %v3527_v13 = vadd.f32 %v7165_v49, %v7282_v6 }
 0x23b   : > { %7750 = vst [vmem:[#allocation25_spill] sm:$0xff] %v7265_v38  ;;  %v3519_v38 = vadd.f32 %v7145_v30, %v7282_v6 }
 0x23c   : > { %v7269_v1 = vpop.f32.mrf.mxu0 }
 0x23d   : > { %v7267_v61 = vpop.f32.mrf.mxu1  ;;  %7751 = vst [vmem:[#allocation23_spill] sm:$0xff] %v7269_v1  ;;  %v4323_v1 = vadd.f32 %v7187_v26, %v7185_v19  ;;  %v3522_v19 = vadd.f32 %v7149_v9, %v7282_v6  ;;  %v4326_v26 = vadd.f32 %v7193_v32, %v7189_v25  ;;  %v3535_v25 = vadd.f32 %v7177_v39, %v7282_v6 }
 0x23f   : > { %v7271_v23 = vpop.f32.mrf.mxu1  ;;  %v3672_v56 = vadd.f32 %v4323_v1, %v3511_v62  ;;  %v3696_v62 = vadd.f32 %v4341_v17, %v3535_v25 }
 0x241   : > { %v7275_v45 = vpop.f32.mrf.mxu1 }
 0x245   : > { %v7273_v57 = vpop.f32.mrf.mxu0 }
 0x246   : > { %7752 = vst [vmem:[#allocation28_spill] sm:$0xff] %v7273_v57  ;;  %v7291_v57 = vpop.f32.mrf.mxu1 }
 0x247   : > { %v7277_v7 = vpop.f32.mrf.mxu0 }
 0x248   : > { %7753 = vst [vmem:[#allocation29_spill] sm:$0xff] %v7277_v7  ;;  %v3680_v7 = vadd.f32 %v4329_v60, %v3519_v38  ;;  %v3514_v38 = vadd.f32 %v7129_v48, %v7282_v6 }
 0x249   : > { %v7284_v36 = vpop.f32.mrf.mxu0 }
 0x24a   : > { %7754 = vst [vmem:[#allocation4_spill] sm:$0xff] %v7284_v36  ;;  %v3675_v48 = vadd.f32 %v4326_v26, %v3514_v38 }
 0x24b   : > { %v7293_v37 = vpop.f32.mrf.mxu0 }
 0x24c   : > { %7755 = vst [vmem:[#allocation24_spill] sm:$0xff] %v7293_v37 }
 0x24d   : > { %v7297_v40 = vpop.f32.mrf.mxu1  ;;  %v4447_v30 = vpop.f32.mrf.mxu0 }
 0x24e   : > { %7756 = vst [vmem:[#allocation30_spill] sm:$0xff] %v7297_v40  ;;  %v3841_v37 = vadd.f32 %v4447_v30, %v3680_v7  ;;  %v3683_v40 = vadd.f32 %v4332_v41, %v3522_v19  ;;  %v4335_v7 = vadd.f32 %v7203_v54, %v7199_v27  ;;  %v3538_v54 = vadd.f32 %v7179_v21, %v7282_v6 }
 0x24f   : > { %v7308_v8 = vpop.f32.mrf.mxu1  ;;  %v3832_v60 = vpop.f32.mrf.mxu0  ;;  %v4353_v19 = vadd.f32 %v7239_v33, %v7235_v52  ;;  %v3543_v33 = vadd.f32 %v7181_v2, %v7282_v6  ;;  %v4350_v2 = vadd.f32 %v7231_v5, %v7227_v3 }
 0x250   : > { %3961 = vst.msk [vmem:[%s7302_s23 + $0x10] sm:$0xff] %vm3427_vm8, %v3841_v37  ;;  %v3833_v36 = vadd.f32 %v3832_v60, %v3672_v56  ;;  %v4344_v37 = vadd.f32 %v7215_v11, %v7211_v55  ;;  %v3530_v11 = vadd.f32 %v7168_v24, %v7282_v6  ;;  %v4347_v60 = vadd.f32 %v7223_v28, %v7219_v18 }
 0x251   : > { %v7314_v0 = vpop.f32.mrf.mxu1  ;;  %v4448_v9 = vpop.f32.mrf.mxu0  ;;  %v4253_v18 = vadd.f32 %v7213_v34, %v7209_v15  ;;  %v3546_v15 = vadd.f32 %v7183_v63, %v7282_v6  ;;  %v4365_v34 = vadd.f32 %v7271_v23, %v7267_v61 }
 0x252   : > { %3959 = vst.msk [vmem:[%s7302_s23] sm:$0xff] %vm3427_vm8, %v3833_v36  ;;  %v3844_v1 = vadd.f32 %v4448_v9, %v3683_v40  ;;  %v4338_v40 = vadd.f32 %v7207_v14, %v7205_v10  ;;  %v3688_v36 = vadd.f32 %v4335_v7, %v3527_v13  ;;  %v3699_v26 = vadd.f32 %v4344_v37, %v3538_v54 }
 0x253   : > { %v7322_v32 = vpop.f32.mrf.mxu1  ;;  %v3835_v46 = vpop.f32.mrf.mxu0  ;;  %v3551_v14 = vadd.f32 %v7191_v31, %v7282_v6  ;;  %v4356_v9 = vadd.f32 %v7247_v50, %v7243_v47  ;;  %v3704_v50 = vadd.f32 %v4347_v60, %v3543_v33  ;;  %v3567_v3 = vadd.f32 %v4253_v18, %v7282_v6  ;;  %v7760_v33 = vld [vmem:[#allocation22_spill] sm:$0xff]  ;;  %v7762_v18 = vld [vmem:[#allocation29_spill] sm:$0xff] }
 0x254   : > { %3962 = vst.msk [vmem:[%s7302_s23 + $0x18] sm:$0xff] %vm3427_vm8, %v3844_v1  ;;  %v3836_v39 = vadd.f32 %v3835_v46, %v3675_v48  ;;  %v3691_v38 = vadd.f32 %v4338_v40, %v3530_v11  ;;  %v3554_v1 = vadd.f32 %v7195_v16, %v7282_v6  ;;  %v3707_v61 = vadd.f32 %v4350_v2, %v3546_v15  ;;  %v7764_v15 = vld [vmem:[#allocation11_spill] sm:$0xff] }
 0x255   : > { %v7330_v41 = vpop.f32.mrf.mxu1  ;;  %v4451_v27 = vpop.f32.mrf.mxu0  ;;  %v3712_v25 = vadd.f32 %v4353_v19, %v3551_v14  ;;  %v3559_v54 = vadd.f32 %v7197_v51, %v7282_v6  ;;  %v4368_v40 = vadd.f32 %v7291_v57, %v7275_v45  ;;  %v4259_v45 = vadd.f32 %v7229_v29, %v7225_v44  ;;  %v7757_v14 = vld [vmem:[#allocation19_spill] sm:$0xff]  ;;  %v7758_v29 = vld [vmem:[#allocation30_spill] sm:$0xff] }
 0x256   : > { %3960 = vst.msk [vmem:[%s7302_s23 + $0x8] sm:$0xff] %vm3427_vm8, %v3836_v39  ;;  %v3857_v49 = vadd.f32 %v4451_v27, %v3696_v62  ;;  %v3715_v13 = vadd.f32 %v4356_v9, %v3554_v1  ;;  %v4256_v39 = vadd.f32 %v7221_v43, %v7217_v22  ;;  %v4359_v62 = vadd.f32 %v7255_v42, %v7251_v58 }
 0x257   : > { %v7338_v30 = vpop.f32.mrf.mxu1  ;;  %v3848_v55 = vpop.f32.mrf.mxu0  ;;  %v3728_v43 = vadd.f32 %v4365_v34, %v3567_v3  ;;  %v4265_v58 = vadd.f32 %v7245_v59, %v7241_v20  ;;  %v3562_v20 = vadd.f32 %v7201_v12, %v7282_v6  ;;  %v4268_v44 = vadd.f32 %v7757_v14, %v7249_v4 }
 0x258   : > { %3965 = vst.msk [vmem:[%s7302_s23 + $0x30] sm:$0xff] %vm3427_vm8, %v3857_v49  ;;  %v3849_v21 = vadd.f32 %v3848_v55, %v3688_v36  ;;  %v3570_v36 = vadd.f32 %v4256_v39, %v7282_v6  ;;  %v4362_v55 = vadd.f32 %v7263_v35, %v7259_v53  ;;  %v3720_v57 = vadd.f32 %v4359_v62, %v3559_v54 }
 0x259   : > { %v7346_v56 = vpop.f32.mrf.mxu1  ;;  %v4452_v10 = vpop.f32.mrf.mxu0  ;;  %v4377_v59 = vadd.f32 %v7338_v30, %v7330_v41  ;;  %v4371_v60 = vadd.f32 %v7308_v8, %v7758_v29  ;;  %v3575_v30 = vadd.f32 %v4259_v45, %v7282_v6 }
 0x25a   : > { %3963 = vst.msk [vmem:[%s7302_s23 + $0x20] sm:$0xff] %vm3427_vm8, %v3849_v21  ;;  %v3860_v24 = vadd.f32 %v4452_v10, %v3699_v26  ;;  %v3731_v35 = vadd.f32 %v4368_v40, %v3570_v36  ;;  %v3583_v21 = vadd.f32 %v4265_v58, %v7282_v6  ;;  %v3723_v41 = vadd.f32 %v4362_v55, %v3562_v20  ;;  %v7767_v36 = vld [vmem:[#allocation25_spill] sm:$0xff]  ;;  %v7768_v55 = vld [vmem:[#allocation23_spill] sm:$0xff] }
 0x25b   : > { %v7354_v17 = vpop.f32.mrf.mxu1  ;;  %v3851_v52 = vpop.f32.mrf.mxu0 }
 0x25c   : > { %3966 = vst.msk [vmem:[%s7302_s23 + $0x38] sm:$0xff] %vm3427_vm8, %v3860_v24  ;;  %v3852_v31 = vadd.f32 %v3851_v52, %v3691_v38  ;;  %v7759_v52 = vld [vmem:[#allocation8_spill] sm:$0xff]  ;;  %v3744_v8 = vadd.f32 %v4377_v59, %v3583_v21 }
 0x25d   : > { %v7364_v28 = vpop.f32.mrf.mxu1  ;;  %v4455_v7 = vpop.f32.mrf.mxu0  ;;  %v4262_v9 = vadd.f32 %v7760_v33, %v7759_v52  ;;  %v7770_v52 = vld [vmem:[#allocation5_spill] sm:$0xff] }
 0x25e   : > { %3964 = vst.msk [vmem:[%s7302_s23 + $0x28] sm:$0xff] %vm3427_vm8, %v3852_v31  ;;  %v3873_v47 = vadd.f32 %v4455_v7, %v3712_v25  ;;  %v4380_v31 = vadd.f32 %v7354_v17, %v7346_v56  ;;  %v7761_v25 = vld [vmem:[#allocation28_spill] sm:$0xff]  ;;  %v3736_v56 = vadd.f32 %v4371_v60, %v3575_v30  ;;  %v7763_v17 = vld [vmem:[#allocation21_spill] sm:$0xff]  ;;  %v3607_v33 = vadd.f32 %v7770_v52, %v7282_v6 }
 0x25f   : > { %v7372_v48 = vpop.f32.mrf.mxu1  ;;  %v3864_v46 = vpop.f32.mrf.mxu0  ;;  %v4277_v7 = vadd.f32 %v7762_v18, %v7761_v25  ;;  %v4271_v34 = vadd.f32 %v7764_v15, %v7763_v17  ;;  %v3578_v3 = vadd.f32 %v4262_v9, %v7282_v6  ;;  %v7771_v18 = vld [vmem:[#allocation16_spill] sm:$0xff] }
 0x260   : > { %3969 = vst.msk [vmem:[%s7302_s23 + $0x50] sm:$0xff] %vm3427_vm8, %v3873_v47  ;;  %v3865_v16 = vadd.f32 %v3864_v46, %v3704_v50  ;;  %v3586_v47 = vadd.f32 %v4268_v44, %v7282_v6  ;;  %v4374_v50 = vadd.f32 %v7322_v32, %v7314_v0  ;;  %v4383_v40 = vadd.f32 %v7372_v48, %v7364_v28 }
 0x261   : > { %v7381_v5 = vpop.f32.mrf.mxu1  ;;  %v4456_v37 = vpop.f32.mrf.mxu0  ;;  %v3599_v0 = vadd.f32 %v4277_v7, %v7282_v6  ;;  %v3591_v58 = vadd.f32 %v4271_v34, %v7282_v6  ;;  %v3618_v7 = vadd.f32 %v7771_v18, %v7282_v6 }
 0x262   : > { %3967 = vst.msk [vmem:[%s7302_s23 + $0x40] sm:$0xff] %vm3427_vm8, %v3865_v16  ;;  %v3876_v23 = vadd.f32 %v4456_v37, %v3715_v13  ;;  %v3747_v62 = vadd.f32 %v4380_v31, %v3586_v47 }
 0x263   : > { %v7389_v63 = vpop.f32.mrf.mxu1  ;;  %v3867_v27 = vpop.f32.mrf.mxu0 }
 0x264   : > { %3970 = vst.msk [vmem:[%s7302_s23 + $0x58] sm:$0xff] %vm3427_vm8, %v3876_v23  ;;  %v3868_v22 = vadd.f32 %v3867_v27, %v3707_v61  ;;  %v7765_v61 = vld [vmem:[#allocation4_spill] sm:$0xff]  ;;  %v4386_v20 = vadd.f32 %v7389_v63, %v7381_v5 }
 0x265   : > { %v4387_v42 = vpop.f32.mrf.mxu1  ;;  %v4459_v49 = vpop.f32.mrf.mxu0  ;;  %v7766_v27 = vld [vmem:[#allocation24_spill] sm:$0xff] }
 0x266   : > { %3968 = vst.msk [vmem:[%s7302_s23 + $0x48] sm:$0xff] %vm3427_vm8, %v3868_v22  ;;  %v3889_v51 = vadd.f32 %v4459_v49, %v3728_v43  ;;  %v4280_v54 = vadd.f32 %v7766_v27, %v7765_v61  ;;  %v3739_v43 = vadd.f32 %v4374_v50, %v3578_v3 }
 0x267   : > { %v4388_v11 = vpop.f32.mrf.mxu1  ;;  %v3880_v19 = vpop.f32.mrf.mxu0 }
 0x268   : > { %3973 = vst.msk [vmem:[%s7302_s23 + $0x70] sm:$0xff] %vm3427_vm8, %v3889_v51  ;;  %v3881_v53 = vadd.f32 %v3880_v19, %v3720_v57  ;;  %v4389_v37 = vadd.f32 %v4388_v11, %v4387_v42  ;;  %v4274_v51 = vadd.f32 %v7768_v55, %v7767_v36  ;;  %v3602_v48 = vadd.f32 %v4280_v54, %v7282_v6  ;;  %v7775_v36 = vld [vmem:[#allocation10_spill] sm:$0xff] }
 0x269   : > { %v4390_v26 = vpop.f32.mrf.mxu1  ;;  %v4460_v10 = vpop.f32.mrf.mxu0  ;;  %v3631_v55 = vadd.f32 %v7775_v36, %v7282_v6 }
 0x26a   : > { %3971 = vst.msk [vmem:[%s7302_s23 + $0x60] sm:$0xff] %vm3427_vm8, %v3881_v53  ;;  %v3892_v12 = vadd.f32 %v4460_v10, %v3731_v35  ;;  %v3760_v11 = vadd.f32 %v4389_v37, %v3599_v0  ;;  %v3752_v53 = vadd.f32 %v4383_v40, %v3591_v58 }
 0x26b   : > { %v4391_v24 = vpop.f32.mrf.mxu1  ;;  %v3883_v38 = vpop.f32.mrf.mxu0 }
 0x26c   : > { %3974 = vst.msk [vmem:[%s7302_s23 + $0x78] sm:$0xff] %vm3427_vm8, %v3892_v12  ;;  %v3884_v4 = vadd.f32 %v3883_v38, %v3723_v41  ;;  %v4392_v57 = vadd.f32 %v4391_v24, %v4390_v26  ;;  %v3594_v26 = vadd.f32 %v4274_v51, %v7282_v6  ;;  %v7769_v12 = vld [vmem:[#allocation9_spill] sm:$0xff] }
 0x26d   : > { %v4393_v1 = vpop.f32.mrf.mxu1  ;;  %v4463_v2 = vpop.f32.mrf.mxu0  ;;  %v3615_v41 = vadd.f32 %v7769_v12, %v7282_v6 }
 0x26e   : > { %3972 = vst.msk [vmem:[%s7302_s23 + $0x68] sm:$0xff] %vm3427_vm8, %v3884_v4  ;;  %v3905_v46 = vadd.f32 %v4463_v2, %v3744_v8  ;;  %v3763_v44 = vadd.f32 %v4392_v57, %v3602_v48  ;;  %v3755_v30 = vadd.f32 %v4386_v20, %v3594_v26 }
 0x26f   : > { %v4394_v16 = vpop.f32.mrf.mxu1  ;;  %v3896_v13 = vpop.f32.mrf.mxu0 }
 0x270   : > { %3977 = vst.msk [vmem:[%s7302_s23 + $0x90] sm:$0xff] %vm3427_vm8, %v3905_v46  ;;  %v3897_v39 = vadd.f32 %v3896_v13, %v3736_v56  ;;  %v4395_v5 = vadd.f32 %v4394_v16, %v4393_v1  ;;  %v7772_v56 = vld [vmem:[#allocation18_spill] sm:$0xff] }
 0x271   : > { %v4396_v32 = vpop.f32.mrf.mxu1  ;;  %v4464_v23 = vpop.f32.mrf.mxu0  ;;  %v3610_v17 = vadd.f32 %v7772_v56, %v7282_v6 }
 0x272   : > { %3975 = vst.msk [vmem:[%s7302_s23 + $0x80] sm:$0xff] %vm3427_vm8, %v3897_v39  ;;  %v3908_v22 = vadd.f32 %v4464_v23, %v3747_v62  ;;  %v3768_v47 = vadd.f32 %v4395_v5, %v3607_v33 }
 0x273   : > { %v4397_v42 = vpop.f32.mrf.mxu1  ;;  %v3899_v49 = vpop.f32.mrf.mxu0 }
 0x274   : > { %3978 = vst.msk [vmem:[%s7302_s23 + $0x98] sm:$0xff] %vm3427_vm8, %v3908_v22  ;;  %v3900_v45 = vadd.f32 %v3899_v49, %v3739_v43  ;;  %v4398_v1 = vadd.f32 %v4397_v42, %v4396_v32  ;;  %v7773_v32 = vld [vmem:[#allocation17_spill] sm:$0xff]  ;;  %v7774_v42 = vld [vmem:[#allocation7_spill] sm:$0xff] }
 0x275   : > { %v4399_v19 = vpop.f32.mrf.mxu1  ;;  %v4467_v28 = vpop.f32.mrf.mxu0  ;;  %v3623_v23 = vadd.f32 %v7773_v32, %v7282_v6  ;;  %v3626_v49 = vadd.f32 %v7774_v42, %v7282_v6 }
 0x276   : > { %3976 = vst.msk [vmem:[%s7302_s23 + $0x88] sm:$0xff] %vm3427_vm8, %v3900_v45  ;;  %v3921_v59 = vadd.f32 %v4467_v28, %v3760_v11  ;;  %v3771_v39 = vadd.f32 %v4398_v1, %v3610_v17 }
 0x277   : > { %v4400_v35 = vpop.f32.mrf.mxu1  ;;  %v3912_v21 = vpop.f32.mrf.mxu0 }
 0x278   : > { %3981 = vst.msk [vmem:[%s7302_s23 + $0xb0] sm:$0xff] %vm3427_vm8, %v3921_v59  ;;  %v4401_v10 = vadd.f32 %v4400_v35, %v4399_v19  ;;  %v3913_v14 = vadd.f32 %v3912_v21, %v3752_v53  ;;  %v7776_v59 = vld [vmem:[#allocation20_spill] sm:$0xff] }
 0x279   : > { %v4402_v29 = vpop.f32.mrf.mxu1  ;;  %v4468_v60 = vpop.f32.mrf.mxu0  ;;  %v3634_v53 = vadd.f32 %v7776_v59, %v7282_v6 }
 0x27a   : > { %3979 = vst.msk [vmem:[%s7302_s23 + $0xa0] sm:$0xff] %vm3427_vm8, %v3913_v14  ;;  %v3924_v63 = vadd.f32 %v4468_v60, %v3763_v44  ;;  %v3776_v4 = vadd.f32 %v4401_v10, %v3615_v41 }
 0x27b   : > { %v4403_v24 = vpop.f32.mrf.mxu1  ;;  %v3915_v38 = vpop.f32.mrf.mxu0 }
 0x27c   : > { %3982 = vst.msk [vmem:[%s7302_s23 + $0xb8] sm:$0xff] %vm3427_vm8, %v3924_v63  ;;  %v4404_v9 = vadd.f32 %v4403_v24, %v4402_v29  ;;  %v3916_v31 = vadd.f32 %v3915_v38, %v3755_v30 }
 0x27d   : > { %v4471_v25 = vpop.f32.mrf.mxu0 }
 0x27e   : > { %3980 = vst.msk [vmem:[%s7302_s23 + $0xa8] sm:$0xff] %vm3427_vm8, %v3916_v31  ;;  %v3937_v2 = vadd.f32 %v4471_v25, %v3776_v4  ;;  %v3779_v34 = vadd.f32 %v4404_v9, %v3618_v7 }
 0x27f   : > { %v3928_v46 = vpop.f32.mrf.mxu0 }
 0x280   : > { %v4405_v8 = vpop.f32.mrf.mxu1  ;;  %3985 = vst.msk [vmem:[%s7302_s23 + $0xd0] sm:$0xff] %vm3427_vm8, %v3937_v2  ;;  %v3929_v15 = vadd.f32 %v3928_v46, %v3768_v47 }
 0x281   : > { %v4472_v13 = vpop.f32.mrf.mxu0 }
 0x282   : > { %v4406_v50 = vpop.f32.mrf.mxu1  ;;  %3983 = vst.msk [vmem:[%s7302_s23 + $0xc0] sm:$0xff] %vm3427_vm8, %v3929_v15  ;;  %v3940_v37 = vadd.f32 %v4472_v13, %v3779_v34 }
 0x283   : > { %v4407_v3 = vadd.f32 %v4406_v50, %v4405_v8  ;;  %v3931_v0 = vpop.f32.mrf.mxu0 }
 0x284   : > { %v4408_v16 = vpop.f32.mrf.mxu1  ;;  %3986 = vst.msk [vmem:[%s7302_s23 + $0xd8] sm:$0xff] %vm3427_vm8, %v3940_v37  ;;  %v3932_v61 = vadd.f32 %v3931_v0, %v3771_v39 }
 0x285   : > { %v4475_v54 = vpop.f32.mrf.mxu0  ;;  %v3784_v22 = vadd.f32 %v4407_v3, %v3623_v23 }
 0x286   : > { %v4409_v62 = vpop.f32.mrf.mxu1  ;;  %3984 = vst.msk [vmem:[%s7302_s23 + $0xc8] sm:$0xff] %vm3427_vm8, %v3932_v61 }
 0x287   : > { %v4410_v40 = vadd.f32 %v4409_v62, %v4408_v16  ;;  %v3944_v58 = vpop.f32.mrf.mxu0 }
 0x288   : > { %v3945_v57 = vadd.f32 %v3944_v58, %v3784_v22 }
 0x289   : > { %v4476_v11 = vpop.f32.mrf.mxu0  ;;  %v3787_v28 = vadd.f32 %v4410_v40, %v3626_v49 }
 0x28a   : > { %3987 = vst.msk [vmem:[%s7302_s23 + $0xe0] sm:$0xff] %vm3427_vm8, %v3945_v57 }
 0x28b   : > { %v4411_v27 = vpop.f32.mrf.mxu1  ;;  %v3947_v20 = vpop.f32.mrf.mxu0 }
 0x28c   : > { %v3948_v26 = vadd.f32 %v3947_v20, %v3787_v28 }
 0x28d   : > { %v4412_v43 = vpop.f32.mrf.mxu1 }
 0x28e   : > { %v4413_v51 = vadd.f32 %v4412_v43, %v4411_v27  ;;  %3988 = vst.msk [vmem:[%s7302_s23 + $0xe8] sm:$0xff] %vm3427_vm8, %v3948_v26 }
 0x28f   : > { %v4414_v45 = vpop.f32.mrf.mxu1 }
 0x290   : > { %v3792_v19 = vadd.f32 %v4413_v51, %v3631_v55 }
 0x291   : > { %v4415_v48 = vpop.f32.mrf.mxu1 }
 0x292   : > { %v3953_v35 = vadd.f32 %v4475_v54, %v3792_v19  ;;  %v4416_v21 = vadd.f32 %v4415_v48, %v4414_v45 }
 0x294   : > { %3989 = vst.msk [vmem:[%s7302_s23 + $0xf0] sm:$0xff] %vm3427_vm8, %v3953_v35  ;;  %v3795_v10 = vadd.f32 %v4416_v21, %v3634_v53 }
 0x296   : > { %v3956_v14 = vadd.f32 %v4476_v11, %v3795_v10 }
 0x298   : > { %3990 = vst.msk [vmem:[%s7302_s23 + $0xf8] sm:$0xff] %vm3427_vm8, %v3956_v14 }
 0x299 PF: > { %s13_s12 = sadd.s32 1, %s4628_s12  }
 0x29a   : > { %p10_p4 = scmp.ge.s32.totalorder %s13_s12, 4  }
 0x29c   :  { %12 = sbr.rel (!%p10_p4) target bundleno = 1 (0x1), region = 62 }

</bundles_post_ra>
